<compile_context>
chip_gen: v6e
topology: v6e:2x2x1
jax: 0.10.0
libtpu: 0.0.40
codegen_flags: <defaults>
</compile_context>

<pallas_src>
import functools
import math

import numpy as np
import jax
import jax.numpy as jnp
from jax import lax
from jax.experimental import pallas as pl
from jax.experimental.pallas import tpu as pltpu


# -----------------------------------------------------------------------------
# Deterministic parameter construction (mirrors MINDSCC.__init__ / smooth()).
# -----------------------------------------------------------------------------
def _mind_shift_indices():
    """The 12 (idx1, idx2) position pairs of the MIND-SSC six-neighbourhood."""
    six = np.array([[0, 1, 1], [1, 1, 0], [1, 0, 1],
                    [1, 1, 2], [2, 1, 1], [1, 2, 1]], dtype=np.float32)
    diff = six[:, None, :] - six[None, :, :]
    dist = (diff ** 2).sum(-1)                      # squared pairwise distances
    ii, jj = np.meshgrid(np.arange(6), np.arange(6), indexing="ij")
    mask = ((ii > jj) & (dist == 2)).reshape(-1)
    idx1 = np.repeat(six[:, None, :], 6, axis=1).reshape(-1, 3)[mask].astype(np.int32)
    idx2 = np.repeat(six[None, :, :], 6, axis=0).reshape(-1, 3)[mask].astype(np.int32)
    idx1 = tuple(tuple(int(v) for v in r) for r in idx1)   # 12 x (pz, py, px)
    idx2 = tuple(tuple(int(v) for v in r) for r in idx2)
    return idx1, idx2


def _gauss_weights(sigma):
    n = int(math.ceil(sigma * 3.0 / 2.0)) * 2 + 1           # 5 taps at sigma=0.8
    t = np.linspace(-(n // 2), n // 2, n)
    w = np.exp(-(t ** 2) / (2.0 * sigma ** 2))
    return w / w.sum()


def _smooth_matrix(n, w):
    """M such that M @ v applies the replicate-boundary Gaussian FIR (length n)."""
    pad = len(w) // 2
    m = np.zeros((n, n), dtype=np.float64)
    for i in range(n):
        for k, wk in enumerate(w):
            j = min(max(i + k - pad, 0), n - 1)
            m[i, j] += wk
    return m


def _vmem_limit_bytes():
    """Generation-aware VMEM budget (v5e/v6e: 128 MiB physical, v7x: 64 MiB)."""
    try:
        cap = int(pltpu.get_tpu_info().vmem_capacity_bytes)
    except Exception:                                         # pragma: no cover
        cap = 64 * 1024 * 1024
    return min((cap * 3) // 4, 100 * 1024 * 1024)


# -----------------------------------------------------------------------------
# In-kernel helpers
# -----------------------------------------------------------------------------
def _shift_replicate(img, axis, s):
    """Slice+concat fallback: out[i] = img[clamp(i + s, 0, n-1)] along `axis`."""
    n = img.shape[axis]

    def sl(lo, hi):
        idx = [slice(None)] * img.ndim
        idx[axis] = slice(lo, hi)
        return img[tuple(idx)]

    if s > 0:
        parts = [sl(s, n)] + [sl(n - 1, n)] * s
    else:
        parts = [sl(0, 1)] * (-s) + [sl(0, n + s)]
    return jnp.concatenate(parts, axis=axis)


def _shift_slab(img3, img2, axis, s):
    """Replicate-boundary shift by s along axis of (D,H,W), returned as (D*H, W).

    |s| == 1 uses an XLU roll + single boundary-row/column fix (the masked
    positions are exactly the rows/cols whose clamped value equals the original
    value, so no edge broadcast is needed)."""
    D, H, W = img3.shape
    DH = D * H
    if abs(s) != 1:
        # TODO(synk): roll-based path for |delta| > 1 (needs edge broadcast).
        return _shift_replicate(img3, axis, s).reshape(DH, W)

    if axis == 2:                                     # W: lane roll
        idx = lax.broadcasted_iota(jnp.int32, (DH, W), 1)
        boundary = (idx == W - 1) if s > 0 else (idx == 0)
        rolled = pltpu.roll(img2, (-s) % W, axis=1)
    else:                                             # D or H: sublane roll
        sub = lax.broadcasted_iota(jnp.int32, (D, H, W), axis).reshape(DH, W)
        n = D if axis == 0 else H
        step = H if axis == 0 else 1
        boundary = (sub == n - 1) if s > 0 else (sub == 0)
        rolled = pltpu.roll(img2, (-s * step) % DH, axis=0)
    return jnp.where(boundary, img2, rolled)


# -----------------------------------------------------------------------------
# Pass 1: 12 MIND channels (pre-clamp, bf16) + per-voxel mind_var (f32)
# -----------------------------------------------------------------------------
def _mind_desc_kernel(xy_ref, tw_ref, l_ref, mind_ref, var_ref, *, idx1, idx2, delta):
    D, H, W = xy_ref.shape[2:]
    DH = D * H
    n_chan = len(idx1)

    img3 = xy_ref[0, 0]                       # (D, H, W) f32
    img2 = img3.reshape(DH, W)                # lane-dense working layout

    # 6 unique +/-delta axis shifts (XLU rolls), reused across the 12 pairs.
    positions = []
    for p in idx1 + idx2:
        if p not in positions:
            positions.append(p)
    slabs = {}
    for p in positions:
        shift = [(c - 1) * delta for c in p]          # exactly one non-zero entry
        axis = [a for a, v in enumerate(shift) if v != 0][0]
        slabs[p] = _shift_slab(img3, img2, axis, shift[axis])

    # 12 squared-difference channels stacked along sublanes (M axis), bf16 feed:
    # ONE big MXU matmul applies the W-axis Gaussian.
    ssd_rows = jnp.concatenate(
        [((slabs[p1] - slabs[p2]) ** 2).astype(jnp.bfloat16)
         for p1, p2 in zip(idx1, idx2)], axis=0)                     # (12*DH, W)
    smw = jnp.dot(ssd_rows, tw_ref[...],
                  preferred_element_type=jnp.float32)                # (12*DH, W) f32

    # Re-stack channels along lanes (N axis) and apply the D/H smoothing with a
    # single (DH, DH) x (DH, 12*W) MXU matmul.
    sm_l = jnp.concatenate(
        [smw[c * DH:(c + 1) * DH, :].astype(jnp.bfloat16) for c in range(n_chan)],
        axis=1)                                                      # (DH, 12*W)
    sm = jnp.dot(l_ref[...], sm_l,
                 preferred_element_type=jnp.float32)                 # (DH, 12*W) f32

    # Single pass over lane-tile channel slices: running min + running sum
    # (no materialized 12-channel mind list).
    mn = sm[:, 0:W]
    tot = sm[:, 0:W]
    for c in range(1, n_chan):
        ch = sm[:, c * W:(c + 1) * W]
        mn = jnp.minimum(mn, ch)
        tot = tot + ch

    # per-voxel mind_var (pre-clamp) = mean_c(ch - mn) = tot/n_chan - mn, in f32
    var_ref[0, 0] = tot * (1.0 / n_chan) - mn

    # mind channels written once each, bf16 (halves the inter-pass HBM traffic)
    for c in range(n_chan):
        mind_ref[0, 0, c] = (sm[:, c * W:(c + 1) * W] - mn).astype(jnp.bfloat16)


# -----------------------------------------------------------------------------
# Pass 2: clamp with GLOBAL mean, exp, squared-difference partial sums
# (each mind channel loaded exactly once; var comes precomputed from pass 1)
# -----------------------------------------------------------------------------
def _mind_loss_kernel(m_ref, v_ref, mx_ref, my_ref, out_ref, *, cpg):
    def clamp_inv(v, mean):
        cmax = mean * 1000.0
        cmin = mean * 0.001
        v = jnp.where(v > cmax, cmax, v)
        v = jnp.where(v < cmin, cmin, v)
        return 1.0 / v                       # exact divide (review correctness note)

    inv_x = clamp_inv(v_ref[0, 0], mx_ref[0, 0])
    inv_y = clamp_inv(v_ref[0, 1], my_ref[0, 0])

    acc = None
    for c in range(cpg):
        dx = jnp.exp(-(m_ref[0, 0, c].astype(jnp.float32) * inv_x))
        dy = jnp.exp(-(m_ref[0, 1, c].astype(jnp.float32) * inv_y))
        d = dx - dy
        acc = d * d if acc is None else acc + d * d
    # aligned (8,128) store of the scalar partial sum (no masked store)
    out_ref[0, 0] = jnp.zeros((8, 128), jnp.float32) + jnp.sum(acc)


# -----------------------------------------------------------------------------
# Wrapper
# -----------------------------------------------------------------------------
def mindscc_loss(x, y, delta=1, sigma=0.8):
    """x, y: (B, 1, D, H, W) -> scalar MIND-SSC MSE loss (MINDSCC.forward)."""
    assert x.shape == y.shape and x.shape[1] == 1
    B, _, D, H, W = x.shape
    DH = D * H

    # stack x / y so pass 1 can grid over (batch, image) -> 2*B parallel steps
    xy = jnp.stack([x[:, 0].astype(jnp.float32), y[:, 0].astype(jnp.float32)], axis=1)

    idx1, idx2 = _mind_shift_indices()
    n_chan = len(idx1)                                   # 12
    gw = _gauss_weights(sigma)
    tw_bf16 = jnp.asarray(_smooth_matrix(W, gw).T, dtype=jnp.bfloat16)     # (W, W)
    l_bf16 = jnp.asarray(np.kron(_smooth_matrix(D, gw), _smooth_matrix(H, gw)),
                         dtype=jnp.bfloat16)                               # (DH, DH)

    cparams = pltpu.CompilerParams(
        dimension_semantics=("parallel", "parallel"),
        vmem_limit_bytes=_vmem_limit_bytes(),
    )

    mind, var = pl.pallas_call(
        functools.partial(_mind_desc_kernel, idx1=idx1, idx2=idx2, delta=delta),
        grid=(B, 2),
        in_specs=[
            pl.BlockSpec((1, 1, D, H, W), lambda b, s: (b, s, 0, 0, 0)),
            pl.BlockSpec((W, W), lambda b, s: (0, 0)),
            pl.BlockSpec((DH, DH), lambda b, s: (0, 0)),
        ],
        out_specs=[
            pl.BlockSpec((1, 1, n_chan, DH, W), lambda b, s: (b, s, 0, 0, 0)),
            pl.BlockSpec((1, 1, DH, W), lambda b, s: (b, s, 0, 0)),
        ],
        out_shape=[
            jax.ShapeDtypeStruct((B, 2, n_chan, DH, W), jnp.bfloat16),
            jax.ShapeDtypeStruct((B, 2, DH, W), jnp.float32),
        ],
        compiler_params=cparams,
    )(xy, tw_bf16, l_bf16)

    # Global mean of mind_var (per image type), exact f32 mean over batch+voxels.
    mean_x = jnp.mean(var[:, 0]).reshape(1, 1)
    mean_y = jnp.mean(var[:, 1]).reshape(1, 1)

    n_grp = 2                       # channel halves -> extra parallel extent
    cpg = n_chan // n_grp
    partials = pl.pallas_call(
        functools.partial(_mind_loss_kernel, cpg=cpg),
        grid=(B, n_grp),
        in_specs=[
            pl.BlockSpec((1, 2, cpg, DH, W), lambda b, g: (b, 0, g, 0, 0)),
            pl.BlockSpec((1, 2, DH, W), lambda b, g: (b, 0, 0, 0)),
            pl.BlockSpec(memory_space=pltpu.MemorySpace.SMEM),
            pl.BlockSpec(memory_space=pltpu.MemorySpace.SMEM),
        ],
        out_specs=pl.BlockSpec((1, 1, 8, 128), lambda b, g: (b, g, 0, 0)),
        out_shape=jax.ShapeDtypeStruct((B, n_grp, 8, 128), jnp.float32),
        compiler_params=cparams,
    )(mind, var, mean_x, mean_y)

    count = float(n_chan * B * D * H * W)
    return jnp.sum(partials[:, :, 0, 0]) / count


if __name__ == "__main__":
    key = jax.random.PRNGKey(0)
    kx, ky = jax.random.split(key)
    shape = (2, 1, 8, 8, 128)                    # (B, C=1, D, H, W), lane-dense W
    x = jax.random.uniform(kx, shape, dtype=jnp.float32)
    y = jax.random.uniform(ky, shape, dtype=jnp.float32)

    loss = jax.jit(mindscc_loss)(x, y)
    loss = jax.block_until_ready(loss)
    assert bool(jnp.isfinite(loss)), f"non-finite loss: {loss}"
    print("KERNEL_OK")
</pallas_src>

<mosaic_0001>
module attributes {stable_mosaic.version = 11 : i64} {
  func.func @_mind_desc_kernel(%arg0: i32, %arg1: i32, %arg2: memref<1x1x8x8x128xf32, #tpu.memory_space<vmem>>, %arg3: memref<128x128xbf16, #tpu.memory_space<vmem>>, %arg4: memref<64x64xbf16, #tpu.memory_space<vmem>>, %arg5: memref<1x1x12x64x128xbf16, #tpu.memory_space<vmem>>, %arg6: memref<1x1x64x128xf32, #tpu.memory_space<vmem>>) attributes {dimension_semantics = [#tpu.dimension_semantics<parallel>, #tpu.dimension_semantics<parallel>], iteration_bounds = array<i64: 2, 2>, scalar_prefetch = 0 : i64, scratch_operands = 0 : i64, tpu.core_type = #tpu.core_type<tc>, window_params = [{transform_indices = @transform_0, window_bounds = array<i64: 1, 1, 8, 8, 128>}, {pipeline_mode = #tpu.pipeline_mode<synchronous>, transform_indices = @transform_1, window_bounds = array<i64: 128, 128>}, {pipeline_mode = #tpu.pipeline_mode<synchronous>, transform_indices = @transform_2, window_bounds = array<i64: 64, 64>}, {transform_indices = @transform_3, window_bounds = array<i64: 1, 1, 12, 64, 128>}, {transform_indices = @transform_4, window_bounds = array<i64: 1, 1, 64, 128>}]} {
    %c0 = arith.constant 0 : index
    %c0_0 = arith.constant 0 : index
    %c0_1 = arith.constant 0 : index
    %c0_2 = arith.constant 0 : index
    %c0_3 = arith.constant 0 : index
    %0 = vector.load %arg2[%c0, %c0_0, %c0_1, %c0_2, %c0_3] : memref<1x1x8x8x128xf32, #tpu.memory_space<vmem>>, vector<1x1x8x8x128xf32>
    %1 = vector.shape_cast %0 : vector<1x1x8x8x128xf32> to vector<8x8x128xf32>
    %2 = vector.shape_cast %1 : vector<8x8x128xf32> to vector<64x128xf32>
    %3 = tpu.iota {dimensions = array<i32: 1>} : vector<64x128xi32>
    %c0_i32 = arith.constant 0 : i32
    %4 = vector.broadcast %c0_i32 : i32 to vector<64x128xi32>
    %5 = arith.cmpi eq, %3, %4 : vector<64x128xi32>
    %c1_i32 = arith.constant 1 : i32
    %6 = tpu.dynamic_rotate %2 by %c1_i32 dim 1 : vector<64x128xf32>, i32 -> vector<64x128xf32>
    %7 = arith.select %5, %2, %6 : vector<64x128xi1>, vector<64x128xf32>
    %8 = tpu.iota {dimensions = array<i32: 1>} : vector<8x8x128xi32>
    %9 = vector.shape_cast %8 : vector<8x8x128xi32> to vector<64x128xi32>
    %c0_i32_4 = arith.constant 0 : i32
    %10 = vector.broadcast %c0_i32_4 : i32 to vector<64x128xi32>
    %11 = arith.cmpi eq, %9, %10 : vector<64x128xi32>
    %c1_i32_5 = arith.constant 1 : i32
    %12 = tpu.dynamic_rotate %2 by %c1_i32_5 dim 0 : vector<64x128xf32>, i32 -> vector<64x128xf32>
    %13 = arith.select %11, %2, %12 : vector<64x128xi1>, vector<64x128xf32>
    %14 = tpu.iota {dimensions = array<i32: 1>} : vector<64x128xi32>
    %c127_i32 = arith.constant 127 : i32
    %15 = vector.broadcast %c127_i32 : i32 to vector<64x128xi32>
    %16 = arith.cmpi eq, %14, %15 : vector<64x128xi32>
    %c127_i32_6 = arith.constant 127 : i32
    %17 = tpu.dynamic_rotate %2 by %c127_i32_6 dim 1 : vector<64x128xf32>, i32 -> vector<64x128xf32>
    %18 = arith.select %16, %2, %17 : vector<64x128xi1>, vector<64x128xf32>
    %19 = tpu.iota {dimensions = array<i32: 0>} : vector<8x8x128xi32>
    %20 = vector.shape_cast %19 : vector<8x8x128xi32> to vector<64x128xi32>
    %c7_i32 = arith.constant 7 : i32
    %21 = vector.broadcast %c7_i32 : i32 to vector<64x128xi32>
    %22 = arith.cmpi eq, %20, %21 : vector<64x128xi32>
    %c56_i32 = arith.constant 56 : i32
    %23 = tpu.dynamic_rotate %2 by %c56_i32 dim 0 : vector<64x128xf32>, i32 -> vector<64x128xf32>
    %24 = arith.select %22, %2, %23 : vector<64x128xi1>, vector<64x128xf32>
    %25 = tpu.iota {dimensions = array<i32: 1>} : vector<8x8x128xi32>
    %26 = vector.shape_cast %25 : vector<8x8x128xi32> to vector<64x128xi32>
    %c7_i32_7 = arith.constant 7 : i32
    %27 = vector.broadcast %c7_i32_7 : i32 to vector<64x128xi32>
    %28 = arith.cmpi eq, %26, %27 : vector<64x128xi32>
    %c63_i32 = arith.constant 63 : i32
    %29 = tpu.dynamic_rotate %2 by %c63_i32 dim 0 : vector<64x128xf32>, i32 -> vector<64x128xf32>
    %30 = arith.select %28, %2, %29 : vector<64x128xi1>, vector<64x128xf32>
    %31 = tpu.iota {dimensions = array<i32: 0>} : vector<8x8x128xi32>
    %32 = vector.shape_cast %31 : vector<8x8x128xi32> to vector<64x128xi32>
    %c0_i32_8 = arith.constant 0 : i32
    %33 = vector.broadcast %c0_i32_8 : i32 to vector<64x128xi32>
    %34 = arith.cmpi eq, %32, %33 : vector<64x128xi32>
    %c8_i32 = arith.constant 8 : i32
    %35 = tpu.dynamic_rotate %2 by %c8_i32 dim 0 : vector<64x128xf32>, i32 -> vector<64x128xf32>
    %36 = arith.select %34, %2, %35 : vector<64x128xi1>, vector<64x128xf32>
    %37 = arith.subf %7, %36 : vector<64x128xf32>
    %38 = arith.mulf %37, %37 : vector<64x128xf32>
    %39 = arith.truncf %38 : vector<64x128xf32> to vector<64x128xbf16>
    %40 = arith.subf %13, %36 : vector<64x128xf32>
    %41 = arith.mulf %40, %40 : vector<64x128xf32>
    %42 = arith.truncf %41 : vector<64x128xf32> to vector<64x128xbf16>
    %43 = arith.subf %13, %7 : vector<64x128xf32>
    %44 = arith.mulf %43, %43 : vector<64x128xf32>
    %45 = arith.truncf %44 : vector<64x128xf32> to vector<64x128xbf16>
    %46 = arith.subf %18, %36 : vector<64x128xf32>
    %47 = arith.mulf %46, %46 : vector<64x128xf32>
    %48 = arith.truncf %47 : vector<64x128xf32> to vector<64x128xbf16>
    %49 = arith.subf %18, %13 : vector<64x128xf32>
    %50 = arith.mulf %49, %49 : vector<64x128xf32>
    %51 = arith.truncf %50 : vector<64x128xf32> to vector<64x128xbf16>
    %52 = arith.subf %24, %7 : vector<64x128xf32>
    %53 = arith.mulf %52, %52 : vector<64x128xf32>
    %54 = arith.truncf %53 : vector<64x128xf32> to vector<64x128xbf16>
    %55 = arith.subf %24, %13 : vector<64x128xf32>
    %56 = arith.mulf %55, %55 : vector<64x128xf32>
    %57 = arith.truncf %56 : vector<64x128xf32> to vector<64x128xbf16>
    %58 = arith.subf %24, %18 : vector<64x128xf32>
    %59 = arith.mulf %58, %58 : vector<64x128xf32>
    %60 = arith.truncf %59 : vector<64x128xf32> to vector<64x128xbf16>
    %61 = arith.subf %30, %36 : vector<64x128xf32>
    %62 = arith.mulf %61, %61 : vector<64x128xf32>
    %63 = arith.truncf %62 : vector<64x128xf32> to vector<64x128xbf16>
    %64 = arith.subf %30, %7 : vector<64x128xf32>
    %65 = arith.mulf %64, %64 : vector<64x128xf32>
    %66 = arith.truncf %65 : vector<64x128xf32> to vector<64x128xbf16>
    %67 = arith.subf %30, %18 : vector<64x128xf32>
    %68 = arith.mulf %67, %67 : vector<64x128xf32>
    %69 = arith.truncf %68 : vector<64x128xf32> to vector<64x128xbf16>
    %70 = arith.subf %30, %24 : vector<64x128xf32>
    %71 = arith.mulf %70, %70 : vector<64x128xf32>
    %72 = arith.truncf %71 : vector<64x128xf32> to vector<64x128xbf16>
    %73 = tpu.concatenate %39, %42, %45, %48, %51, %54, %57, %60, %63, %66, %69, %72 in 0 : vector<64x128xbf16>, vector<64x128xbf16>, vector<64x128xbf16>, vector<64x128xbf16>, vector<64x128xbf16>, vector<64x128xbf16>, vector<64x128xbf16>, vector<64x128xbf16>, vector<64x128xbf16>, vector<64x128xbf16>, vector<64x128xbf16>, vector<64x128xbf16> -> vector<768x128xbf16>
    %c0_9 = arith.constant 0 : index
    %c0_10 = arith.constant 0 : index
    %74 = vector.load %arg3[%c0_9, %c0_10] : memref<128x128xbf16, #tpu.memory_space<vmem>>, vector<128x128xbf16>
    %cst = arith.constant dense<0.000000e+00> : vector<768x128xf32>
    %75 = tpu.matmul %73, %74, %cst {dimension_numbers = #tpu.dot_dimension_numbers<[1], [0], [0], [1], [0, 0, 1, 1], [], []>} : vector<768x128xbf16>, vector<128x128xbf16>, vector<768x128xf32> -> vector<768x128xf32>
    %76 = vector.extract_strided_slice %75 {offsets = [0, 0], sizes = [64, 128], strides = [1, 1]} : vector<768x128xf32> to vector<64x128xf32>
    %77 = arith.truncf %76 : vector<64x128xf32> to vector<64x128xbf16>
    %78 = vector.extract_strided_slice %75 {offsets = [64, 0], sizes = [64, 128], strides = [1, 1]} : vector<768x128xf32> to vector<64x128xf32>
    %79 = arith.truncf %78 : vector<64x128xf32> to vector<64x128xbf16>
    %80 = vector.extract_strided_slice %75 {offsets = [128, 0], sizes = [64, 128], strides = [1, 1]} : vector<768x128xf32> to vector<64x128xf32>
    %81 = arith.truncf %80 : vector<64x128xf32> to vector<64x128xbf16>
    %82 = vector.extract_strided_slice %75 {offsets = [192, 0], sizes = [64, 128], strides = [1, 1]} : vector<768x128xf32> to vector<64x128xf32>
    %83 = arith.truncf %82 : vector<64x128xf32> to vector<64x128xbf16>
    %84 = vector.extract_strided_slice %75 {offsets = [256, 0], sizes = [64, 128], strides = [1, 1]} : vector<768x128xf32> to vector<64x128xf32>
    %85 = arith.truncf %84 : vector<64x128xf32> to vector<64x128xbf16>
    %86 = vector.extract_strided_slice %75 {offsets = [320, 0], sizes = [64, 128], strides = [1, 1]} : vector<768x128xf32> to vector<64x128xf32>
    %87 = arith.truncf %86 : vector<64x128xf32> to vector<64x128xbf16>
    %88 = vector.extract_strided_slice %75 {offsets = [384, 0], sizes = [64, 128], strides = [1, 1]} : vector<768x128xf32> to vector<64x128xf32>
    %89 = arith.truncf %88 : vector<64x128xf32> to vector<64x128xbf16>
    %90 = vector.extract_strided_slice %75 {offsets = [448, 0], sizes = [64, 128], strides = [1, 1]} : vector<768x128xf32> to vector<64x128xf32>
    %91 = arith.truncf %90 : vector<64x128xf32> to vector<64x128xbf16>
    %92 = vector.extract_strided_slice %75 {offsets = [512, 0], sizes = [64, 128], strides = [1, 1]} : vector<768x128xf32> to vector<64x128xf32>
    %93 = arith.truncf %92 : vector<64x128xf32> to vector<64x128xbf16>
    %94 = vector.extract_strided_slice %75 {offsets = [576, 0], sizes = [64, 128], strides = [1, 1]} : vector<768x128xf32> to vector<64x128xf32>
    %95 = arith.truncf %94 : vector<64x128xf32> to vector<64x128xbf16>
    %96 = vector.extract_strided_slice %75 {offsets = [640, 0], sizes = [64, 128], strides = [1, 1]} : vector<768x128xf32> to vector<64x128xf32>
    %97 = arith.truncf %96 : vector<64x128xf32> to vector<64x128xbf16>
    %98 = vector.extract_strided_slice %75 {offsets = [704, 0], sizes = [64, 128], strides = [1, 1]} : vector<768x128xf32> to vector<64x128xf32>
    %99 = arith.truncf %98 : vector<64x128xf32> to vector<64x128xbf16>
    %100 = tpu.concatenate %77, %79, %81, %83, %85, %87, %89, %91, %93, %95, %97, %99 in 1 : vector<64x128xbf16>, vector<64x128xbf16>, vector<64x128xbf16>, vector<64x128xbf16>, vector<64x128xbf16>, vector<64x128xbf16>, vector<64x128xbf16>, vector<64x128xbf16>, vector<64x128xbf16>, vector<64x128xbf16>, vector<64x128xbf16>, vector<64x128xbf16> -> vector<64x1536xbf16>
    %c0_11 = arith.constant 0 : index
    %c0_12 = arith.constant 0 : index
    %101 = vector.load %arg4[%c0_11, %c0_12] : memref<64x64xbf16, #tpu.memory_space<vmem>>, vector<64x64xbf16>
    %cst_13 = arith.constant dense<0.000000e+00> : vector<64x1536xf32>
    %102 = tpu.matmul %101, %100, %cst_13 {dimension_numbers = #tpu.dot_dimension_numbers<[1], [0], [0], [1], [0, 0, 1, 1], [], []>} : vector<64x64xbf16>, vector<64x1536xbf16>, vector<64x1536xf32> -> vector<64x1536xf32>
    %103 = vector.extract_strided_slice %102 {offsets = [0, 0], sizes = [64, 128], strides = [1, 1]} : vector<64x1536xf32> to vector<64x128xf32>
    %104 = vector.extract_strided_slice %102 {offsets = [0, 0], sizes = [64, 128], strides = [1, 1]} : vector<64x1536xf32> to vector<64x128xf32>
    %105 = vector.extract_strided_slice %102 {offsets = [0, 128], sizes = [64, 128], strides = [1, 1]} : vector<64x1536xf32> to vector<64x128xf32>
    %106 = arith.minimumf %103, %105 : vector<64x128xf32>
    %107 = arith.addf %104, %105 : vector<64x128xf32>
    %108 = vector.extract_strided_slice %102 {offsets = [0, 256], sizes = [64, 128], strides = [1, 1]} : vector<64x1536xf32> to vector<64x128xf32>
    %109 = arith.minimumf %106, %108 : vector<64x128xf32>
    %110 = arith.addf %107, %108 : vector<64x128xf32>
    %111 = vector.extract_strided_slice %102 {offsets = [0, 384], sizes = [64, 128], strides = [1, 1]} : vector<64x1536xf32> to vector<64x128xf32>
    %112 = arith.minimumf %109, %111 : vector<64x128xf32>
    %113 = arith.addf %110, %111 : vector<64x128xf32>
    %114 = vector.extract_strided_slice %102 {offsets = [0, 512], sizes = [64, 128], strides = [1, 1]} : vector<64x1536xf32> to vector<64x128xf32>
    %115 = arith.minimumf %112, %114 : vector<64x128xf32>
    %116 = arith.addf %113, %114 : vector<64x128xf32>
    %117 = vector.extract_strided_slice %102 {offsets = [0, 640], sizes = [64, 128], strides = [1, 1]} : vector<64x1536xf32> to vector<64x128xf32>
    %118 = arith.minimumf %115, %117 : vector<64x128xf32>
    %119 = arith.addf %116, %117 : vector<64x128xf32>
    %120 = vector.extract_strided_slice %102 {offsets = [0, 768], sizes = [64, 128], strides = [1, 1]} : vector<64x1536xf32> to vector<64x128xf32>
    %121 = arith.minimumf %118, %120 : vector<64x128xf32>
    %122 = arith.addf %119, %120 : vector<64x128xf32>
    %123 = vector.extract_strided_slice %102 {offsets = [0, 896], sizes = [64, 128], strides = [1, 1]} : vector<64x1536xf32> to vector<64x128xf32>
    %124 = arith.minimumf %121, %123 : vector<64x128xf32>
    %125 = arith.addf %122, %123 : vector<64x128xf32>
    %126 = vector.extract_strided_slice %102 {offsets = [0, 1024], sizes = [64, 128], strides = [1, 1]} : vector<64x1536xf32> to vector<64x128xf32>
    %127 = arith.minimumf %124, %126 : vector<64x128xf32>
    %128 = arith.addf %125, %126 : vector<64x128xf32>
    %129 = vector.extract_strided_slice %102 {offsets = [0, 1152], sizes = [64, 128], strides = [1, 1]} : vector<64x1536xf32> to vector<64x128xf32>
    %130 = arith.minimumf %127, %129 : vector<64x128xf32>
    %131 = arith.addf %128, %129 : vector<64x128xf32>
    %132 = vector.extract_strided_slice %102 {offsets = [0, 1280], sizes = [64, 128], strides = [1, 1]} : vector<64x1536xf32> to vector<64x128xf32>
    %133 = arith.minimumf %130, %132 : vector<64x128xf32>
    %134 = arith.addf %131, %132 : vector<64x128xf32>
    %135 = vector.extract_strided_slice %102 {offsets = [0, 1408], sizes = [64, 128], strides = [1, 1]} : vector<64x1536xf32> to vector<64x128xf32>
    %136 = arith.minimumf %133, %135 : vector<64x128xf32>
    %137 = arith.addf %134, %135 : vector<64x128xf32>
    %cst_14 = arith.constant 0.0833333358 : f32
    %138 = vector.broadcast %cst_14 : f32 to vector<64x128xf32>
    %139 = arith.mulf %137, %138 : vector<64x128xf32>
    %140 = arith.subf %139, %136 : vector<64x128xf32>
    %c0_15 = arith.constant 0 : index
    %c0_16 = arith.constant 0 : index
    %c0_17 = arith.constant 0 : index
    %c0_18 = arith.constant 0 : index
    %141 = vector.load %arg6[%c0_15, %c0_16, %c0_17, %c0_18] : memref<1x1x64x128xf32, #tpu.memory_space<vmem>>, vector<1x1x64x128xf32>
    %142 = vector.shape_cast %141 : vector<1x1x64x128xf32> to vector<64x128xf32>
    %143 = vector.shape_cast %140 : vector<64x128xf32> to vector<1x1x64x128xf32>
    tpu.vector_store %arg6[%c0_15, %c0_16, %c0_17, %c0_18], %143 {strides = array<i32>} : memref<1x1x64x128xf32, #tpu.memory_space<vmem>>, vector<1x1x64x128xf32>,
    %144 = vector.extract_strided_slice %102 {offsets = [0, 0], sizes = [64, 128], strides = [1, 1]} : vector<64x1536xf32> to vector<64x128xf32>
    %145 = arith.subf %144, %136 : vector<64x128xf32>
    %146 = arith.truncf %145 : vector<64x128xf32> to vector<64x128xbf16>
    %c0_19 = arith.constant 0 : index
    %c0_20 = arith.constant 0 : index
    %c0_21 = arith.constant 0 : index
    %c0_22 = arith.constant 0 : index
    %c0_23 = arith.constant 0 : index
    %147 = vector.load %arg5[%c0_19, %c0_20, %c0_21, %c0_22, %c0_23] : memref<1x1x12x64x128xbf16, #tpu.memory_space<vmem>>, vector<1x1x1x64x128xbf16>
    %148 = vector.shape_cast %147 : vector<1x1x1x64x128xbf16> to vector<64x128xbf16>
    %149 = vector.shape_cast %146 : vector<64x128xbf16> to vector<1x1x1x64x128xbf16>
    tpu.vector_store %arg5[%c0_19, %c0_20, %c0_21, %c0_22, %c0_23], %149 {strides = array<i32>} : memref<1x1x12x64x128xbf16, #tpu.memory_space<vmem>>, vector<1x1x1x64x128xbf16>,
    %150 = vector.extract_strided_slice %102 {offsets = [0, 128], sizes = [64, 128], strides = [1, 1]} : vector<64x1536xf32> to vector<64x128xf32>
    %151 = arith.subf %150, %136 : vector<64x128xf32>
    %152 = arith.truncf %151 : vector<64x128xf32> to vector<64x128xbf16>
    %c0_24 = arith.constant 0 : index
    %c0_25 = arith.constant 0 : index
    %c1 = arith.constant 1 : index
    %c0_26 = arith.constant 0 : index
    %c0_27 = arith.constant 0 : index
    %153 = vector.load %arg5[%c0_24, %c0_25, %c1, %c0_26, %c0_27] : memref<1x1x12x64x128xbf16, #tpu.memory_space<vmem>>, vector<1x1x1x64x128xbf16>
    %154 = vector.shape_cast %153 : vector<1x1x1x64x128xbf16> to vector<64x128xbf16>
    %155 = vector.shape_cast %152 : vector<64x128xbf16> to vector<1x1x1x64x128xbf16>
    tpu.vector_store %arg5[%c0_24, %c0_25, %c1, %c0_26, %c0_27], %155 {strides = array<i32>} : memref<1x1x12x64x128xbf16, #tpu.memory_space<vmem>>, vector<1x1x1x64x128xbf16>,
    %156 = vector.extract_strided_slice %102 {offsets = [0, 256], sizes = [64, 128], strides = [1, 1]} : vector<64x1536xf32> to vector<64x128xf32>
    %157 = arith.subf %156, %136 : vector<64x128xf32>
    %158 = arith.truncf %157 : vector<64x128xf32> to vector<64x128xbf16>
    %c0_28 = arith.constant 0 : index
    %c0_29 = arith.constant 0 : index
    %c2 = arith.constant 2 : index
    %c0_30 = arith.constant 0 : index
    %c0_31 = arith.constant 0 : index
    %159 = vector.load %arg5[%c0_28, %c0_29, %c2, %c0_30, %c0_31] : memref<1x1x12x64x128xbf16, #tpu.memory_space<vmem>>, vector<1x1x1x64x128xbf16>
    %160 = vector.shape_cast %159 : vector<1x1x1x64x128xbf16> to vector<64x128xbf16>
    %161 = vector.shape_cast %158 : vector<64x128xbf16> to vector<1x1x1x64x128xbf16>
    tpu.vector_store %arg5[%c0_28, %c0_29, %c2, %c0_30, %c0_31], %161 {strides = array<i32>} : memref<1x1x12x64x128xbf16, #tpu.memory_space<vmem>>, vector<1x1x1x64x128xbf16>,
    %162 = vector.extract_strided_slice %102 {offsets = [0, 384], sizes = [64, 128], strides = [1, 1]} : vector<64x1536xf32> to vector<64x128xf32>
    %163 = arith.subf %162, %136 : vector<64x128xf32>
    %164 = arith.truncf %163 : vector<64x128xf32> to vector<64x128xbf16>
    %c0_32 = arith.constant 0 : index
    %c0_33 = arith.constant 0 : index
    %c3 = arith.constant 3 : index
    %c0_34 = arith.constant 0 : index
    %c0_35 = arith.constant 0 : index
    %165 = vector.load %arg5[%c0_32, %c0_33, %c3, %c0_34, %c0_35] : memref<1x1x12x64x128xbf16, #tpu.memory_space<vmem>>, vector<1x1x1x64x128xbf16>
    %166 = vector.shape_cast %165 : vector<1x1x1x64x128xbf16> to vector<64x128xbf16>
    %167 = vector.shape_cast %164 : vector<64x128xbf16> to vector<1x1x1x64x128xbf16>
    tpu.vector_store %arg5[%c0_32, %c0_33, %c3, %c0_34, %c0_35], %167 {strides = array<i32>} : memref<1x1x12x64x128xbf16, #tpu.memory_space<vmem>>, vector<1x1x1x64x128xbf16>,
    %168 = vector.extract_strided_slice %102 {offsets = [0, 512], sizes = [64, 128], strides = [1, 1]} : vector<64x1536xf32> to vector<64x128xf32>
    %169 = arith.subf %168, %136 : vector<64x128xf32>
    %170 = arith.truncf %169 : vector<64x128xf32> to vector<64x128xbf16>
    %c0_36 = arith.constant 0 : index
    %c0_37 = arith.constant 0 : index
    %c4 = arith.constant 4 : index
    %c0_38 = arith.constant 0 : index
    %c0_39 = arith.constant 0 : index
    %171 = vector.load %arg5[%c0_36, %c0_37, %c4, %c0_38, %c0_39] : memref<1x1x12x64x128xbf16, #tpu.memory_space<vmem>>, vector<1x1x1x64x128xbf16>
    %172 = vector.shape_cast %171 : vector<1x1x1x64x128xbf16> to vector<64x128xbf16>
    %173 = vector.shape_cast %170 : vector<64x128xbf16> to vector<1x1x1x64x128xbf16>
    tpu.vector_store %arg5[%c0_36, %c0_37, %c4, %c0_38, %c0_39], %173 {strides = array<i32>} : memref<1x1x12x64x128xbf16, #tpu.memory_space<vmem>>, vector<1x1x1x64x128xbf16>,
    %174 = vector.extract_strided_slice %102 {offsets = [0, 640], sizes = [64, 128], strides = [1, 1]} : vector<64x1536xf32> to vector<64x128xf32>
    %175 = arith.subf %174, %136 : vector<64x128xf32>
    %176 = arith.truncf %175 : vector<64x128xf32> to vector<64x128xbf16>
    %c0_40 = arith.constant 0 : index
    %c0_41 = arith.constant 0 : index
    %c5 = arith.constant 5 : index
    %c0_42 = arith.constant 0 : index
    %c0_43 = arith.constant 0 : index
    %177 = vector.load %arg5[%c0_40, %c0_41, %c5, %c0_42, %c0_43] : memref<1x1x12x64x128xbf16, #tpu.memory_space<vmem>>, vector<1x1x1x64x128xbf16>
    %178 = vector.shape_cast %177 : vector<1x1x1x64x128xbf16> to vector<64x128xbf16>
    %179 = vector.shape_cast %176 : vector<64x128xbf16> to vector<1x1x1x64x128xbf16>
    tpu.vector_store %arg5[%c0_40, %c0_41, %c5, %c0_42, %c0_43], %179 {strides = array<i32>} : memref<1x1x12x64x128xbf16, #tpu.memory_space<vmem>>, vector<1x1x1x64x128xbf16>,
    %180 = vector.extract_strided_slice %102 {offsets = [0, 768], sizes = [64, 128], strides = [1, 1]} : vector<64x1536xf32> to vector<64x128xf32>
    %181 = arith.subf %180, %136 : vector<64x128xf32>
    %182 = arith.truncf %181 : vector<64x128xf32> to vector<64x128xbf16>
    %c0_44 = arith.constant 0 : index
    %c0_45 = arith.constant 0 : index
    %c6 = arith.constant 6 : index
    %c0_46 = arith.constant 0 : index
    %c0_47 = arith.constant 0 : index
    %183 = vector.load %arg5[%c0_44, %c0_45, %c6, %c0_46, %c0_47] : memref<1x1x12x64x128xbf16, #tpu.memory_space<vmem>>, vector<1x1x1x64x128xbf16>
    %184 = vector.shape_cast %183 : vector<1x1x1x64x128xbf16> to vector<64x128xbf16>
    %185 = vector.shape_cast %182 : vector<64x128xbf16> to vector<1x1x1x64x128xbf16>
    tpu.vector_store %arg5[%c0_44, %c0_45, %c6, %c0_46, %c0_47], %185 {strides = array<i32>} : memref<1x1x12x64x128xbf16, #tpu.memory_space<vmem>>, vector<1x1x1x64x128xbf16>,
    %186 = vector.extract_strided_slice %102 {offsets = [0, 896], sizes = [64, 128], strides = [1, 1]} : vector<64x1536xf32> to vector<64x128xf32>
    %187 = arith.subf %186, %136 : vector<64x128xf32>
    %188 = arith.truncf %187 : vector<64x128xf32> to vector<64x128xbf16>
    %c0_48 = arith.constant 0 : index
    %c0_49 = arith.constant 0 : index
    %c7 = arith.constant 7 : index
    %c0_50 = arith.constant 0 : index
    %c0_51 = arith.constant 0 : index
    %189 = vector.load %arg5[%c0_48, %c0_49, %c7, %c0_50, %c0_51] : memref<1x1x12x64x128xbf16, #tpu.memory_space<vmem>>, vector<1x1x1x64x128xbf16>
    %190 = vector.shape_cast %189 : vector<1x1x1x64x128xbf16> to vector<64x128xbf16>
    %191 = vector.shape_cast %188 : vector<64x128xbf16> to vector<1x1x1x64x128xbf16>
    tpu.vector_store %arg5[%c0_48, %c0_49, %c7, %c0_50, %c0_51], %191 {strides = array<i32>} : memref<1x1x12x64x128xbf16, #tpu.memory_space<vmem>>, vector<1x1x1x64x128xbf16>,
    %192 = vector.extract_strided_slice %102 {offsets = [0, 1024], sizes = [64, 128], strides = [1, 1]} : vector<64x1536xf32> to vector<64x128xf32>
    %193 = arith.subf %192, %136 : vector<64x128xf32>
    %194 = arith.truncf %193 : vector<64x128xf32> to vector<64x128xbf16>
    %c0_52 = arith.constant 0 : index
    %c0_53 = arith.constant 0 : index
    %c8 = arith.constant 8 : index
    %c0_54 = arith.constant 0 : index
    %c0_55 = arith.constant 0 : index
    %195 = vector.load %arg5[%c0_52, %c0_53, %c8, %c0_54, %c0_55] : memref<1x1x12x64x128xbf16, #tpu.memory_space<vmem>>, vector<1x1x1x64x128xbf16>
    %196 = vector.shape_cast %195 : vector<1x1x1x64x128xbf16> to vector<64x128xbf16>
    %197 = vector.shape_cast %194 : vector<64x128xbf16> to vector<1x1x1x64x128xbf16>
    tpu.vector_store %arg5[%c0_52, %c0_53, %c8, %c0_54, %c0_55], %197 {strides = array<i32>} : memref<1x1x12x64x128xbf16, #tpu.memory_space<vmem>>, vector<1x1x1x64x128xbf16>,
    %198 = vector.extract_strided_slice %102 {offsets = [0, 1152], sizes = [64, 128], strides = [1, 1]} : vector<64x1536xf32> to vector<64x128xf32>
    %199 = arith.subf %198, %136 : vector<64x128xf32>
    %200 = arith.truncf %199 : vector<64x128xf32> to vector<64x128xbf16>
    %c0_56 = arith.constant 0 : index
    %c0_57 = arith.constant 0 : index
    %c9 = arith.constant 9 : index
    %c0_58 = arith.constant 0 : index
    %c0_59 = arith.constant 0 : index
    %201 = vector.load %arg5[%c0_56, %c0_57, %c9, %c0_58, %c0_59] : memref<1x1x12x64x128xbf16, #tpu.memory_space<vmem>>, vector<1x1x1x64x128xbf16>
    %202 = vector.shape_cast %201 : vector<1x1x1x64x128xbf16> to vector<64x128xbf16>
    %203 = vector.shape_cast %200 : vector<64x128xbf16> to vector<1x1x1x64x128xbf16>
    tpu.vector_store %arg5[%c0_56, %c0_57, %c9, %c0_58, %c0_59], %203 {strides = array<i32>} : memref<1x1x12x64x128xbf16, #tpu.memory_space<vmem>>, vector<1x1x1x64x128xbf16>,
    %204 = vector.extract_strided_slice %102 {offsets = [0, 1280], sizes = [64, 128], strides = [1, 1]} : vector<64x1536xf32> to vector<64x128xf32>
    %205 = arith.subf %204, %136 : vector<64x128xf32>
    %206 = arith.truncf %205 : vector<64x128xf32> to vector<64x128xbf16>
    %c0_60 = arith.constant 0 : index
    %c0_61 = arith.constant 0 : index
    %c10 = arith.constant 10 : index
    %c0_62 = arith.constant 0 : index
    %c0_63 = arith.constant 0 : index
    %207 = vector.load %arg5[%c0_60, %c0_61, %c10, %c0_62, %c0_63] : memref<1x1x12x64x128xbf16, #tpu.memory_space<vmem>>, vector<1x1x1x64x128xbf16>
    %208 = vector.shape_cast %207 : vector<1x1x1x64x128xbf16> to vector<64x128xbf16>
    %209 = vector.shape_cast %206 : vector<64x128xbf16> to vector<1x1x1x64x128xbf16>
    tpu.vector_store %arg5[%c0_60, %c0_61, %c10, %c0_62, %c0_63], %209 {strides = array<i32>} : memref<1x1x12x64x128xbf16, #tpu.memory_space<vmem>>, vector<1x1x1x64x128xbf16>,
    %210 = vector.extract_strided_slice %102 {offsets = [0, 1408], sizes = [64, 128], strides = [1, 1]} : vector<64x1536xf32> to vector<64x128xf32>
    %211 = arith.subf %210, %136 : vector<64x128xf32>
    %212 = arith.truncf %211 : vector<64x128xf32> to vector<64x128xbf16>
    %c0_64 = arith.constant 0 : index
    %c0_65 = arith.constant 0 : index
    %c11 = arith.constant 11 : index
    %c0_66 = arith.constant 0 : index
    %c0_67 = arith.constant 0 : index
    %213 = vector.load %arg5[%c0_64, %c0_65, %c11, %c0_66, %c0_67] : memref<1x1x12x64x128xbf16, #tpu.memory_space<vmem>>, vector<1x1x1x64x128xbf16>
    %214 = vector.shape_cast %213 : vector<1x1x1x64x128xbf16> to vector<64x128xbf16>
    %215 = vector.shape_cast %212 : vector<64x128xbf16> to vector<1x1x1x64x128xbf16>
    tpu.vector_store %arg5[%c0_64, %c0_65, %c11, %c0_66, %c0_67], %215 {strides = array<i32>} : memref<1x1x12x64x128xbf16, #tpu.memory_space<vmem>>, vector<1x1x1x64x128xbf16>,
    return
  }
  func.func @transform_0(%arg0: i32, %arg1: i32) -> (i32, i32, i32, i32, i32) {
    %c0_i32 = arith.constant 0 : i32
    %c0_i32_0 = arith.constant 0 : i32
    %c0_i32_1 = arith.constant 0 : i32
    %c0_i32_2 = arith.constant 0 : i32
    return %arg0, %arg1, %c0_i32, %c0_i32_0, %c0_i32_1 : i32, i32, i32, i32, i32
  }
  func.func @transform_1(%arg0: i32, %arg1: i32) -> (i32, i32) {
    %c0_i32 = arith.constant 0 : i32
    %c0_i32_0 = arith.constant 0 : i32
    %c0_i32_1 = arith.constant 0 : i32
    return %c0_i32, %c0_i32_0 : i32, i32
  }
  func.func @transform_2(%arg0: i32, %arg1: i32) -> (i32, i32) {
    %c0_i32 = arith.constant 0 : i32
    %c0_i32_0 = arith.constant 0 : i32
    %c0_i32_1 = arith.constant 0 : i32
    return %c0_i32, %c0_i32_0 : i32, i32
  }
  func.func @transform_3(%arg0: i32, %arg1: i32) -> (i32, i32, i32, i32, i32) {
    %c0_i32 = arith.constant 0 : i32
    %c0_i32_0 = arith.constant 0 : i32
    %c0_i32_1 = arith.constant 0 : i32
    %c0_i32_2 = arith.constant 0 : i32
    return %arg0, %arg1, %c0_i32, %c0_i32_0, %c0_i32_1 : i32, i32, i32, i32, i32
  }
  func.func @transform_4(%arg0: i32, %arg1: i32) -> (i32, i32, i32, i32) {
    %c0_i32 = arith.constant 0 : i32
    %c0_i32_0 = arith.constant 0 : i32
    %c0_i32_1 = arith.constant 0 : i32
    return %arg0, %arg1, %c0_i32, %c0_i32_0 : i32, i32, i32, i32
  }
}

module attributes {stable_mosaic.version = 11 : i64} {
  func.func @_mind_loss_kernel(%arg0: i32, %arg1: i32, %arg2: memref<1x2x6x64x128xbf16, #tpu.memory_space<vmem>>, %arg3: memref<1x2x64x128xf32, #tpu.memory_space<vmem>>, %arg4: memref<1x1xf32, #tpu.memory_space<smem>>, %arg5: memref<1x1xf32, #tpu.memory_space<smem>>, %arg6: memref<1x1x8x128xf32, #tpu.memory_space<vmem>>) attributes {dimension_semantics = [#tpu.dimension_semantics<parallel>, #tpu.dimension_semantics<parallel>], iteration_bounds = array<i64: 2, 2>, scalar_prefetch = 0 : i64, scratch_operands = 0 : i64, tpu.core_type = #tpu.core_type<tc>, window_params = [{transform_indices = @transform_0, window_bounds = array<i64: 1, 2, 6, 64, 128>}, {transform_indices = @transform_1, window_bounds = array<i64: 1, 2, 64, 128>}, {transform_indices = @transform_2, window_bounds = array<i64: 1, 1>}, {transform_indices = @transform_3, window_bounds = array<i64: 1, 1>}, {transform_indices = @transform_4, window_bounds = array<i64: 1, 1, 8, 128>}]} {
    %c0 = arith.constant 0 : index
    %c0_0 = arith.constant 0 : index
    %c0_1 = arith.constant 0 : index
    %c0_2 = arith.constant 0 : index
    %0 = vector.load %arg3[%c0, %c0_0, %c0_1, %c0_2] : memref<1x2x64x128xf32, #tpu.memory_space<vmem>>, vector<1x1x64x128xf32>
    %1 = vector.shape_cast %0 : vector<1x1x64x128xf32> to vector<64x128xf32>
    %c0_3 = arith.constant 0 : index
    %c0_4 = arith.constant 0 : index
    %2 = memref.load %arg4[%c0_3, %c0_4] : memref<1x1xf32, #tpu.memory_space<smem>>
    %cst = arith.constant 1.000000e+03 : f32
    %3 = arith.mulf %2, %cst : f32
    %cst_5 = arith.constant 1.000000e-03 : f32
    %4 = arith.mulf %2, %cst_5 : f32
    %5 = vector.broadcast %3 : f32 to vector<64x128xf32>
    %6 = arith.cmpf ogt, %1, %5 : vector<64x128xf32>
    %7 = vector.broadcast %3 : f32 to vector<64x128xf32>
    %8 = arith.select %6, %7, %1 : vector<64x128xi1>, vector<64x128xf32>
    %9 = vector.broadcast %4 : f32 to vector<64x128xf32>
    %10 = arith.cmpf olt, %8, %9 : vector<64x128xf32>
    %11 = vector.broadcast %4 : f32 to vector<64x128xf32>
    %12 = arith.select %10, %11, %8 : vector<64x128xi1>, vector<64x128xf32>
    %cst_6 = arith.constant 1.000000e+00 : f32
    %13 = vector.broadcast %cst_6 : f32 to vector<64x128xf32>
    %14 = arith.divf %13, %12 : vector<64x128xf32>
    %c0_7 = arith.constant 0 : index
    %c1 = arith.constant 1 : index
    %c0_8 = arith.constant 0 : index
    %c0_9 = arith.constant 0 : index
    %15 = vector.load %arg3[%c0_7, %c1, %c0_8, %c0_9] : memref<1x2x64x128xf32, #tpu.memory_space<vmem>>, vector<1x1x64x128xf32>
    %16 = vector.shape_cast %15 : vector<1x1x64x128xf32> to vector<64x128xf32>
    %c0_10 = arith.constant 0 : index
    %c0_11 = arith.constant 0 : index
    %17 = memref.load %arg5[%c0_10, %c0_11] : memref<1x1xf32, #tpu.memory_space<smem>>
    %cst_12 = arith.constant 1.000000e+03 : f32
    %18 = arith.mulf %17, %cst_12 : f32
    %cst_13 = arith.constant 1.000000e-03 : f32
    %19 = arith.mulf %17, %cst_13 : f32
    %20 = vector.broadcast %18 : f32 to vector<64x128xf32>
    %21 = arith.cmpf ogt, %16, %20 : vector<64x128xf32>
    %22 = vector.broadcast %18 : f32 to vector<64x128xf32>
    %23 = arith.select %21, %22, %16 : vector<64x128xi1>, vector<64x128xf32>
    %24 = vector.broadcast %19 : f32 to vector<64x128xf32>
    %25 = arith.cmpf olt, %23, %24 : vector<64x128xf32>
    %26 = vector.broadcast %19 : f32 to vector<64x128xf32>
    %27 = arith.select %25, %26, %23 : vector<64x128xi1>, vector<64x128xf32>
    %cst_14 = arith.constant 1.000000e+00 : f32
    %28 = vector.broadcast %cst_14 : f32 to vector<64x128xf32>
    %29 = arith.divf %28, %27 : vector<64x128xf32>
    %c0_15 = arith.constant 0 : index
    %c0_16 = arith.constant 0 : index
    %c0_17 = arith.constant 0 : index
    %c0_18 = arith.constant 0 : index
    %c0_19 = arith.constant 0 : index
    %30 = vector.load %arg2[%c0_15, %c0_16, %c0_17, %c0_18, %c0_19] : memref<1x2x6x64x128xbf16, #tpu.memory_space<vmem>>, vector<1x1x1x64x128xbf16>
    %31 = vector.shape_cast %30 : vector<1x1x1x64x128xbf16> to vector<64x128xbf16>
    %32 = arith.extf %31 : vector<64x128xbf16> to vector<64x128xf32>
    %33 = arith.mulf %32, %14 : vector<64x128xf32>
    %cst_20 = arith.constant 0.000000e+00 : f32
    %34 = vector.broadcast %cst_20 : f32 to vector<64x128xf32>
    %35 = arith.subf %34, %33 : vector<64x128xf32>
    %36 = math.exp %35 : vector<64x128xf32>
    %c0_21 = arith.constant 0 : index
    %c1_22 = arith.constant 1 : index
    %c0_23 = arith.constant 0 : index
    %c0_24 = arith.constant 0 : index
    %c0_25 = arith.constant 0 : index
    %37 = vector.load %arg2[%c0_21, %c1_22, %c0_23, %c0_24, %c0_25] : memref<1x2x6x64x128xbf16, #tpu.memory_space<vmem>>, vector<1x1x1x64x128xbf16>
    %38 = vector.shape_cast %37 : vector<1x1x1x64x128xbf16> to vector<64x128xbf16>
    %39 = arith.extf %38 : vector<64x128xbf16> to vector<64x128xf32>
    %40 = arith.mulf %39, %29 : vector<64x128xf32>
    %cst_26 = arith.constant 0.000000e+00 : f32
    %41 = vector.broadcast %cst_26 : f32 to vector<64x128xf32>
    %42 = arith.subf %41, %40 : vector<64x128xf32>
    %43 = math.exp %42 : vector<64x128xf32>
    %44 = arith.subf %36, %43 : vector<64x128xf32>
    %45 = arith.mulf %44, %44 : vector<64x128xf32>
    %c0_27 = arith.constant 0 : index
    %c0_28 = arith.constant 0 : index
    %c1_29 = arith.constant 1 : index
    %c0_30 = arith.constant 0 : index
    %c0_31 = arith.constant 0 : index
    %46 = vector.load %arg2[%c0_27, %c0_28, %c1_29, %c0_30, %c0_31] : memref<1x2x6x64x128xbf16, #tpu.memory_space<vmem>>, vector<1x1x1x64x128xbf16>
    %47 = vector.shape_cast %46 : vector<1x1x1x64x128xbf16> to vector<64x128xbf16>
    %48 = arith.extf %47 : vector<64x128xbf16> to vector<64x128xf32>
    %49 = arith.mulf %48, %14 : vector<64x128xf32>
    %cst_32 = arith.constant 0.000000e+00 : f32
    %50 = vector.broadcast %cst_32 : f32 to vector<64x128xf32>
    %51 = arith.subf %50, %49 : vector<64x128xf32>
    %52 = math.exp %51 : vector<64x128xf32>
    %c0_33 = arith.constant 0 : index
    %c1_34 = arith.constant 1 : index
    %c1_35 = arith.constant 1 : index
    %c0_36 = arith.constant 0 : index
    %c0_37 = arith.constant 0 : index
    %53 = vector.load %arg2[%c0_33, %c1_34, %c1_35, %c0_36, %c0_37] : memref<1x2x6x64x128xbf16, #tpu.memory_space<vmem>>, vector<1x1x1x64x128xbf16>
    %54 = vector.shape_cast %53 : vector<1x1x1x64x128xbf16> to vector<64x128xbf16>
    %55 = arith.extf %54 : vector<64x128xbf16> to vector<64x128xf32>
    %56 = arith.mulf %55, %29 : vector<64x128xf32>
    %cst_38 = arith.constant 0.000000e+00 : f32
    %57 = vector.broadcast %cst_38 : f32 to vector<64x128xf32>
    %58 = arith.subf %57, %56 : vector<64x128xf32>
    %59 = math.exp %58 : vector<64x128xf32>
    %60 = arith.subf %52, %59 : vector<64x128xf32>
    %61 = arith.mulf %60, %60 : vector<64x128xf32>
    %62 = arith.addf %45, %61 : vector<64x128xf32>
    %c0_39 = arith.constant 0 : index
    %c0_40 = arith.constant 0 : index
    %c2 = arith.constant 2 : index
    %c0_41 = arith.constant 0 : index
    %c0_42 = arith.constant 0 : index
    %63 = vector.load %arg2[%c0_39, %c0_40, %c2, %c0_41, %c0_42] : memref<1x2x6x64x128xbf16, #tpu.memory_space<vmem>>, vector<1x1x1x64x128xbf16>
    %64 = vector.shape_cast %63 : vector<1x1x1x64x128xbf16> to vector<64x128xbf16>
    %65 = arith.extf %64 : vector<64x128xbf16> to vector<64x128xf32>
    %66 = arith.mulf %65, %14 : vector<64x128xf32>
    %cst_43 = arith.constant 0.000000e+00 : f32
    %67 = vector.broadcast %cst_43 : f32 to vector<64x128xf32>
    %68 = arith.subf %67, %66 : vector<64x128xf32>
    %69 = math.exp %68 : vector<64x128xf32>
    %c0_44 = arith.constant 0 : index
    %c1_45 = arith.constant 1 : index
    %c2_46 = arith.constant 2 : index
    %c0_47 = arith.constant 0 : index
    %c0_48 = arith.constant 0 : index
    %70 = vector.load %arg2[%c0_44, %c1_45, %c2_46, %c0_47, %c0_48] : memref<1x2x6x64x128xbf16, #tpu.memory_space<vmem>>, vector<1x1x1x64x128xbf16>
    %71 = vector.shape_cast %70 : vector<1x1x1x64x128xbf16> to vector<64x128xbf16>
    %72 = arith.extf %71 : vector<64x128xbf16> to vector<64x128xf32>
    %73 = arith.mulf %72, %29 : vector<64x128xf32>
    %cst_49 = arith.constant 0.000000e+00 : f32
    %74 = vector.broadcast %cst_49 : f32 to vector<64x128xf32>
    %75 = arith.subf %74, %73 : vector<64x128xf32>
    %76 = math.exp %75 : vector<64x128xf32>
    %77 = arith.subf %69, %76 : vector<64x128xf32>
    %78 = arith.mulf %77, %77 : vector<64x128xf32>
    %79 = arith.addf %62, %78 : vector<64x128xf32>
    %c0_50 = arith.constant 0 : index
    %c0_51 = arith.constant 0 : index
    %c3 = arith.constant 3 : index
    %c0_52 = arith.constant 0 : index
    %c0_53 = arith.constant 0 : index
    %80 = vector.load %arg2[%c0_50, %c0_51, %c3, %c0_52, %c0_53] : memref<1x2x6x64x128xbf16, #tpu.memory_space<vmem>>, vector<1x1x1x64x128xbf16>
    %81 = vector.shape_cast %80 : vector<1x1x1x64x128xbf16> to vector<64x128xbf16>
    %82 = arith.extf %81 : vector<64x128xbf16> to vector<64x128xf32>
    %83 = arith.mulf %82, %14 : vector<64x128xf32>
    %cst_54 = arith.constant 0.000000e+00 : f32
    %84 = vector.broadcast %cst_54 : f32 to vector<64x128xf32>
    %85 = arith.subf %84, %83 : vector<64x128xf32>
    %86 = math.exp %85 : vector<64x128xf32>
    %c0_55 = arith.constant 0 : index
    %c1_56 = arith.constant 1 : index
    %c3_57 = arith.constant 3 : index
    %c0_58 = arith.constant 0 : index
    %c0_59 = arith.constant 0 : index
    %87 = vector.load %arg2[%c0_55, %c1_56, %c3_57, %c0_58, %c0_59] : memref<1x2x6x64x128xbf16, #tpu.memory_space<vmem>>, vector<1x1x1x64x128xbf16>
    %88 = vector.shape_cast %87 : vector<1x1x1x64x128xbf16> to vector<64x128xbf16>
    %89 = arith.extf %88 : vector<64x128xbf16> to vector<64x128xf32>
    %90 = arith.mulf %89, %29 : vector<64x128xf32>
    %cst_60 = arith.constant 0.000000e+00 : f32
    %91 = vector.broadcast %cst_60 : f32 to vector<64x128xf32>
    %92 = arith.subf %91, %90 : vector<64x128xf32>
    %93 = math.exp %92 : vector<64x128xf32>
    %94 = arith.subf %86, %93 : vector<64x128xf32>
    %95 = arith.mulf %94, %94 : vector<64x128xf32>
    %96 = arith.addf %79, %95 : vector<64x128xf32>
    %c0_61 = arith.constant 0 : index
    %c0_62 = arith.constant 0 : index
    %c4 = arith.constant 4 : index
    %c0_63 = arith.constant 0 : index
    %c0_64 = arith.constant 0 : index
    %97 = vector.load %arg2[%c0_61, %c0_62, %c4, %c0_63, %c0_64] : memref<1x2x6x64x128xbf16, #tpu.memory_space<vmem>>, vector<1x1x1x64x128xbf16>
    %98 = vector.shape_cast %97 : vector<1x1x1x64x128xbf16> to vector<64x128xbf16>
    %99 = arith.extf %98 : vector<64x128xbf16> to vector<64x128xf32>
    %100 = arith.mulf %99, %14 : vector<64x128xf32>
    %cst_65 = arith.constant 0.000000e+00 : f32
    %101 = vector.broadcast %cst_65 : f32 to vector<64x128xf32>
    %102 = arith.subf %101, %100 : vector<64x128xf32>
    %103 = math.exp %102 : vector<64x128xf32>
    %c0_66 = arith.constant 0 : index
    %c1_67 = arith.constant 1 : index
    %c4_68 = arith.constant 4 : index
    %c0_69 = arith.constant 0 : index
    %c0_70 = arith.constant 0 : index
    %104 = vector.load %arg2[%c0_66, %c1_67, %c4_68, %c0_69, %c0_70] : memref<1x2x6x64x128xbf16, #tpu.memory_space<vmem>>, vector<1x1x1x64x128xbf16>
    %105 = vector.shape_cast %104 : vector<1x1x1x64x128xbf16> to vector<64x128xbf16>
    %106 = arith.extf %105 : vector<64x128xbf16> to vector<64x128xf32>
    %107 = arith.mulf %106, %29 : vector<64x128xf32>
    %cst_71 = arith.constant 0.000000e+00 : f32
    %108 = vector.broadcast %cst_71 : f32 to vector<64x128xf32>
    %109 = arith.subf %108, %107 : vector<64x128xf32>
    %110 = math.exp %109 : vector<64x128xf32>
    %111 = arith.subf %103, %110 : vector<64x128xf32>
    %112 = arith.mulf %111, %111 : vector<64x128xf32>
    %113 = arith.addf %96, %112 : vector<64x128xf32>
    %c0_72 = arith.constant 0 : index
    %c0_73 = arith.constant 0 : index
    %c5 = arith.constant 5 : index
    %c0_74 = arith.constant 0 : index
    %c0_75 = arith.constant 0 : index
    %114 = vector.load %arg2[%c0_72, %c0_73, %c5, %c0_74, %c0_75] : memref<1x2x6x64x128xbf16, #tpu.memory_space<vmem>>, vector<1x1x1x64x128xbf16>
    %115 = vector.shape_cast %114 : vector<1x1x1x64x128xbf16> to vector<64x128xbf16>
    %116 = arith.extf %115 : vector<64x128xbf16> to vector<64x128xf32>
    %117 = arith.mulf %116, %14 : vector<64x128xf32>
    %cst_76 = arith.constant 0.000000e+00 : f32
    %118 = vector.broadcast %cst_76 : f32 to vector<64x128xf32>
    %119 = arith.subf %118, %117 : vector<64x128xf32>
    %120 = math.exp %119 : vector<64x128xf32>
    %c0_77 = arith.constant 0 : index
    %c1_78 = arith.constant 1 : index
    %c5_79 = arith.constant 5 : index
    %c0_80 = arith.constant 0 : index
    %c0_81 = arith.constant 0 : index
    %121 = vector.load %arg2[%c0_77, %c1_78, %c5_79, %c0_80, %c0_81] : memref<1x2x6x64x128xbf16, #tpu.memory_space<vmem>>, vector<1x1x1x64x128xbf16>
    %122 = vector.shape_cast %121 : vector<1x1x1x64x128xbf16> to vector<64x128xbf16>
    %123 = arith.extf %122 : vector<64x128xbf16> to vector<64x128xf32>
    %124 = arith.mulf %123, %29 : vector<64x128xf32>
    %cst_82 = arith.constant 0.000000e+00 : f32
    %125 = vector.broadcast %cst_82 : f32 to vector<64x128xf32>
    %126 = arith.subf %125, %124 : vector<64x128xf32>
    %127 = math.exp %126 : vector<64x128xf32>
    %128 = arith.subf %120, %127 : vector<64x128xf32>
    %129 = arith.mulf %128, %128 : vector<64x128xf32>
    %130 = arith.addf %113, %129 : vector<64x128xf32>
    %cst_83 = arith.constant 0.000000e+00 : f32
    %131 = vector.broadcast %cst_83 : f32 to vector<8x128xf32>
    %132 = vector.shape_cast %130 : vector<64x128xf32> to vector<1x64x128xf32>
    %cst_84 = arith.constant dense<0.000000e+00> : vector<1xf32>
    %133 = vector.multi_reduction <add>, %132, %cst_84 [1, 2] : vector<1x64x128xf32> to vector<1xf32>
    %134 = vector.shape_cast %133 : vector<1xf32> to vector<1x1x1xf32>
    %135 = vector.extract %134[0, 0, 0] : f32 from vector<1x1x1xf32>
    %136 = vector.broadcast %135 : f32 to vector<8x128xf32>
    %137 = arith.addf %131, %136 : vector<8x128xf32>
    %c0_85 = arith.constant 0 : index
    %c0_86 = arith.constant 0 : index
    %c0_87 = arith.constant 0 : index
    %c0_88 = arith.constant 0 : index
    %138 = vector.load %arg6[%c0_85, %c0_86, %c0_87, %c0_88] : memref<1x1x8x128xf32, #tpu.memory_space<vmem>>, vector<1x1x8x128xf32>
    %139 = vector.shape_cast %138 : vector<1x1x8x128xf32> to vector<8x128xf32>
    %140 = vector.shape_cast %137 : vector<8x128xf32> to vector<1x1x8x128xf32>
    tpu.vector_store %arg6[%c0_85, %c0_86, %c0_87, %c0_88], %140 {strides = array<i32>} : memref<1x1x8x128xf32, #tpu.memory_space<vmem>>, vector<1x1x8x128xf32>,
    return
  }
  func.func @transform_0(%arg0: i32, %arg1: i32) -> (i32, i32, i32, i32, i32) {
    %c0_i32 = arith.constant 0 : i32
    %c0_i32_0 = arith.constant 0 : i32
    %c0_i32_1 = arith.constant 0 : i32
    %c0_i32_2 = arith.constant 0 : i32
    return %arg0, %c0_i32, %arg1, %c0_i32_0, %c0_i32_1 : i32, i32, i32, i32, i32
  }
  func.func @transform_1(%arg0: i32, %arg1: i32) -> (i32, i32, i32, i32) {
    %c0_i32 = arith.constant 0 : i32
    %c0_i32_0 = arith.constant 0 : i32
    %c0_i32_1 = arith.constant 0 : i32
    %c0_i32_2 = arith.constant 0 : i32
    return %arg0, %c0_i32, %c0_i32_0, %c0_i32_1 : i32, i32, i32, i32
  }
  func.func @transform_2(%arg0: i32, %arg1: i32) -> (i32, i32) {
    %c0_i32 = arith.constant 0 : i32
    %c0_i32_0 = arith.constant 0 : i32
    %c0_i32_1 = arith.constant 0 : i32
    return %c0_i32, %c0_i32_0 : i32, i32
  }
  func.func @transform_3(%arg0: i32, %arg1: i32) -> (i32, i32) {
    %c0_i32 = arith.constant 0 : i32
    %c0_i32_0 = arith.constant 0 : i32
    %c0_i32_1 = arith.constant 0 : i32
    return %c0_i32, %c0_i32_0 : i32, i32
  }
  func.func @transform_4(%arg0: i32, %arg1: i32) -> (i32, i32, i32, i32) {
    %c0_i32 = arith.constant 0 : i32
    %c0_i32_0 = arith.constant 0 : i32
    %c0_i32_1 = arith.constant 0 : i32
    return %arg0, %arg1, %c0_i32, %c0_i32_0 : i32, i32, i32, i32
  }
}

</mosaic_0001>

<bundles_post_ra>
// kernel: mindscc_loss.3
= control target key start
LH: loop header
LB: loop body
LE: loop exit
PB: predicated region body
PF: predicated region fallthrough
CT: control target
= control target key end

     0   :  { %s3076_s0 = inlined_call_operand.vmem [shape: bf16[2,2,12,64,128], index: 0, kind: input, shape index: {}]   ;;  %s3077_s1 = inlined_call_operand.vmem [shape: f32[2,2,64,128], index: 1, kind: input, shape index: {}]   ;;  %s3078_s2 = inlined_call_operand.<no memory space> [shape: f32[1,1], index: 2, kind: input, shape index: {}]   ;;  %s3079_s3 = inlined_call_operand.<no memory space> [shape: f32[1,1], index: 3, kind: input, shape index: {}]   ;;  %s3080_s4 = inlined_call_operand.vmem [shape: f32[2,2,8,128], index: 4, kind: output, shape index: {}]  }
   0x1   :  { %9 = sst [smem:[#allocation2]] %s3078_s2 }
   0x2   :  { %10 = sst [smem:[#allocation3]] %s3079_s3 }
   0x3   :  { %s2358_s19 = smov 0   ;;  %s2360_s20 = smov 0  }
   0x4   :  { %s2362_s21 = smov 0   ;;  %s2364_s22 = smov 0  }
   0x5   :  { %s2366_s23 = smov 0   ;;  %s2368_s24 = smov 0  }
   0x6   :  { %s2370_s25 = smov 0  }
   0x7 LB: > { %s25_s2 = sadd.s32 1, %s2317_s23  ;;  %s28_s3 = sadd.s32 1, %s2321_s24  ;;  %s2325_s25 = sphi %s2370_s25, %s16_s25   ;;  %s2321_s24 = sphi %s2368_s24, %s3110_s24   ;;  %s2317_s23 = sphi %s2366_s23, %s3109_s23   ;;  %s2313_s22 = sphi %s2364_s22, %s3108_s22   ;;  %s2309_s21 = sphi %s2362_s21, %s3107_s21   ;;  %s2305_s20 = sphi %s2360_s20, %s3106_s20   ;;  %s2301_s19 = sphi %s2358_s19, %s3105_s19  }
   0x8   : > { %p26_p0 = scmp.ge.s32.totalorder %s25_s2, 2  ;;  %p44_p1 = scmp.ne.s32.totalorder %s2305_s20, %s2301_s19 }
   0x9   : > { %p45_p2 = scmp.eq.s32.totalorder %s2325_s25, 0  ;;  %s37_s29 = sadd.s32 1, %s2305_s20 }
   0xa   : > { %s3112_s2 = smov (%p26_p0, %s25_s2), 0  ;;  %s3114_s3 = smov (!%p26_p0, %s28_s3), %s2321_s24 }
   0xb   : > { %p46_p3 = por %p45_p2, %p44_p1  ;;  %p30_p4 = scmp.ge.s32.totalorder %s3114_s3, 2 }
   0xc   : > { %s33_s26 = ssub.s32 %s2317_s23, %s3112_s2  ;;  %p1639_p6 = scmp.ge.s32.totalorder %s2325_s25, 4 }
   0xd   : > { %s3116_s3 = smov (%p30_p4, %s3114_s3), 0 }
   0xe   : > { %s32_s27 = ssub.s32 %s2321_s24, %s3116_s3  ;;  %172 = sbr.rel (%p1639_p6) target bundleno = 52 (0x34), region = 24 }
   0xf   : > { %s34_s28 = sor.u32 %s33_s26, %s32_s27 }
  0x10   : > { %p35_p5 = scmp.eq.s32.totalorder %s34_s28, 0 }
  0x12   : > { %s2409_s30 = scalar_select %p35_p5, %s2305_s20, %s37_s29  }
  0x13   : > { %175 = sbr.rel (!%p46_p3) target bundleno = 52 (0x34), region = 28  ;;  %s177_s5 = sand.u32 (%p46_p3), 1, %s2305_s20  }
  0x14   : > { %s1745_s6 = smul.u32 (%p46_p3), 48, %s2317_s23 }
  0x15   : > { %s1986_s7 = smul.u32 (%p46_p3), 384, %s177_s5 }
  0x16   : > { %s1987_s8 = smul.u32 (%p46_p3), 192, %s2321_s24 }
  0x17   : > { %s2423_s14 = scalar_lea.vmem (%p46_p3), [#allocation4], %s1986_s7 }
  0x18   : > { %s183_s9 = sadd.s32 %s1987_s8, %s1745_s6 }
  0x19   : > { %s1641_s10 = sshll.u32 %s183_s9, 2 }
  0x1a   : > { %s2418_s13 = scalar_lea.vmem %s3076_s0, %s1641_s10 }
  0x1b   : > { %v202_v0 = vld [vmem:[%s2418_s13] sm:$0xff]   ;;  %v206_v1 = vld [vmem:[%s2418_s13 + $0x8] sm:$0xff]   ;;  %v210_v2 = vld [vmem:[%s2418_s13 + $0x10] sm:$0xff]  }
  0x1c   : > { %203 = vst [vmem:[%s2423_s14] sm:$0xff] %v202_v0   ;;  %207 = vst [vmem:[%s2423_s14 + $0x8] sm:$0xff] %v206_v1   ;;  %v214_v3 = vld [vmem:[%s2418_s13 + $0x18] sm:$0xff]   ;;  %v218_v4 = vld [vmem:[%s2418_s13 + $0x20] sm:$0xff]  }
  0x1d   : > { %211 = vst [vmem:[%s2423_s14 + $0x10] sm:$0xff] %v210_v2   ;;  %v222_v5 = vld [vmem:[%s2418_s13 + $0x28] sm:$0xff]   ;;  %215 = vst [vmem:[%s2423_s14 + $0x18] sm:$0xff] %v214_v3   ;;  %v226_v6 = vld [vmem:[%s2418_s13 + $0x30] sm:$0xff]  }
  0x1e   : > { %219 = vst [vmem:[%s2423_s14 + $0x20] sm:$0xff] %v218_v4   ;;  %223 = vst [vmem:[%s2423_s14 + $0x28] sm:$0xff] %v222_v5   ;;  %v230_v7 = vld [vmem:[%s2418_s13 + $0x38] sm:$0xff]   ;;  %v234_v8 = vld [vmem:[%s2418_s13 + $0x40] sm:$0xff]  }
  0x1f   : > { %227 = vst [vmem:[%s2423_s14 + $0x30] sm:$0xff] %v226_v6   ;;  %231 = vst [vmem:[%s2423_s14 + $0x38] sm:$0xff] %v230_v7   ;;  %v238_v9 = vld [vmem:[%s2418_s13 + $0x48] sm:$0xff]   ;;  %v242_v10 = vld [vmem:[%s2418_s13 + $0x50] sm:$0xff]  }
  0x20   : > { %235 = vst [vmem:[%s2423_s14 + $0x40] sm:$0xff] %v234_v8   ;;  %v246_v11 = vld [vmem:[%s2418_s13 + $0x58] sm:$0xff]   ;;  %239 = vst [vmem:[%s2423_s14 + $0x48] sm:$0xff] %v238_v9   ;;  %v250_v12 = vld [vmem:[%s2418_s13 + $0x60] sm:$0xff]  }
  0x21   : > { %243 = vst [vmem:[%s2423_s14 + $0x50] sm:$0xff] %v242_v10   ;;  %247 = vst [vmem:[%s2423_s14 + $0x58] sm:$0xff] %v246_v11   ;;  %v254_v13 = vld [vmem:[%s2418_s13 + $0x68] sm:$0xff]   ;;  %v258_v14 = vld [vmem:[%s2418_s13 + $0x70] sm:$0xff]  }
  0x22   : > { %251 = vst [vmem:[%s2423_s14 + $0x60] sm:$0xff] %v250_v12   ;;  %255 = vst [vmem:[%s2423_s14 + $0x68] sm:$0xff] %v254_v13   ;;  %v262_v15 = vld [vmem:[%s2418_s13 + $0x78] sm:$0xff]   ;;  %v266_v16 = vld [vmem:[%s2418_s13 + $0x80] sm:$0xff]  }
  0x23   : > { %259 = vst [vmem:[%s2423_s14 + $0x70] sm:$0xff] %v258_v14   ;;  %v270_v17 = vld [vmem:[%s2418_s13 + $0x88] sm:$0xff]   ;;  %263 = vst [vmem:[%s2423_s14 + $0x78] sm:$0xff] %v262_v15   ;;  %v274_v18 = vld [vmem:[%s2418_s13 + $0x90] sm:$0xff]  }
  0x24   : > { %267 = vst [vmem:[%s2423_s14 + $0x80] sm:$0xff] %v266_v16   ;;  %271 = vst [vmem:[%s2423_s14 + $0x88] sm:$0xff] %v270_v17   ;;  %v278_v19 = vld [vmem:[%s2418_s13 + $0x98] sm:$0xff]   ;;  %v282_v20 = vld [vmem:[%s2418_s13 + $0xa0] sm:$0xff]  }
  0x25   : > { %275 = vst [vmem:[%s2423_s14 + $0x90] sm:$0xff] %v274_v18   ;;  %279 = vst [vmem:[%s2423_s14 + $0x98] sm:$0xff] %v278_v19   ;;  %v286_v21 = vld [vmem:[%s2418_s13 + $0xa8] sm:$0xff]   ;;  %v290_v22 = vld [vmem:[%s2418_s13 + $0xb0] sm:$0xff]  }
  0x26   : > { %283 = vst [vmem:[%s2423_s14 + $0xa0] sm:$0xff] %v282_v20   ;;  %v294_v23 = vld [vmem:[%s2418_s13 + $0xb8] sm:$0xff]   ;;  %287 = vst [vmem:[%s2423_s14 + $0xa8] sm:$0xff] %v286_v21   ;;  %v298_v24 = vld [vmem:[%s2418_s13 + $0x180] sm:$0xff]  }
  0x27   : > { %291 = vst [vmem:[%s2423_s14 + $0xb0] sm:$0xff] %v290_v22   ;;  %295 = vst [vmem:[%s2423_s14 + $0xb8] sm:$0xff] %v294_v23   ;;  %v302_v25 = vld [vmem:[%s2418_s13 + $0x188] sm:$0xff]   ;;  %v306_v26 = vld [vmem:[%s2418_s13 + $0x190] sm:$0xff]  }
  0x28   : > { %299 = vst [vmem:[%s2423_s14 + $0xc0] sm:$0xff] %v298_v24   ;;  %303 = vst [vmem:[%s2423_s14 + $0xc8] sm:$0xff] %v302_v25   ;;  %v310_v27 = vld [vmem:[%s2418_s13 + $0x198] sm:$0xff]   ;;  %v314_v28 = vld [vmem:[%s2418_s13 + $0x1a0] sm:$0xff]  }
  0x29   : > { %307 = vst [vmem:[%s2423_s14 + $0xd0] sm:$0xff] %v306_v26   ;;  %v318_v29 = vld [vmem:[%s2418_s13 + $0x1a8] sm:$0xff]   ;;  %311 = vst [vmem:[%s2423_s14 + $0xd8] sm:$0xff] %v310_v27   ;;  %v322_v30 = vld [vmem:[%s2418_s13 + $0x1b0] sm:$0xff]  }
  0x2a   : > { %315 = vst [vmem:[%s2423_s14 + $0xe0] sm:$0xff] %v314_v28   ;;  %319 = vst [vmem:[%s2423_s14 + $0xe8] sm:$0xff] %v318_v29   ;;  %v326_v31 = vld [vmem:[%s2418_s13 + $0x1b8] sm:$0xff]   ;;  %v330_v32 = vld [vmem:[%s2418_s13 + $0x1c0] sm:$0xff]  }
  0x2b   : > { %323 = vst [vmem:[%s2423_s14 + $0xf0] sm:$0xff] %v322_v30   ;;  %327 = vst [vmem:[%s2423_s14 + $0xf8] sm:$0xff] %v326_v31   ;;  %v334_v33 = vld [vmem:[%s2418_s13 + $0x1c8] sm:$0xff]   ;;  %v338_v34 = vld [vmem:[%s2418_s13 + $0x1d0] sm:$0xff]  }
  0x2c   : > { %331 = vst [vmem:[%s2423_s14 + $0x100] sm:$0xff] %v330_v32   ;;  %v342_v35 = vld [vmem:[%s2418_s13 + $0x1d8] sm:$0xff]   ;;  %335 = vst [vmem:[%s2423_s14 + $0x108] sm:$0xff] %v334_v33   ;;  %v346_v36 = vld [vmem:[%s2418_s13 + $0x1e0] sm:$0xff]  }
  0x2d   : > { %339 = vst [vmem:[%s2423_s14 + $0x110] sm:$0xff] %v338_v34   ;;  %343 = vst [vmem:[%s2423_s14 + $0x118] sm:$0xff] %v342_v35   ;;  %v350_v37 = vld [vmem:[%s2418_s13 + $0x1e8] sm:$0xff]   ;;  %v354_v38 = vld [vmem:[%s2418_s13 + $0x1f0] sm:$0xff]  }
  0x2e   : > { %347 = vst [vmem:[%s2423_s14 + $0x120] sm:$0xff] %v346_v36   ;;  %351 = vst [vmem:[%s2423_s14 + $0x128] sm:$0xff] %v350_v37   ;;  %v358_v39 = vld [vmem:[%s2418_s13 + $0x1f8] sm:$0xff]   ;;  %v362_v40 = vld [vmem:[%s2418_s13 + $0x200] sm:$0xff]  }
  0x2f   : > { %355 = vst [vmem:[%s2423_s14 + $0x130] sm:$0xff] %v354_v38   ;;  %v366_v41 = vld [vmem:[%s2418_s13 + $0x208] sm:$0xff]   ;;  %359 = vst [vmem:[%s2423_s14 + $0x138] sm:$0xff] %v358_v39   ;;  %v370_v42 = vld [vmem:[%s2418_s13 + $0x210] sm:$0xff]  }
  0x30   : > { %363 = vst [vmem:[%s2423_s14 + $0x140] sm:$0xff] %v362_v40   ;;  %367 = vst [vmem:[%s2423_s14 + $0x148] sm:$0xff] %v366_v41   ;;  %v374_v43 = vld [vmem:[%s2418_s13 + $0x218] sm:$0xff]   ;;  %v378_v44 = vld [vmem:[%s2418_s13 + $0x220] sm:$0xff]  }
  0x31   : > { %371 = vst [vmem:[%s2423_s14 + $0x150] sm:$0xff] %v370_v42   ;;  %375 = vst [vmem:[%s2423_s14 + $0x158] sm:$0xff] %v374_v43   ;;  %v382_v45 = vld [vmem:[%s2418_s13 + $0x228] sm:$0xff]   ;;  %v386_v46 = vld [vmem:[%s2418_s13 + $0x230] sm:$0xff]  }
  0x32   : > { %379 = vst [vmem:[%s2423_s14 + $0x160] sm:$0xff] %v378_v44   ;;  %v390_v47 = vld [vmem:[%s2418_s13 + $0x238] sm:$0xff]   ;;  %383 = vst [vmem:[%s2423_s14 + $0x168] sm:$0xff] %v382_v45  }
  0x33   : > { %387 = vst [vmem:[%s2423_s14 + $0x170] sm:$0xff] %v386_v46   ;;  %391 = vst [vmem:[%s2423_s14 + $0x178] sm:$0xff] %v390_v47  }
  0x34 PF: > { %p1642_p7 = scmp.ge.s32.totalorder %s2325_s25, 1  ;;  %p616_p8 = scmp.lt.s32.totalorder %s2325_s25, 5 }
  0x36   : > { %p617_p9 = pnand %p1642_p7, %p616_p8 }
  0x38   : > { %620 = sbr.rel (%p617_p9) target bundleno = 458 (0x1ca), region = 73 }
  0x3d   : > { %p657_p10 = scmp.lt.s32.totalorder %s2313_s22, 1  ;;  %s678_s15 = sld [smem:[#allocation2]] }
  0x3e   : > { %s2525_s18 = sld [smem:[#allocation3]]  ;;  %s623_s7 = sand.u32 1, %s2301_s19  }
  0x3f   : > { %s3118_s22 = smov (!%p657_p10, %s2313_s22), 1  ;;  %s1988_s19 = smul.u32 384, %s623_s7 }
  0x40   : > { %s1746_s16 = sshll.u32 %s3118_s22, 7  ;;  %p664_p11 = scmp.lt.s32.totalorder %s2309_s21, 1 }
  0x41   : > { %s2530_s28 = scalar_lea.vmem %s3077_s1, %s1746_s16  ;;  %s2573_s8 = scalar_lea.vmem [#allocation4], %s1988_s19 }
  0x42   : > { %v670_v48 = vld [vmem:[%s2530_s28] sm:$0xff]  ;;  %v671_v50 = vld [vmem:[%s2530_s28 + $0x8] sm:$0xff]  ;;  %v672_v51 = vld [vmem:[%s2530_s28 + $0x10] sm:$0xff]  ;;  %s3120_s21 = smov (!%p664_p11, %s2309_s21), 1  ;;  %s1645_s9 = sshll.u32 %s3118_s22, 1 }
  0x43   : > { %s679_s17 = smul.f32 1000.0, %s678_s15  ;;  %v673_v52 = vld [vmem:[%s2530_s28 + $0x18] sm:$0xff]  ;;  %v674_v53 = vld [vmem:[%s2530_s28 + $0x20] sm:$0xff]  ;;  %v675_v54 = vld [vmem:[%s2530_s28 + $0x28] sm:$0xff]  ;;  %s667_s10 = sadd.s32 %s1645_s9, %s3120_s21 }
  0x44   : > { %s680_s29 = smul.f32 0.001, %s678_s15  ;;  %v676_v55 = vld [vmem:[%s2530_s28 + $0x30] sm:$0xff]  ;;  %v677_v56 = vld [vmem:[%s2530_s28 + $0x38] sm:$0xff]  ;;  %v1647_v63 = vld [vmem:[%s2530_s28 + $0x40] sm:$0xff]  ;;  %s1646_s11 = sshll.u32 %s667_s10, 3 }
  0x45   : > { %v681_v49 = vstv %s679_s17  ;;  %s741_s5 = smul.f32 1000.0, %s2525_s18  ;;  %v1648_v3 = vld [vmem:[%s2530_s28 + $0x48] sm:$0xff]  ;;  %v1649_v5 = vld [vmem:[%s2530_s28 + $0x50] sm:$0xff]  ;;  %v1650_v6 = vld [vmem:[%s2530_s28 + $0x58] sm:$0xff]  ;;  %s669_s14 = scalar_lea.vmem %s3080_s4, %s1646_s11 }
  0x46   : > { %vm682_vm0 = vcmp.gt.f32.partialorder %v670_v48, %v681_v49  ;;  %vm683_vm1 = vcmp.gt.f32.partialorder %v671_v50, %v681_v49  ;;  %vm684_vm2 = vcmp.gt.f32.partialorder %v672_v51, %v681_v49  ;;  %vm685_vm3 = vcmp.gt.f32.partialorder %v673_v52, %v681_v49  ;;  %s742_s6 = smul.f32 0.001, %s2525_s18  ;;  %v1651_v9 = vld [vmem:[%s2530_s28 + $0x60] sm:$0xff]  ;;  %v1652_v12 = vld [vmem:[%s2530_s28 + $0x68] sm:$0xff]  ;;  %v1653_v15 = vld [vmem:[%s2530_s28 + $0x70] sm:$0xff] }
  0x47   : > { %vm686_vm4 = vcmp.gt.f32.partialorder %v674_v53, %v681_v49  ;;  %vm687_vm5 = vcmp.gt.f32.partialorder %v675_v54, %v681_v49  ;;  %vm688_vm6 = vcmp.gt.f32.partialorder %v676_v55, %v681_v49  ;;  %v690_v57 = vsel %vm682_vm0, %v681_v49, %v670_v48  ;;  %v1654_v18 = vld [vmem:[%s2530_s28 + $0x78] sm:$0xff]  ;;  %v1748_v33 = vld [vmem:[%s2573_s8] sm:$0xff]   ;;  %v1939_v36 = vld [vmem:[%s2573_s8 + $0x8] sm:$0xff]  }
  0x48   : > { %v698_v58 = vstv %s680_s29  ;;  %vm689_vm7 = vcmp.gt.f32.partialorder %v677_v56, %v681_v49  ;;  %v691_v59 = vsel %vm683_vm1, %v681_v49, %v671_v50  ;;  %v692_v60 = vsel %vm684_vm2, %v681_v49, %v672_v51  ;;  %v1940_v39 = vld [vmem:[%s2573_s8 + $0x10] sm:$0xff]   ;;  %v1941_v40 = vld [vmem:[%s2573_s8 + $0x18] sm:$0xff]   ;;  %v2585_v43 = vld [vmem:[%s2573_s8 + $0xc0] sm:$0xff]  }
  0x49   : > { %v693_v61 = vsel %vm685_vm3, %v681_v49, %v673_v52  ;;  %v694_v62 = vsel %vm686_vm4, %v681_v49, %v674_v53  ;;  %v743_v0 = vstv %s741_s5  ;;  %v695_v1 = vsel %vm687_vm5, %v681_v49, %v675_v54  ;;  %v2590_v47 = vld [vmem:[%s2573_s8 + $0xc8] sm:$0xff]   ;;  %v2593_v48 = vld [vmem:[%s2573_s8 + $0xd0] sm:$0xff]   ;;  %v2598_v53 = vld [vmem:[%s2573_s8 + $0xd8] sm:$0xff]  }
  0x4a   : > { %v696_v2 = vsel %vm688_vm6, %v681_v49, %v676_v55  ;;  %vm699_vm8 = vcmp.lt.f32.partialorder %v690_v57, %v698_v58  ;;  %v697_v4 = vsel %vm689_vm7, %v681_v49, %v677_v56  ;;  %vm700_vm9 = vcmp.lt.f32.partialorder %v691_v59, %v698_v58 }
  0x4b   : > { %vm701_vm10 = vcmp.lt.f32.partialorder %v692_v60, %v698_v58  ;;  %vm702_vm11 = vcmp.lt.f32.partialorder %v693_v61, %v698_v58  ;;  %vm703_vm12 = vcmp.lt.f32.partialorder %v694_v62, %v698_v58  ;;  %vm744_vm13 = vcmp.gt.f32.partialorder %v1647_v63, %v743_v0 }
  0x4c   : > { %v2546_v7 = vstv %s742_s6  ;;  %vm704_vm14 = vcmp.lt.f32.partialorder %v695_v1, %v698_v58  ;;  %vm705_vm15 = vcmp.lt.f32.partialorder %v696_v2, %v698_v58  ;;  %v707_v8 = vsel %vm699_vm8, %v698_v58, %v690_v57 }
  0x4d   : > { %vm745_vm0 = vcmp.gt.f32.partialorder %v1648_v3, %v743_v0  ;;  %vm706_vm1 = vcmp.lt.f32.partialorder %v697_v4, %v698_v58  ;;  %v708_v10 = vsel %vm700_vm9, %v698_v58, %v691_v59  ;;  %v709_v11 = vsel %vm701_vm10, %v698_v58, %v692_v60  ;;  %v1946_v59 = vld [vmem:[%s2573_s8 + $0x20] sm:$0xff]   ;;  %v1947_v60 = vld [vmem:[%s2573_s8 + $0x28] sm:$0xff]  }
  0x4e   : > { %vm746_vm2 = vcmp.gt.f32.partialorder %v1649_v5, %v743_v0  ;;  %v710_v13 = vsel %vm702_vm11, %v698_v58, %v693_v61  ;;  %v711_v14 = vsel %vm703_vm12, %v698_v58, %v694_v62  ;;  %vm747_vm3 = vcmp.gt.f32.partialorder %v1650_v6, %v743_v0 }
  0x4f   : > { %v752_v16 = vsel %vm744_vm13, %v743_v0, %v1647_v63  ;;  %v712_v17 = vsel %vm704_vm14, %v698_v58, %v695_v1  ;;  %2047 = vrcp.f32 %v707_v8  ;;  %vm748_vm4 = vcmp.gt.f32.partialorder %v1651_v9, %v743_v0  ;;  %v2623_v8 = vld [vmem:[%s2573_s8 + $0x38] sm:$0xff]  }
  0x50   : > { %v753_v19 = vsel %vm745_vm0, %v743_v0, %v1648_v3  ;;  %v713_v20 = vsel %vm705_vm15, %v698_v58, %v696_v2  ;;  %2049 = vrcp.f32 %v708_v10  ;;  %vm749_vm5 = vcmp.gt.f32.partialorder %v1652_v12, %v743_v0  ;;  %v2614_v2 = vld [vmem:[%s2573_s8 + $0x30] sm:$0xff]  }
  0x51   : > { %v754_v21 = vsel %vm746_vm2, %v743_v0, %v1649_v5  ;;  %2051 = vrcp.f32 %v709_v11  ;;  %vm750_vm6 = vcmp.gt.f32.partialorder %v1653_v15, %v743_v0  ;;  %v755_v22 = vsel %vm747_vm3, %v743_v0, %v1650_v6 }
  0x52   : > { %vm761_vm7 = vcmp.lt.f32.partialorder %v752_v16, %v2546_v7  ;;  %2053 = vrcp.f32 %v710_v13  ;;  %vm751_vm8 = vcmp.gt.f32.partialorder %v1654_v18, %v743_v0  ;;  %v756_v23 = vsel %vm748_vm4, %v743_v0, %v1651_v9 }
  0x53   : > { %vm762_vm9 = vcmp.lt.f32.partialorder %v753_v19, %v2546_v7  ;;  %v714_v24 = vsel %vm706_vm1, %v698_v58, %v697_v4  ;;  %2055 = vrcp.f32 %v711_v14  ;;  %v757_v25 = vsel %vm749_vm5, %v743_v0, %v1652_v12  ;;  %v2629_v14 = vld [vmem:[%s2573_s8 + $0xe0] sm:$0xff]  }
  0x54   : > { %vm763_vm10 = vcmp.lt.f32.partialorder %v754_v21, %v2546_v7  ;;  %2057 = vrcp.f32 %v712_v17  ;;  %v758_v26 = vsel %vm750_vm6, %v743_v0, %v1653_v15  ;;  %vm764_vm11 = vcmp.lt.f32.partialorder %v755_v22, %v2546_v7 }
  0x55   : > { %v769_v27 = vsel %vm761_vm7, %v2546_v7, %v752_v16  ;;  %2059 = vrcp.f32 %v713_v20  ;;  %v759_v28 = vsel %vm751_vm8, %v743_v0, %v1654_v18  ;;  %vm765_vm12 = vcmp.lt.f32.partialorder %v756_v23, %v2546_v7 }
  0x56   : > { %v770_v29 = vsel %vm762_vm9, %v2546_v7, %v753_v19  ;;  %2061 = vrcp.f32 %v714_v24  ;;  %vm766_vm13 = vcmp.lt.f32.partialorder %v757_v25, %v2546_v7  ;;  %v771_v30 = vsel %vm763_vm10, %v2546_v7, %v754_v21 }
  0x57   : > { %vm767_vm14 = vcmp.lt.f32.partialorder %v758_v26, %v2546_v7  ;;  %v772_v31 = vsel %vm764_vm11, %v2546_v7, %v755_v22  ;;  %2063 = vrcp.f32 %v769_v27  ;;  %vm768_vm15 = vcmp.lt.f32.partialorder %v759_v28, %v2546_v7 }
  0x58   : > { %v773_v32 = vsel %vm765_vm12, %v2546_v7, %v756_v23  ;;  %2065 = vrcp.f32 %v770_v29  ;;  %v774_v34 = vsel %vm766_vm13, %v2546_v7, %v757_v25  ;;  %v775_v35 = vsel %vm767_vm14, %v2546_v7, %v758_v26 }
  0x59   : > { %2067 = vrcp.f32 %v771_v30  ;;  %v776_v37 = vsel %vm768_vm15, %v2546_v7, %v759_v28  ;;  %v1749_v38 = vunpack.c.l.bf16 %v1748_v33  ;;  %v1750_v42 = vunpack.c.h.bf16 %v1748_v33  ;;  %v2646_v30 = vld [vmem:[%s2573_s8 + $0xe8] sm:$0xff]  }
  0x5a   : > { %2069 = vrcp.f32 %v772_v31  ;;  %v1753_v45 = vunpack.c.l.bf16 %v1939_v36  ;;  %v1754_v46 = vunpack.c.h.bf16 %v1939_v36  ;;  %v1757_v50 = vunpack.c.l.bf16 %v1940_v39 }
  0x5b   : > { %2071 = vrcp.f32 %v773_v32  ;;  %v1758_v51 = vunpack.c.h.bf16 %v1940_v39  ;;  %v1761_v52 = vunpack.c.l.bf16 %v1941_v40  ;;  %v1762_v55 = vunpack.c.h.bf16 %v1941_v40 }
  0x5c   : > { %v2582_v41 = vpop.eup %2047  ;;  %2073 = vrcp.f32 %v774_v34  ;;  %v1765_v57 = vunpack.c.l.bf16 %v2585_v43  ;;  %v1766_v58 = vunpack.c.h.bf16 %v2585_v43  ;;  %v1769_v63 = vunpack.c.l.bf16 %v2590_v47 }
  0x5d   : > { %v2587_v44 = vpop.eup %2049  ;;  %2075 = vrcp.f32 %v775_v35  ;;  %v809_v56 = vmul.f32 %v2582_v41, %v1749_v38  ;;  %v1770_v0 = vunpack.c.h.bf16 %v2590_v47  ;;  %v1773_v1 = vunpack.c.l.bf16 %v2593_v48 }
  0x5e   : > { %v2595_v49 = vpop.eup %2051  ;;  %2077 = vrcp.f32 %v776_v37  ;;  %v810_v62 = vmul.f32 %v2587_v44, %v1750_v42  ;;  %v1774_v5 = vunpack.c.h.bf16 %v2593_v48  ;;  %v1777_v6 = vunpack.c.l.bf16 %v2598_v53 }
  0x5f   : > { %v2600_v54 = vpop.eup %2053  ;;  %v811_v4 = vmul.f32 %v2595_v49, %v1753_v45  ;;  %v1778_v7 = vunpack.c.h.bf16 %v2598_v53  ;;  %v1781_v11 = vunpack.c.l.bf16 %v1946_v59  ;;  %v1782_v12 = vunpack.c.h.bf16 %v1946_v59 }
  0x60   : > { %v2607_v61 = vpop.eup %2055  ;;  %v812_v10 = vmul.f32 %v2600_v54, %v1754_v46  ;;  %v1785_v13 = vunpack.c.l.bf16 %v1947_v60  ;;  %v817_v17 = vsub.f32 0.0, %v809_v56  ;;  %v1786_v18 = vunpack.c.h.bf16 %v1947_v60 }
  0x61   : > { %v2616_v3 = vpop.eup %2057  ;;  %v813_v16 = vmul.f32 %v2607_v61, %v1757_v50  ;;  %v1789_v19 = vunpack.c.l.bf16 %v2614_v2  ;;  %v818_v22 = vsub.f32 0.0, %v810_v62  ;;  %v1790_v23 = vunpack.c.h.bf16 %v2614_v2 }
  0x62   : > { %v2625_v9 = vpop.eup %2059  ;;  %v814_v21 = vmul.f32 %v2616_v3, %v1758_v51  ;;  %v1793_v24 = vunpack.c.l.bf16 %v2623_v8  ;;  %v819_v27 = vsub.f32 0.0, %v811_v4  ;;  %v1794_v28 = vunpack.c.h.bf16 %v2623_v8 }
  0x63   : > { %v2631_v15 = vpop.eup %2061  ;;  %v815_v26 = vmul.f32 %v2625_v9, %v1761_v52  ;;  %v1797_v29 = vunpack.c.l.bf16 %v2629_v14  ;;  %v820_v33 = vsub.f32 0.0, %v812_v10  ;;  %v2652_v34 = vmul.f32 %v2582_v41, %v1781_v11 }
  0x64   : > { %v2635_v20 = vpop.eup %2063  ;;  %v816_v32 = vmul.f32 %v2631_v15, %v1762_v55  ;;  %v1798_v35 = vunpack.c.h.bf16 %v2629_v14  ;;  %v821_v37 = vsub.f32 0.0, %v813_v16  ;;  %v825_v38 = vmul.f32 1.442695, %v817_v17 }
  0x65   : > { %v2640_v25 = vpop.eup %2065  ;;  %v858_v39 = vmul.f32 %v2635_v20, %v1765_v57  ;;  %v2659_v40 = vmul.f32 %v2587_v44, %v1782_v12  ;;  %v822_v43 = vsub.f32 0.0, %v814_v21  ;;  %v827_v45 = vmul.f32 1.442695, %v818_v22 }
  0x66   : > { %v2648_v31 = vpop.eup %2067  ;;  %v859_v46 = vmul.f32 %v2640_v25, %v1766_v58  ;;  %v1801_v47 = vunpack.c.l.bf16 %v2646_v30  ;;  %v823_v50 = vsub.f32 0.0, %v815_v26  ;;  %v829_v51 = vmul.f32 1.442695, %v819_v27 }
  0x67   : > { %v2655_v36 = vpop.eup %2069  ;;  %v860_v52 = vmul.f32 %v2648_v31, %v1769_v63  ;;  %v2669_v55 = vmul.f32 %v2595_v49, %v1785_v13  ;;  %v824_v57 = vsub.f32 0.0, %v816_v32  ;;  %v831_v59 = vmul.f32 1.442695, %v820_v33 }
  0x68   : > { %v2661_v42 = vpop.eup %2071  ;;  %v861_v60 = vmul.f32 %v2655_v36, %v1770_v0  ;;  %v2675_v62 = vmul.f32 %v2600_v54, %v1786_v18  ;;  %2079 = vpow2.f32 %v825_v38  ;;  %v833_v2 = vmul.f32 1.442695, %v821_v37 }
  0x69   : > { %v2665_v48 = vpop.eup %2073  ;;  %v862_v4 = vmul.f32 %v2661_v42, %v1773_v1  ;;  %v866_v10 = vsub.f32 0.0, %v858_v39  ;;  %2081 = vpow2.f32 %v827_v45  ;;  %v835_v63 = vmul.f32 1.442695, %v822_v43  ;;  %v1952_v43 = vld [vmem:[%s2573_s8 + $0xf0] sm:$0xff]  }
  0x6a   : > { %v2671_v56 = vpop.eup %2075  ;;  %v863_v11 = vmul.f32 %v2665_v48, %v1774_v5  ;;  %v867_v12 = vsub.f32 0.0, %v859_v46  ;;  %2083 = vpow2.f32 %v829_v51  ;;  %v837_v13 = vmul.f32 1.442695, %v823_v50 }
  0x6b   : > { %v2677_v58 = vpop.eup %2077  ;;  %v864_v16 = vmul.f32 %v2671_v56, %v1777_v6  ;;  %v868_v0 = vsub.f32 0.0, %v860_v52  ;;  %2085 = vpow2.f32 %v831_v59  ;;  %v839_v17 = vmul.f32 1.442695, %v824_v57  ;;  %v1953_v59 = vld [vmem:[%s2573_s8 + $0xf8] sm:$0xff]  }
  0x6c   : > { %v865_v18 = vmul.f32 %v2677_v58, %v1778_v7  ;;  %v869_v21 = vsub.f32 0.0, %v861_v60  ;;  %2087 = vpow2.f32 %v833_v2  ;;  %v870_v1 = vsub.f32 0.0, %v862_v4 }
  0x6d   : > { %v874_v22 = vmul.f32 1.442695, %v866_v10  ;;  %v927_v26 = vmul.f32 %v2607_v61, %v1789_v19  ;;  %2089 = vpow2.f32 %v835_v63  ;;  %v871_v5 = vsub.f32 0.0, %v863_v11 }
  0x6e   : > { %v876_v27 = vmul.f32 1.442695, %v867_v12  ;;  %v2687_v32 = vmul.f32 %v2616_v3, %v1790_v23  ;;  %2091 = vpow2.f32 %v837_v13  ;;  %v872_v6 = vsub.f32 0.0, %v864_v16 }
  0x6f   : > { %v878_v33 = vmul.f32 1.442695, %v868_v0  ;;  %v2690_v53 = vmul.f32 %v2625_v9, %v1793_v24  ;;  %2093 = vpow2.f32 %v839_v17  ;;  %v873_v7 = vsub.f32 0.0, %v865_v18 }
  0x70   : > { %v880_v37 = vmul.f32 1.442695, %v869_v21  ;;  %v931_v38 = vsub.f32 0.0, %v2652_v34  ;;  %2095 = vpow2.f32 %v874_v22  ;;  %v882_v19 = vmul.f32 1.442695, %v870_v1 }
  0x71   : > { %v932_v39 = vsub.f32 0.0, %v2659_v40  ;;  %v972_v23 = vmul.f32 %v2635_v20, %v1797_v29  ;;  %2097 = vpow2.f32 %v876_v27  ;;  %v884_v45 = vmul.f32 1.442695, %v871_v5 }
  0x72   : > { %v933_v24 = vsub.f32 0.0, %v2669_v55  ;;  %v934_v46 = vsub.f32 0.0, %v2675_v62  ;;  %2099 = vpow2.f32 %v878_v33  ;;  %v886_v50 = vmul.f32 1.442695, %v872_v6 }
  0x73   : > { %v1802_v34 = vunpack.c.h.bf16 %v2646_v30  ;;  %v973_v40 = vmul.f32 %v2640_v25, %v1798_v35  ;;  %2101 = vpow2.f32 %v880_v37  ;;  %v888_v51 = vmul.f32 1.442695, %v873_v7 }
  0x74   : > { %v935_v52 = vsub.f32 0.0, %v927_v26  ;;  %v1805_v57 = vunpack.c.l.bf16 %v1952_v43  ;;  %2103 = vpow2.f32 %v882_v19  ;;  %v939_v29 = vmul.f32 1.442695, %v931_v38  ;;  %v1954_v19 = vld [vmem:[%s2573_s8 + $0x40] sm:$0xff]  }
  0x75   : > { %v974_v55 = vmul.f32 %v2648_v31, %v1801_v47  ;;  %v980_v60 = vsub.f32 0.0, %v972_v23  ;;  %v2708_v62 = vpop.eup %2079  ;;  %2105 = vpow2.f32 %v884_v45  ;;  %v936_v2 = vsub.f32 0.0, %v2687_v32 }
  0x76   : > { %v941_v14 = vmul.f32 1.442695, %v932_v39  ;;  %v1806_v4 = vunpack.c.h.bf16 %v1952_v43  ;;  %v2711_v35 = vpop.eup %2081  ;;  %2107 = vpow2.f32 %v886_v50  ;;  %v943_v10 = vmul.f32 1.442695, %v933_v24 }
  0x77   : > { %v975_v63 = vmul.f32 %v2655_v36, %v1802_v34  ;;  %v981_v11 = vsub.f32 0.0, %v973_v40  ;;  %v2714_v12 = vpop.eup %2083  ;;  %2109 = vpow2.f32 %v888_v51  ;;  %v945_v30 = vmul.f32 1.442695, %v934_v46 }
  0x78   : > { %v1809_v47 = vunpack.c.l.bf16 %v1953_v59  ;;  %v976_v13 = vmul.f32 %v2661_v42, %v1805_v57  ;;  %v2717_v16 = vpop.eup %2085  ;;  %v930_v0 = vmul.f32 %v2631_v15, %v1794_v28  ;;  %2111 = vpow2.f32 %v939_v29 }
  0x79   : > { %v982_v17 = vsub.f32 0.0, %v974_v55  ;;  %v988_v18 = vmul.f32 1.442695, %v980_v60  ;;  %v2722_v21 = vpop.eup %2087  ;;  %v937_v1 = vsub.f32 0.0, %v2690_v53  ;;  %2113 = vpow2.f32 %v941_v14 }
  0x7a   : > { %v947_v22 = vmul.f32 1.442695, %v935_v52  ;;  %v977_v26 = vmul.f32 %v2665_v48, %v1806_v4  ;;  %v2726_v5 = vpop.eup %2089  ;;  %2115 = vpow2.f32 %v943_v10  ;;  %v1810_v27 = vunpack.c.h.bf16 %v1953_v59  ;;  %v1955_v52 = vld [vmem:[%s2573_s8 + $0x48] sm:$0xff]  }
  0x7b   : > { %v983_v32 = vsub.f32 0.0, %v975_v63  ;;  %v990_v8 = vmul.f32 1.442695, %v981_v11  ;;  %v2728_v6 = vpop.eup %2091  ;;  %2117 = vpow2.f32 %v945_v30  ;;  %v949_v28 = vmul.f32 1.442695, %v936_v2  ;;  %v1956_v2 = vld [vmem:[%s2573_s8 + $0x50] sm:$0xff]  }
  0x7c   : > { %v978_v33 = vmul.f32 %v2671_v56, %v1809_v47  ;;  %v984_v7 = vsub.f32 0.0, %v976_v13  ;;  %v2731_v37 = vpop.eup %2093  ;;  %v938_v53 = vsub.f32 0.0, %v930_v0  ;;  %2119 = vpow2.f32 %v988_v18  ;;  %v1957_v11 = vld [vmem:[%s2573_s8 + $0x58] sm:$0xff]  }
  0x7d   : > { %v992_v38 = vmul.f32 1.442695, %v982_v17  ;;  %v2096_v39 = vpop.eup %2095  ;;  %2121 = vpow2.f32 %v947_v22  ;;  %v951_v43 = vmul.f32 1.442695, %v937_v1  ;;  %v985_v23 = vsub.f32 0.0, %v977_v26 }
  0x7e   : > { %v2098_v45 = vpop.eup %2097  ;;  %v979_v24 = vmul.f32 %v2677_v58, %v1810_v27  ;;  %2123 = vpow2.f32 %v990_v8  ;;  %v994_v46 = vmul.f32 1.442695, %v983_v32  ;;  %v986_v34 = vsub.f32 0.0, %v978_v33 }
  0x7f   : > { %v2100_v50 = vpop.eup %2099  ;;  %2125 = vpow2.f32 %v949_v28  ;;  %v996_v40 = vmul.f32 1.442695, %v984_v7  ;;  %v1813_v51 = vunpack.c.l.bf16 %v1954_v19  ;;  %v953_v29 = vmul.f32 1.442695, %v938_v53 }
  0x80   : > { %v2102_v57 = vpop.eup %2101  ;;  %2127 = vpow2.f32 %v992_v38  ;;  %v998_v55 = vmul.f32 1.442695, %v985_v23  ;;  %v1814_v60 = vunpack.c.h.bf16 %v1954_v19  ;;  %v890_v4 = vsub.f32 %v2708_v62, %v2096_v39 }
  0x81   : > { %v2104_v59 = vpop.eup %2103  ;;  %2129 = vpow2.f32 %v951_v43  ;;  %v987_v10 = vsub.f32 0.0, %v979_v24  ;;  %v1817_v63 = vunpack.c.l.bf16 %v1955_v52  ;;  %v1000_v47 = vmul.f32 1.442695, %v986_v34 }
  0x82   : > { %v2106_v14 = vpop.eup %2105  ;;  %2131 = vpow2.f32 %v994_v46  ;;  %v1818_v13 = vunpack.c.h.bf16 %v1955_v52  ;;  %v1045_v0 = vmul.f32 %v2582_v41, %v1813_v51  ;;  %v891_v18 = vsub.f32 %v2711_v35, %v2098_v45 }
  0x83   : > { %v2108_v30 = vpop.eup %2107  ;;  %2133 = vpow2.f32 %v996_v40  ;;  %v892_v1 = vsub.f32 %v2714_v12, %v2100_v50  ;;  %v1821_v22 = vunpack.c.l.bf16 %v1956_v2  ;;  %v1822_v62 = vunpack.c.h.bf16 %v1956_v2 }
  0x84   : > { %v2110_v17 = vpop.eup %2109  ;;  %2135 = vpow2.f32 %v953_v29  ;;  %v1825_v27 = vunpack.c.l.bf16 %v1957_v11  ;;  %v1046_v32 = vmul.f32 %v2587_v44, %v1814_v60  ;;  %v2743_v28 = vmul.f32 %v890_v4, %v890_v4 }
  0x85   : > { %v2112_v26 = vpop.eup %2111  ;;  %2137 = vpow2.f32 %v998_v55  ;;  %v1002_v33 = vmul.f32 1.442695, %v987_v10  ;;  %v1826_v7 = vunpack.c.h.bf16 %v1957_v11  ;;  %v1047_v53 = vmul.f32 %v2595_v49, %v1817_v63 }
  0x86   : > { %v2114_v8 = vpop.eup %2113  ;;  %v893_v35 = vsub.f32 %v2717_v16, %v2102_v57  ;;  %2139 = vpow2.f32 %v1000_v47  ;;  %v1048_v12 = vmul.f32 %v2600_v54, %v1818_v13  ;;  %v1053_v19 = vsub.f32 0.0, %v1045_v0 }
  0x87   : > { %v2116_v38 = vpop.eup %2115  ;;  %v894_v43 = vsub.f32 %v2722_v21, %v2104_v59  ;;  %v895_v23 = vsub.f32 %v2726_v5, %v2106_v14  ;;  %v2750_v45 = vmul.f32 %v891_v18, %v891_v18  ;;  %v1049_v24 = vmul.f32 %v2607_v61, %v1821_v22  ;;  %v1958_v5 = vld [vmem:[%s2573_s8 + $0x100] sm:$0xff]   ;;  %v1959_v18 = vld [vmem:[%s2573_s8 + $0x108] sm:$0xff]  }
  0x88   : > { %v2118_v39 = vpop.eup %2117  ;;  %v2753_v50 = vmul.f32 %v892_v1, %v892_v1  ;;  %v1050_v34 = vmul.f32 %v2616_v3, %v1822_v62  ;;  %v1051_v16 = vmul.f32 %v2625_v9, %v1825_v27  ;;  %v1054_v40 = vsub.f32 0.0, %v1046_v32 }
  0x89   : > { %v2120_v46 = vpop.eup %2119  ;;  %v896_v52 = vsub.f32 %v2728_v6, %v2108_v30  ;;  %2141 = vpow2.f32 %v1002_v33  ;;  %v1052_v21 = vmul.f32 %v2631_v15, %v1826_v7  ;;  %v1055_v57 = vsub.f32 0.0, %v1047_v53 }
  0x8a   : > { %v2122_v51 = vpop.eup %2121  ;;  %v897_v59 = vsub.f32 %v2731_v37, %v2110_v17  ;;  %v2761_v55 = vmul.f32 %v893_v35, %v893_v35  ;;  %v1056_v60 = vsub.f32 0.0, %v1048_v12  ;;  %v1061_v2 = vmul.f32 1.442695, %v1053_v19 }
  0x8b   : > { %v2124_v29 = vpop.eup %2123  ;;  %v2763_v4 = vmul.f32 %v894_v43, %v894_v43  ;;  %v2765_v10 = vmul.f32 %v895_v23, %v895_v23  ;;  %v1004_v63 = vsub.f32 %v2112_v26, %v2120_v46  ;;  %v1057_v6 = vsub.f32 0.0, %v1049_v24 }
  0x8c   : > { %v2126_v14 = vpop.eup %2125  ;;  %v1058_v30 = vsub.f32 0.0, %v1050_v34  ;;  %v1059_v47 = vsub.f32 0.0, %v1051_v16  ;;  %v1063_v13 = vmul.f32 1.442695, %v1054_v40  ;;  %v1829_v0 = vunpack.c.l.bf16 %v1958_v5 }
  0x8d   : > { %v2128_v11 = vpop.eup %2127  ;;  %v2768_v22 = vmul.f32 %v896_v52, %v896_v52  ;;  %v1005_v37 = vsub.f32 %v2114_v8, %v2124_v29  ;;  %v1060_v17 = vsub.f32 0.0, %v1052_v21  ;;  %v1065_v62 = vmul.f32 1.442695, %v1055_v57  ;;  %v1960_v8 = vld [vmem:[%s2573_s8 + $0x110] sm:$0xff]  }
  0x8e   : > { %v2130_v1 = vpop.eup %2129  ;;  %v2770_v32 = vmul.f32 %v897_v59, %v897_v59  ;;  %2143 = vpow2.f32 %v1061_v2  ;;  %v1067_v33 = vmul.f32 1.442695, %v1056_v60  ;;  %v1830_v26 = vunpack.c.h.bf16 %v1958_v5 }
  0x8f   : > { %v2132_v27 = vpop.eup %2131  ;;  %v1006_v53 = vsub.f32 %v2116_v38, %v2128_v11  ;;  %v1012_v35 = vmul.f32 %v1004_v63, %v1004_v63  ;;  %v1069_v12 = vmul.f32 1.442695, %v1057_v6  ;;  %v1833_v19 = vunpack.c.l.bf16 %v1959_v18  ;;  %v1961_v38 = vld [vmem:[%s2573_s8 + $0x118] sm:$0xff]  }
  0x90   : > { %v2134_v7 = vpop.eup %2133  ;;  %2145 = vpow2.f32 %v1063_v13  ;;  %v1071_v23 = vmul.f32 1.442695, %v1058_v30  ;;  %v1073_v24 = vmul.f32 1.442695, %v1059_v47  ;;  %v1094_v46 = vmul.f32 %v2635_v20, %v1829_v0  ;;  %v1962_v13 = vld [vmem:[%s2573_s8 + $0x60] sm:$0xff]  }
  0x91   : > { %v2136_v43 = vpop.eup %2135  ;;  %v1007_v16 = vsub.f32 %v2118_v39, %v2132_v27  ;;  %v1013_v40 = vmul.f32 %v1005_v37, %v1005_v37  ;;  %2147 = vpow2.f32 %v1065_v62  ;;  %v1075_v52 = vmul.f32 1.442695, %v1060_v17 }
  0x92   : > { %v2138_v34 = vpop.eup %2137  ;;  %v1008_v21 = vsub.f32 %v2122_v51, %v2134_v7  ;;  %2149 = vpow2.f32 %v1067_v33  ;;  %v1834_v57 = vunpack.c.h.bf16 %v1959_v18  ;;  %v1095_v5 = vmul.f32 %v2640_v25, %v1830_v26  ;;  %v1963_v26 = vld [vmem:[%s2573_s8 + $0x68] sm:$0xff]  }
  0x93   : > { %v2140_v29 = vpop.eup %2139  ;;  %v1014_v59 = vmul.f32 %v1006_v53, %v1006_v53  ;;  %v2777_v60 = vadd.f32 %v1012_v35, %v2743_v28  ;;  %v1837_v2 = vunpack.c.l.bf16 %v1960_v8  ;;  %v1096_v63 = vmul.f32 %v2648_v31, %v1833_v19 }
  0x94   : > { %v1009_v6 = vsub.f32 %v2126_v14, %v2138_v34  ;;  %2151 = vpow2.f32 %v1069_v12  ;;  %v1838_v39 = vunpack.c.h.bf16 %v1960_v8  ;;  %v1102_v11 = vsub.f32 0.0, %v1094_v46  ;;  %v1964_v46 = vld [vmem:[%s2573_s8 + $0x70] sm:$0xff]  }
  0x95   : > { %v1015_v51 = vmul.f32 %v1007_v16, %v1007_v16  ;;  %v2781_v30 = vadd.f32 %v1013_v40, %v2750_v45  ;;  %2153 = vpow2.f32 %v1071_v23  ;;  %v1841_v47 = vunpack.c.l.bf16 %v1961_v38 }
  0x96   : > { %v2142_v0 = vpop.eup %2141  ;;  %v1010_v18 = vsub.f32 %v2130_v1, %v2140_v29  ;;  %v1016_v37 = vmul.f32 %v1008_v21, %v1008_v21  ;;  %v1097_v28 = vmul.f32 %v2655_v36, %v1834_v57  ;;  %v1103_v17 = vsub.f32 0.0, %v1095_v5 }
  0x97   : > { %v2786_v62 = vadd.f32 %v1014_v59, %v2753_v50  ;;  %v1842_v14 = vunpack.c.h.bf16 %v1961_v38  ;;  %v1098_v27 = vmul.f32 %v2661_v42, %v1837_v2  ;;  %v1104_v33 = vsub.f32 0.0, %v1096_v63  ;;  %v1965_v2 = vld [vmem:[%s2573_s8 + $0x78] sm:$0xff]  }
  0x98   : > { %2155 = vpow2.f32 %v1073_v24  ;;  %v1099_v45 = vmul.f32 %v2665_v48, %v1838_v39  ;;  %v1110_v7 = vmul.f32 1.442695, %v1102_v11  ;;  %v1845_v53 = vunpack.c.l.bf16 %v1962_v13 }
  0x99   : > { %v1011_v35 = vsub.f32 %v2136_v43, %v2142_v0  ;;  %v1017_v1 = vmul.f32 %v1009_v6, %v1009_v6  ;;  %v1100_v12 = vmul.f32 %v2671_v56, %v1841_v47  ;;  %v1846_v19 = vunpack.c.h.bf16 %v1962_v13 }
  0x9a   : > { %2157 = vpow2.f32 %v1075_v52  ;;  %v1105_v23 = vsub.f32 0.0, %v1097_v28  ;;  %v1112_v50 = vmul.f32 1.442695, %v1103_v17  ;;  %v1849_v8 = vunpack.c.l.bf16 %v1963_v26 }
  0x9b   : > { %v2793_v34 = vpop.eup %2143  ;;  %v1101_v16 = vmul.f32 %v2677_v58, %v1842_v14  ;;  %v1106_v24 = vsub.f32 0.0, %v1098_v27  ;;  %v1114_v40 = vmul.f32 1.442695, %v1104_v33  ;;  %v1850_v21 = vunpack.c.h.bf16 %v1963_v26 }
  0x9c   : > { %v2797_v57 = vadd.f32 %v1015_v51, %v2761_v55  ;;  %v1107_v43 = vsub.f32 0.0, %v1099_v45  ;;  %2159 = vpow2.f32 %v1110_v7  ;;  %v1167_v38 = vmul.f32 %v2582_v41, %v1845_v53  ;;  %v1966_v53 = vld [vmem:[%s2573_s8 + $0x120] sm:$0xff]  }
  0x9d   : > { %v2800_v52 = vpop.eup %2145  ;;  %v1018_v5 = vmul.f32 %v1010_v18, %v1010_v18  ;;  %v1108_v29 = vsub.f32 0.0, %v1100_v12  ;;  %v1853_v59 = vunpack.c.l.bf16 %v1964_v46  ;;  %v1168_v63 = vmul.f32 %v2587_v44, %v1846_v19 }
  0x9e   : > { %v2804_v6 = vpop.eup %2147  ;;  %2161 = vpow2.f32 %v1112_v50  ;;  %v1116_v39 = vmul.f32 1.442695, %v1105_v23  ;;  %v1854_v11 = vunpack.c.h.bf16 %v1964_v46  ;;  %v1169_v55 = vmul.f32 %v2595_v49, %v1849_v8 }
  0x9f   : > { %v2807_v51 = vpop.eup %2149  ;;  %v1109_v47 = vsub.f32 0.0, %v1101_v16  ;;  %2163 = vpow2.f32 %v1114_v40  ;;  %v1118_v13 = vmul.f32 1.442695, %v1106_v24  ;;  %v1170_v0 = vmul.f32 %v2600_v54, %v1850_v21 }
  0xa0   : > { %v2811_v18 = vadd.f32 %v1016_v37, %v2763_v4  ;;  %v1120_v28 = vmul.f32 1.442695, %v1107_v43  ;;  %v1857_v17 = vunpack.c.l.bf16 %v1965_v2  ;;  %v1175_v14 = vsub.f32 0.0, %v1167_v38 }
  0xa1   : > { %v2813_v27 = vpop.eup %2151  ;;  %v1019_v33 = vmul.f32 %v1011_v35, %v1011_v35  ;;  %v1122_v26 = vmul.f32 1.442695, %v1108_v29  ;;  %v1171_v45 = vmul.f32 %v2607_v61, %v1853_v59  ;;  %v1176_v7 = vsub.f32 0.0, %v1168_v63  ;;  %v1967_v35 = vld [vmem:[%s2573_s8 + $0x128] sm:$0xff]   ;;  %v1968_v29 = vld [vmem:[%s2573_s8 + $0x130] sm:$0xff]  }
  0xa2   : > { %3081 = vst [vmem:[#allocation5_spill] sm:$0xff] %v2811_v18  ;;  %v2817_v12 = vpop.eup %2153  ;;  %2165 = vpow2.f32 %v1116_v39  ;;  %v1858_v19 = vunpack.c.h.bf16 %v1965_v2  ;;  %v1172_v23 = vmul.f32 %v2616_v3, %v1854_v11  ;;  %v1177_v4 = vsub.f32 0.0, %v1169_v55 }
  0xa3   : > { %v2821_v37 = vadd.f32 %v1017_v1, %v2765_v10  ;;  %2167 = vpow2.f32 %v1118_v13  ;;  %v1124_v50 = vmul.f32 1.442695, %v1109_v47  ;;  %v1178_v8 = vsub.f32 0.0, %v1170_v0  ;;  %v1969_v0 = vld [vmem:[%s2573_s8 + $0x138] sm:$0xff]  }
  0xa4   : > { %2169 = vpow2.f32 %v1120_v28  ;;  %v1173_v46 = vmul.f32 %v2625_v9, %v1857_v17  ;;  %v1183_v16 = vmul.f32 1.442695, %v1175_v14  ;;  %v1861_v24 = vunpack.c.l.bf16 %v1966_v53 }
  0xa5   : > { %3082 = vst [vmem:[#allocation6_spill] sm:$0xff] %v2821_v37  ;;  %v2825_v40 = vpop.eup %2155  ;;  %2171 = vpow2.f32 %v1122_v26  ;;  %v1179_v21 = vsub.f32 0.0, %v1171_v45  ;;  %v1185_v43 = vmul.f32 1.442695, %v1176_v7  ;;  %v1862_v38 = vunpack.c.h.bf16 %v1966_v53  ;;  %v1977_v37 = vld [vmem:[%s2573_s8 + $0x158] sm:$0xff]  }
  0xa6   : > { %v1174_v10 = vmul.f32 %v2631_v15, %v1858_v19  ;;  %v1180_v1 = vsub.f32 0.0, %v1172_v23  ;;  %v1187_v59 = vmul.f32 1.442695, %v1177_v4  ;;  %v1865_v2 = vunpack.c.l.bf16 %v1967_v35 }
  0xa7   : > { %v2829_v63 = vpop.eup %2157  ;;  %v2832_v39 = vadd.f32 %v1018_v5, %v2768_v22  ;;  %2173 = vpow2.f32 %v1124_v50  ;;  %v1189_v11 = vmul.f32 1.442695, %v1178_v8  ;;  %v1866_v55 = vunpack.c.h.bf16 %v1967_v35 }
  0xa8   : > { %v1181_v47 = vsub.f32 0.0, %v1173_v46  ;;  %2175 = vpow2.f32 %v1183_v16  ;;  %v1869_v13 = vunpack.c.l.bf16 %v1968_v29  ;;  %v1216_v28 = vmul.f32 %v2635_v20, %v1861_v24  ;;  %v1970_v24 = vld [vmem:[%s2573_s8 + $0x80] sm:$0xff]  }
  0xa9   : > { %3083 = vst [vmem:[#allocation7_spill] sm:$0xff] %v2832_v39  ;;  %v2160_v17 = vpop.eup %2159  ;;  %2177 = vpow2.f32 %v1185_v43  ;;  %v1191_v14 = vmul.f32 1.442695, %v1179_v21  ;;  %v1870_v26 = vunpack.c.h.bf16 %v1968_v29  ;;  %v1217_v45 = vmul.f32 %v2640_v25, %v1862_v38 }
  0xaa   : > { %v1182_v7 = vsub.f32 0.0, %v1174_v10  ;;  %2179 = vpow2.f32 %v1187_v59  ;;  %v1193_v22 = vmul.f32 1.442695, %v1180_v1  ;;  %v1218_v5 = vmul.f32 %v2648_v31, %v1865_v2 }
  0xab   : > { %v2162_v53 = vpop.eup %2161  ;;  %v2839_v19 = vadd.f32 %v1019_v33, %v2770_v32  ;;  %2181 = vpow2.f32 %v1189_v11  ;;  %v1873_v23 = vunpack.c.l.bf16 %v1969_v0  ;;  %v1219_v4 = vmul.f32 %v2655_v36, %v1866_v55  ;;  %v1971_v11 = vld [vmem:[%s2573_s8 + $0x88] sm:$0xff]  }
  0xac   : > { %v2164_v50 = vpop.eup %2163  ;;  %v1126_v8 = vsub.f32 %v2793_v34, %v2160_v17  ;;  %v1874_v35 = vunpack.c.h.bf16 %v1969_v0  ;;  %v1220_v46 = vmul.f32 %v2661_v42, %v1869_v13  ;;  %v1224_v16 = vsub.f32 0.0, %v1216_v28 }
  0xad   : > { %3084 = vst [vmem:[#allocation8_spill] sm:$0xff] %v2839_v19  ;;  %2183 = vpow2.f32 %v1191_v14  ;;  %v1195_v21 = vmul.f32 1.442695, %v1181_v47  ;;  %v1221_v43 = vmul.f32 %v2665_v48, %v1870_v26  ;;  %v1225_v38 = vsub.f32 0.0, %v1217_v45  ;;  %v1972_v26 = vld [vmem:[%s2573_s8 + $0x90] sm:$0xff]  }
  0xae   : > { %v1127_v32 = vsub.f32 %v2800_v52, %v2162_v53  ;;  %2185 = vpow2.f32 %v1193_v22  ;;  %v1197_v33 = vmul.f32 1.442695, %v1182_v7  ;;  %v1226_v29 = vsub.f32 0.0, %v1218_v5 }
  0xaf   : > { %v2166_v10 = vpop.eup %2165  ;;  %v2848_v34 = vsub.f32 %v2804_v6, %v2164_v50  ;;  %v1222_v1 = vmul.f32 %v2671_v56, %v1873_v23  ;;  %v1227_v59 = vsub.f32 0.0, %v1219_v4  ;;  %v1877_v2 = vunpack.c.l.bf16 %v1970_v24  ;;  %v1973_v50 = vld [vmem:[%s2573_s8 + $0x98] sm:$0xff]  }
  0xb0   : > { %v2852_v55 = vpop.eup %2167  ;;  %v2854_v47 = vmul.f32 %v1126_v8, %v1126_v8  ;;  %v1223_v13 = vmul.f32 %v2677_v58, %v1874_v35  ;;  %v1228_v52 = vsub.f32 0.0, %v1220_v46  ;;  %v1232_v0 = vmul.f32 1.442695, %v1224_v16 }
  0xb1   : > { %v2857_v28 = vpop.eup %2169  ;;  %2187 = vpow2.f32 %v1195_v21  ;;  %v1229_v17 = vsub.f32 0.0, %v1221_v43  ;;  %v1234_v6 = vmul.f32 1.442695, %v1225_v38  ;;  %v1878_v14 = vunpack.c.h.bf16 %v1970_v24 }
  0xb2   : > { %v2860_v45 = vpop.eup %2171  ;;  %v2863_v7 = vsub.f32 %v2807_v51, %v2166_v10  ;;  %2189 = vpow2.f32 %v1197_v33  ;;  %v1236_v22 = vmul.f32 1.442695, %v1226_v29  ;;  %v1881_v5 = vunpack.c.l.bf16 %v1971_v11 }
  0xb3   : > { %v1230_v53 = vsub.f32 0.0, %v1222_v1  ;;  %v1238_v23 = vmul.f32 1.442695, %v1227_v59  ;;  %v1882_v4 = vunpack.c.h.bf16 %v1971_v11  ;;  %v1289_v8 = vmul.f32 %v2582_v41, %v1877_v2  ;;  %v1974_v59 = vld [vmem:[%s2573_s8 + $0x140] sm:$0xff]  }
  0xb4   : > { %v2867_v35 = vpop.eup %2173  ;;  %v1231_v46 = vsub.f32 0.0, %v1223_v13  ;;  %2191 = vpow2.f32 %v1232_v0  ;;  %v1240_v16 = vmul.f32 1.442695, %v1228_v52  ;;  %v1885_v24 = vunpack.c.l.bf16 %v1972_v26 }
  0xb5   : > { %v2869_v21 = vpop.eup %2175  ;;  %2193 = vpow2.f32 %v1234_v6  ;;  %v1242_v51 = vmul.f32 1.442695, %v1229_v17  ;;  %v1886_v43 = vunpack.c.h.bf16 %v1972_v26  ;;  %v1290_v38 = vmul.f32 %v2587_v44, %v1878_v14  ;;  %v1975_v26 = vld [vmem:[%s2573_s8 + $0x148] sm:$0xff]  }
  0xb6   : > { %v2872_v33 = vpop.eup %2177  ;;  %2195 = vpow2.f32 %v1236_v22  ;;  %v1889_v29 = vunpack.c.l.bf16 %v1973_v50  ;;  %v1890_v10 = vunpack.c.h.bf16 %v1973_v50  ;;  %v1291_v1 = vmul.f32 %v2595_v49, %v1881_v5 }
  0xb7   : > { %v2876_v2 = vpop.eup %2179  ;;  %2197 = vpow2.f32 %v1238_v23  ;;  %v1244_v11 = vmul.f32 1.442695, %v1230_v53  ;;  %v1292_v13 = vmul.f32 %v2600_v54, %v1882_v4  ;;  %v1297_v52 = vsub.f32 0.0, %v1289_v8  ;;  %v1976_v23 = vld [vmem:[%s2573_s8 + $0x150] sm:$0xff]  }
  0xb8   : > { %3085 = vst [vmem:[#allocation9_spill] sm:$0xff] %v2876_v2  ;;  %v2879_v0 = vpop.eup %2181  ;;  %v2881_v17 = vmul.f32 %v1127_v32, %v1127_v32  ;;  %2199 = vpow2.f32 %v1240_v16  ;;  %v1246_v6 = vmul.f32 1.442695, %v1231_v46  ;;  %v1293_v14 = vmul.f32 %v2607_v61, %v1885_v24 }
  0xb9   : > { %3086 = vst [vmem:[#allocation10_spill] sm:$0xff] %v2879_v0  ;;  %2201 = vpow2.f32 %v1242_v51  ;;  %v1294_v22 = vmul.f32 %v2616_v3, %v1886_v43  ;;  %v1298_v5 = vsub.f32 0.0, %v1290_v38  ;;  %v1893_v50 = vunpack.c.l.bf16 %v1974_v59 }
  0xba   : > { %v2887_v53 = vpop.eup %2183  ;;  %v1295_v4 = vmul.f32 %v2625_v9, %v1889_v29  ;;  %v1296_v8 = vmul.f32 %v2631_v15, %v1890_v10  ;;  %v1299_v32 = vsub.f32 0.0, %v1291_v1  ;;  %v1894_v19 = vunpack.c.h.bf16 %v1974_v59 }
  0xbb   : > { %3087 = vst [vmem:[#allocation11_spill] sm:$0xff] %v2887_v53  ;;  %v2891_v16 = vpop.eup %2185  ;;  %2203 = vpow2.f32 %v1244_v11  ;;  %v1300_v46 = vsub.f32 0.0, %v1292_v13  ;;  %v1305_v24 = vmul.f32 1.442695, %v1297_v52  ;;  %v1897_v51 = vunpack.c.l.bf16 %v1975_v26 }
  0xbc   : > { %3088 = vst [vmem:[#allocation12_spill] sm:$0xff] %v2891_v16  ;;  %2205 = vpow2.f32 %v1246_v6  ;;  %v1301_v43 = vsub.f32 0.0, %v1293_v14  ;;  %v1898_v38 = vunpack.c.h.bf16 %v1975_v26  ;;  %v1901_v39 = vunpack.c.l.bf16 %v1976_v23 }
  0xbd   : > { %v1302_v0 = vsub.f32 0.0, %v1294_v22  ;;  %v1307_v2 = vmul.f32 1.442695, %v1298_v5  ;;  %v1902_v53 = vunpack.c.h.bf16 %v1976_v23  ;;  %v1338_v29 = vmul.f32 %v2635_v20, %v1893_v50 }
  0xbe   : > { %v2895_v18 = vpop.eup %2187  ;;  %v1303_v10 = vsub.f32 0.0, %v1295_v4  ;;  %v1304_v1 = vsub.f32 0.0, %v1296_v8  ;;  %v1309_v59 = vmul.f32 1.442695, %v1299_v32  ;;  %v1339_v11 = vmul.f32 %v2640_v25, %v1894_v19 }
  0xbf   : > { %3089 = vst [vmem:[#allocation13_spill] sm:$0xff] %v2895_v18  ;;  %v2898_v13 = vpop.eup %2189  ;;  %2207 = vpow2.f32 %v1305_v24  ;;  %v1311_v52 = vmul.f32 1.442695, %v1300_v46  ;;  %v1905_v6 = vunpack.c.l.bf16 %v1977_v37  ;;  %v1340_v14 = vmul.f32 %v2648_v31, %v1897_v51  ;;  %v1978_v51 = vld [vmem:[%s2573_s8 + $0xa0] sm:$0xff]   ;;  %v1981_v18 = vld [vmem:[%s2573_s8 + $0xb8] sm:$0xff]  }
  0xc0   : > { %3090 = vst [vmem:[#allocation14_spill] sm:$0xff] %v2898_v13  ;;  %v1313_v26 = vmul.f32 1.442695, %v1301_v43  ;;  %v1906_v22 = vunpack.c.h.bf16 %v1977_v37  ;;  %v1341_v5 = vmul.f32 %v2655_v36, %v1898_v38  ;;  %v1342_v50 = vmul.f32 %v2661_v42, %v1901_v39 }
  0xc1   : > { %v2903_v23 = vpop.eup %2191  ;;  %2209 = vpow2.f32 %v1307_v2  ;;  %v1315_v4 = vmul.f32 1.442695, %v1302_v0  ;;  %v1343_v19 = vmul.f32 %v2665_v48, %v1902_v53  ;;  %v1346_v8 = vsub.f32 0.0, %v1338_v29 }
  0xc2   : > { %v2906_v32 = vpop.eup %2193  ;;  %v2910_v46 = vsub.f32 %v2813_v27, %v2852_v55  ;;  %2211 = vpow2.f32 %v1309_v59  ;;  %v1317_v37 = vmul.f32 1.442695, %v1303_v10  ;;  %v1347_v24 = vsub.f32 0.0, %v1339_v11  ;;  %v1979_v55 = vld [vmem:[%s2573_s8 + $0xa8] sm:$0xff]  }
  0xc3   : > { %v2913_v43 = vpop.eup %2195  ;;  %2213 = vpow2.f32 %v1311_v52  ;;  %v1319_v39 = vmul.f32 1.442695, %v1304_v1  ;;  %v1344_v2 = vmul.f32 %v2671_v56, %v1905_v6  ;;  %v1348_v0 = vsub.f32 0.0, %v1340_v14 }
  0xc4   : > { %v2916_v53 = vpop.eup %2197  ;;  %2215 = vpow2.f32 %v1313_v26  ;;  %v1345_v38 = vmul.f32 %v2677_v58, %v1906_v22  ;;  %v1349_v29 = vsub.f32 0.0, %v1341_v5  ;;  %v1350_v27 = vsub.f32 0.0, %v1342_v50  ;;  %v1980_v22 = vld [vmem:[%s2573_s8 + $0xb0] sm:$0xff]  }
  0xc5   : > { %v2920_v10 = vpop.eup %2199  ;;  %2217 = vpow2.f32 %v1315_v4  ;;  %v1351_v59 = vsub.f32 0.0, %v1343_v19  ;;  %v1354_v11 = vmul.f32 1.442695, %v1346_v8  ;;  %v1909_v52 = vunpack.c.l.bf16 %v1978_v51 }
  0xc6   : > { %3091 = vst [vmem:[#allocation15_spill] sm:$0xff] %v2920_v10  ;;  %v2922_v1 = vpop.eup %2201  ;;  %v2926_v6 = vmul.f32 %v2848_v34, %v2848_v34  ;;  %2219 = vpow2.f32 %v1317_v37  ;;  %v1356_v14 = vmul.f32 1.442695, %v1347_v24  ;;  %v1910_v26 = vunpack.c.h.bf16 %v1978_v51 }
  0xc7   : > { %3092 = vst [vmem:[#allocation16_spill] sm:$0xff] %v2922_v1  ;;  %2221 = vpow2.f32 %v1319_v39  ;;  %v1352_v5 = vsub.f32 0.0, %v1344_v2  ;;  %v1358_v50 = vmul.f32 1.442695, %v1348_v0  ;;  %v1913_v13 = vunpack.c.l.bf16 %v1979_v55 }
  0xc8   : > { %v2930_v16 = vpop.eup %2203  ;;  %v1353_v4 = vsub.f32 0.0, %v1345_v38  ;;  %v1360_v19 = vmul.f32 1.442695, %v1349_v29  ;;  %v1362_v8 = vmul.f32 1.442695, %v1350_v27  ;;  %v1914_v10 = vunpack.c.h.bf16 %v1979_v55 }
  0xc9   : > { %v2932_v1 = vpop.eup %2205  ;;  %2223 = vpow2.f32 %v1354_v11  ;;  %v1364_v34 = vmul.f32 1.442695, %v1351_v59  ;;  %v1917_v37 = vunpack.c.l.bf16 %v1980_v22  ;;  %v1411_v24 = vmul.f32 %v2582_v41, %v1909_v52  ;;  %v1982_v11 = vld [vmem:[%s2573_s8 + $0x160] sm:$0xff]   ;;  %v1983_v52 = vld [vmem:[%s2573_s8 + $0x168] sm:$0xff]  }
  0xca   : > { %2225 = vpow2.f32 %v1356_v14  ;;  %v1918_v51 = vunpack.c.h.bf16 %v1980_v22  ;;  %v1921_v39 = vunpack.c.l.bf16 %v1981_v18  ;;  %v1412_v2 = vmul.f32 %v2587_v44, %v1910_v26 }
  0xcb   : > { %v2938_v0 = vadd.f32 %v2854_v47, %v2777_v60  ;;  %2227 = vpow2.f32 %v1358_v50  ;;  %v1366_v38 = vmul.f32 1.442695, %v1352_v5  ;;  %v1413_v29 = vmul.f32 %v2595_v49, %v1913_v13 }
  0xcc   : > { %v2941_v27 = vpop.eup %2207  ;;  %2229 = vpow2.f32 %v1360_v19  ;;  %v1368_v55 = vmul.f32 1.442695, %v1353_v4  ;;  %v1922_v41 = vunpack.c.h.bf16 %v1981_v18  ;;  %v1414_v59 = vmul.f32 %v2600_v54, %v1914_v10  ;;  %v1984_v54 = vld [vmem:[%s2573_s8 + $0x170] sm:$0xff]   ;;  %v1985_v4 = vld [vmem:[%s2573_s8 + $0x178] sm:$0xff]  }
  0xcd   : > { %v2947_v44 = vsub.f32 %v2817_v12, %v2857_v28  ;;  %2231 = vpow2.f32 %v1362_v8  ;;  %v1415_v60 = vmul.f32 %v2607_v61, %v1917_v37  ;;  %v1419_v47 = vsub.f32 0.0, %v1411_v24 }
  0xce   : > { %v2951_v14 = vpop.eup %2209  ;;  %2233 = vpow2.f32 %v1364_v34  ;;  %v1416_v49 = vmul.f32 %v2616_v3, %v1918_v51  ;;  %v1417_v18 = vmul.f32 %v2625_v9, %v1921_v39  ;;  %v1420_v13 = vsub.f32 0.0, %v1412_v2 }
  0xcf   : > { %v2956_v10 = vpop.eup %2211  ;;  %2235 = vpow2.f32 %v1366_v38  ;;  %v1421_v12 = vsub.f32 0.0, %v1413_v29  ;;  %v1925_v28 = vunpack.c.l.bf16 %v1982_v11  ;;  %v1926_v26 = vunpack.c.h.bf16 %v1982_v11 }
  0xd0   : > { %v2958_v22 = vpop.eup %2213  ;;  %2237 = vpow2.f32 %v1368_v55  ;;  %v1418_v61 = vmul.f32 %v2631_v15, %v1922_v41  ;;  %v1422_v5 = vsub.f32 0.0, %v1414_v59  ;;  %v1929_v50 = vunpack.c.l.bf16 %v1983_v52 }
  0xd1   : > { %v2962_v19 = vpop.eup %2215  ;;  %v1423_v3 = vsub.f32 0.0, %v1415_v60  ;;  %v1427_v9 = vmul.f32 1.442695, %v1419_v47  ;;  %v1930_v8 = vunpack.c.h.bf16 %v1983_v52  ;;  %v1933_v34 = vunpack.c.l.bf16 %v1984_v54 }
  0xd2   : > { %v2964_v37 = vpop.eup %2217  ;;  %v1424_v24 = vsub.f32 0.0, %v1416_v49  ;;  %v1425_v51 = vsub.f32 0.0, %v1417_v18  ;;  %v1429_v39 = vmul.f32 1.442695, %v1420_v13  ;;  %v1934_v2 = vunpack.c.h.bf16 %v1984_v54 }
  0xd3   : > { %v2966_v38 = vpop.eup %2219  ;;  %v1431_v29 = vmul.f32 1.442695, %v1421_v12  ;;  %v1937_v55 = vunpack.c.l.bf16 %v1985_v4  ;;  %v1460_v15 = vmul.f32 %v2635_v20, %v1925_v28  ;;  %v1461_v41 = vmul.f32 %v2640_v25, %v1926_v26 }
  0xd4   : > { %v2970_v59 = vpop.eup %2221  ;;  %v1426_v11 = vsub.f32 0.0, %v1418_v61  ;;  %v1433_v60 = vmul.f32 1.442695, %v1422_v5  ;;  %v1938_v47 = vunpack.c.h.bf16 %v1985_v4  ;;  %v1462_v52 = vmul.f32 %v2648_v31, %v1929_v50 }
  0xd5   : > { %2239 = vpow2.f32 %v1427_v9  ;;  %v1435_v49 = vmul.f32 1.442695, %v1423_v3  ;;  %v1463_v18 = vmul.f32 %v2655_v36, %v1930_v8  ;;  %v1464_v13 = vmul.f32 %v2661_v42, %v1933_v34 }
  0xd6   : > { %v2975_v54 = vpop.eup %2223  ;;  %2241 = vpow2.f32 %v1429_v39  ;;  %v1437_v12 = vmul.f32 1.442695, %v1424_v24  ;;  %v1439_v20 = vmul.f32 1.442695, %v1425_v51  ;;  %v1465_v25 = vmul.f32 %v2665_v48, %v1934_v2 }
  0xd7   : > { %v2978_v28 = vpop.eup %2225  ;;  %2243 = vpow2.f32 %v1431_v29  ;;  %v1466_v26 = vmul.f32 %v2671_v56, %v1937_v55  ;;  %v1468_v61 = vsub.f32 0.0, %v1460_v15  ;;  %v1469_v31 = vsub.f32 0.0, %v1461_v41 }
  0xd8   : > { %v2981_v5 = vpop.eup %2227  ;;  %2245 = vpow2.f32 %v1433_v60  ;;  %v1441_v36 = vmul.f32 1.442695, %v1426_v11  ;;  %v1467_v42 = vmul.f32 %v2677_v58, %v1938_v47  ;;  %v1470_v50 = vsub.f32 0.0, %v1462_v52 }
  0xd9   : > { %v2984_v4 = vpop.eup %2229  ;;  %v1137_v3 = vmul.f32 %v2863_v7, %v2863_v7  ;;  %2247 = vpow2.f32 %v1435_v49  ;;  %v1471_v48 = vsub.f32 0.0, %v1463_v18  ;;  %v1472_v9 = vsub.f32 0.0, %v1464_v13  ;;  %v3093_v18 = vld [vmem:[#allocation5_spill] sm:$0xff]  ;;  %v3095_v13 = vld [vmem:[#allocation10_spill] sm:$0xff] }
  0xda   : > { %v2988_v8 = vpop.eup %2231  ;;  %v1132_v56 = vsub.f32 %v2825_v40, %v2860_v45  ;;  %v2994_v34 = vadd.f32 %v2881_v17, %v2781_v30  ;;  %2249 = vpow2.f32 %v1437_v12  ;;  %v1473_v58 = vsub.f32 0.0, %v1465_v25 }
  0xdb   : > { %v2996_v24 = vpop.eup %2233  ;;  %2251 = vpow2.f32 %v1439_v20  ;;  %v1474_v51 = vsub.f32 0.0, %v1466_v26  ;;  %v1476_v39 = vmul.f32 1.442695, %v1468_v61  ;;  %v1478_v7 = vmul.f32 1.442695, %v1469_v31  ;;  %v3098_v26 = vld [vmem:[#allocation16_spill] sm:$0xff] }
  0xdc   : > { %v2998_v2 = vpop.eup %2235  ;;  %2253 = vpow2.f32 %v1441_v36  ;;  %v1475_v29 = vsub.f32 0.0, %v1467_v42  ;;  %v1480_v55 = vmul.f32 1.442695, %v1470_v50  ;;  %v1482_v15 = vmul.f32 1.442695, %v1471_v48  ;;  %v3099_v61 = vld [vmem:[#allocation12_spill] sm:$0xff] }
  0xdd   : > { %v3000_v41 = vpop.eup %2237  ;;  %v1138_v30 = vmul.f32 %v2910_v46, %v2910_v46  ;;  %v1144_v40 = vadd.f32 %v2926_v6, %v2786_v62  ;;  %2255 = vpow2.f32 %v1476_v39  ;;  %v1484_v45 = vmul.f32 1.442695, %v1472_v9  ;;  %v3101_v50 = vld [vmem:[#allocation14_spill] sm:$0xff] }
  0xde   : > { %v1133_v17 = vsub.f32 %v2829_v63, %v2867_v35  ;;  %v1139_v11 = vmul.f32 %v2947_v44, %v2947_v44  ;;  %2257 = vpow2.f32 %v1478_v7  ;;  %v1486_v60 = vmul.f32 1.442695, %v1473_v58  ;;  %v3094_v35 = vld [vmem:[#allocation9_spill] sm:$0xff]  ;;  %v3102_v58 = vld [vmem:[#allocation6_spill] sm:$0xff] }
  0xdf   : > { %v1145_v47 = vadd.f32 %v1137_v3, %v2797_v57  ;;  %v1248_v52 = vsub.f32 %v2869_v21, %v2903_v23  ;;  %2259 = vpow2.f32 %v1480_v55  ;;  %v1488_v46 = vmul.f32 1.442695, %v1474_v51  ;;  %v3096_v21 = vld [vmem:[#allocation15_spill] sm:$0xff] }
  0xe0   : > { %v1140_v49 = vmul.f32 %v1132_v56, %v1132_v56  ;;  %v1249_v62 = vsub.f32 %v2872_v33, %v2906_v32  ;;  %2261 = vpow2.f32 %v1482_v15  ;;  %v1490_v6 = vmul.f32 1.442695, %v1475_v29  ;;  %v3097_v23 = vld [vmem:[#allocation11_spill] sm:$0xff]  ;;  %v3100_v32 = vld [vmem:[#allocation13_spill] sm:$0xff] }
  0xe1   : > { %v1146_v63 = vadd.f32 %v1138_v30, %v3093_v18  ;;  %v1250_v44 = vsub.f32 %v3094_v35, %v2913_v43  ;;  %v1251_v12 = vsub.f32 %v3095_v13, %v2916_v53  ;;  %2263 = vpow2.f32 %v1484_v45 }
  0xe2   : > { %v2240_v57 = vpop.eup %2239  ;;  %v1141_v20 = vmul.f32 %v1133_v17, %v1133_v17  ;;  %v1252_v25 = vsub.f32 %v3097_v23, %v3096_v21  ;;  %v1253_v31 = vsub.f32 %v3099_v61, %v3098_v26  ;;  %2265 = vpow2.f32 %v1486_v60  ;;  %v3104_v60 = vld [vmem:[#allocation8_spill] sm:$0xff] }
  0xe3   : > { %v2242_v33 = vpop.eup %2241  ;;  %v1254_v36 = vsub.f32 %v3100_v32, %v2930_v16  ;;  %v1256_v42 = vmul.f32 %v1248_v52, %v1248_v52  ;;  %v1370_v43 = vsub.f32 %v2941_v27, %v2975_v54  ;;  %2267 = vpow2.f32 %v1488_v46  ;;  %v3103_v27 = vld [vmem:[#allocation7_spill] sm:$0xff] }
  0xe4   : > { %v2244_v53 = vpop.eup %2243  ;;  %v1255_v3 = vsub.f32 %v3101_v50, %v2932_v1  ;;  %v1257_v48 = vmul.f32 %v1249_v62, %v1249_v62  ;;  %v1371_v9 = vsub.f32 %v2951_v14, %v2978_v28  ;;  %2269 = vpow2.f32 %v1490_v6 }
  0xe5   : > { %v2246_v56 = vpop.eup %2245  ;;  %v1147_v51 = vadd.f32 %v1139_v11, %v3102_v58  ;;  %v1258_v39 = vmul.f32 %v1250_v44, %v1250_v44  ;;  %v1259_v7 = vmul.f32 %v1251_v12, %v1251_v12  ;;  %v1372_v16 = vsub.f32 %v2956_v10, %v2981_v5 }
  0xe6   : > { %v2248_v29 = vpop.eup %2247  ;;  %v1148_v54 = vadd.f32 %v1140_v49, %v3103_v27  ;;  %v1260_v55 = vmul.f32 %v1252_v25, %v1252_v25  ;;  %v1261_v15 = vmul.f32 %v1253_v31, %v1253_v31  ;;  %v1373_v1 = vsub.f32 %v2958_v22, %v2984_v4 }
  0xe7   : > { %v2250_v30 = vpop.eup %2249  ;;  %v1262_v45 = vmul.f32 %v1254_v36, %v1254_v36  ;;  %v1264_v14 = vadd.f32 %v1256_v42, %v2938_v0  ;;  %v1374_v28 = vsub.f32 %v2962_v19, %v2988_v8  ;;  %v1378_v17 = vmul.f32 %v1370_v43, %v1370_v43 }
  0xe8   : > { %v2252_v11 = vpop.eup %2251  ;;  %v1149_v52 = vadd.f32 %v1141_v20, %v3104_v60  ;;  %v1263_v10 = vmul.f32 %v1255_v3, %v1255_v3  ;;  %v1265_v5 = vadd.f32 %v1257_v48, %v2994_v34  ;;  %v1379_v46 = vmul.f32 %v1371_v9, %v1371_v9 }
  0xe9   : > { %v2254_v49 = vpop.eup %2253  ;;  %v1266_v62 = vadd.f32 %v1258_v39, %v1144_v40  ;;  %v1267_v6 = vadd.f32 %v1259_v7, %v1145_v47  ;;  %v1375_v22 = vsub.f32 %v2964_v37, %v2996_v24  ;;  %v1380_v4 = vmul.f32 %v1372_v16, %v1372_v16 }
  0xea   : > { %v2256_v18 = vpop.eup %2255  ;;  %v1268_v0 = vadd.f32 %v1260_v55, %v1146_v63  ;;  %v1269_v35 = vadd.f32 %v1261_v15, %v1147_v51  ;;  %v1376_v19 = vsub.f32 %v2966_v38, %v2998_v2  ;;  %v1381_v8 = vmul.f32 %v1373_v1, %v1373_v1 }
  0xeb   : > { %v2258_v44 = vpop.eup %2257  ;;  %v1270_v13 = vadd.f32 %v1262_v45, %v1148_v54  ;;  %v1382_v12 = vmul.f32 %v1374_v28, %v1374_v28  ;;  %v1386_v20 = vadd.f32 %v1378_v17, %v1264_v14  ;;  %v1492_v34 = vsub.f32 %v2240_v57, %v2256_v18 }
  0xec   : > { %v2260_v21 = vpop.eup %2259  ;;  %v1271_v23 = vadd.f32 %v1263_v10, %v1149_v52  ;;  %v1377_v40 = vsub.f32 %v2970_v59, %v3000_v41  ;;  %v1387_v47 = vadd.f32 %v1379_v46, %v1265_v5  ;;  %v1493_v37 = vsub.f32 %v2242_v33, %v2258_v44 }
  0xed   : > { %v2262_v24 = vpop.eup %2261  ;;  %v1383_v25 = vmul.f32 %v1375_v22, %v1375_v22  ;;  %v1388_v63 = vadd.f32 %v1380_v4, %v1266_v62  ;;  %v1494_v26 = vsub.f32 %v2244_v53, %v2260_v21  ;;  %v1500_v61 = vmul.f32 %v1492_v34, %v1492_v34 }
  0xee   : > { %v2264_v31 = vpop.eup %2263  ;;  %v1384_v38 = vmul.f32 %v1376_v19, %v1376_v19  ;;  %v1389_v2 = vadd.f32 %v1381_v8, %v1267_v6  ;;  %v1495_v32 = vsub.f32 %v2246_v56, %v2262_v24  ;;  %v1501_v36 = vmul.f32 %v1493_v37, %v1493_v37 }
  0xef   : > { %v2266_v42 = vpop.eup %2265  ;;  %v1390_v43 = vadd.f32 %v1382_v12, %v1268_v0  ;;  %v1496_v57 = vsub.f32 %v2248_v29, %v2264_v31  ;;  %v1502_v50 = vmul.f32 %v1494_v26, %v1494_v26  ;;  %v1508_v3 = vadd.f32 %v1500_v61, %v1386_v20 }
  0xf0   : > { %v2268_v48 = vpop.eup %2267  ;;  %v1385_v9 = vmul.f32 %v1377_v40, %v1377_v40  ;;  %v1497_v59 = vsub.f32 %v2250_v30, %v2266_v42  ;;  %v1503_v41 = vmul.f32 %v1495_v32, %v1495_v32  ;;  %v1509_v33 = vadd.f32 %v1501_v36, %v1387_v47 }
  0xf1   : > { %v2270_v58 = vpop.eup %2269  ;;  %v1391_v51 = vadd.f32 %v1383_v25, %v1269_v35  ;;  %v1498_v39 = vsub.f32 %v2252_v11, %v2268_v48  ;;  %v1504_v53 = vmul.f32 %v1496_v57, %v1496_v57  ;;  %v1510_v7 = vadd.f32 %v1502_v50, %v1388_v63 }
  0xf2   : > { %v1499_v16 = vsub.f32 %v2254_v49, %v2270_v58  ;;  %v1505_v27 = vmul.f32 %v1497_v59, %v1497_v59  ;;  %v1511_v54 = vadd.f32 %v1503_v41, %v1389_v2  ;;  %v1516_v56 = vadd.f32 %v1509_v33, %v1508_v3 }
  0xf3   : > { %v1392_v55 = vadd.f32 %v1384_v38, %v1270_v13  ;;  %v1506_v15 = vmul.f32 %v1498_v39, %v1498_v39  ;;  %v1512_v1 = vadd.f32 %v1504_v53, %v1390_v43  ;;  %v1393_v45 = vadd.f32 %v1385_v9, %v1271_v23 }
  0xf4   : > { %v1517_v29 = vadd.f32 %v1516_v56, %v1510_v7  ;;  %v1507_v14 = vmul.f32 %v1499_v16, %v1499_v16  ;;  %v1513_v28 = vadd.f32 %v1505_v27, %v1391_v51 }
  0xf5   : > { %v1514_v30 = vadd.f32 %v1506_v15, %v1392_v55 }
  0xf6   : > { %v1518_v17 = vadd.f32 %v1517_v29, %v1511_v54  ;;  %v1515_v11 = vadd.f32 %v1507_v14, %v1393_v45 }
  0xf8   : > { %v1519_v60 = vadd.f32 %v1518_v17, %v1512_v1 }
  0xfa   : > { %v1520_v52 = vadd.f32 %v1519_v60, %v1513_v28 }
  0xfc   : > { %v1521_v10 = vadd.f32 %v1520_v52, %v1514_v30 }
  0xfe   : > { %v1522_v5 = vadd.f32 %v1521_v10, %v1515_v11 }
 0x100   : > { %1523 = vadd.xlane.f32.xlu0 %v1522_v5 }
 0x189   : > { %v1524_v46 = vpop.xlane.xlu0 %1523 }
 0x18a   : > { %v1525_v49 = vrot.slane %v1524_v46, 4 }
 0x18c   : > { %v1526_v62 = vadd.f32 %v1525_v49, %v1524_v46 }
 0x18e   : > { %v1527_v6 = vrot.slane %v1526_v62, 2 }
 0x190   : > { %v1528_v22 = vadd.f32 %v1527_v6, %v1526_v62 }
 0x192   : > { %v1529_v4 = vrot.slane %v1528_v22, 1 }
 0x194   : > { %v1530_v18 = vadd.f32 %v1529_v4, %v1528_v22 }
 0x196   : > { %1989 = vpush %v1530_v18 }
 0x1c7   : > { %s1990_s15 = spop %1989 }
 0x1c8   : > { %v1532_v0 = vstv %s1990_s15 }
 0x1c9   : > { %1534 = vst [vmem:[%s669_s14] sm:$0xff] %v1532_v0 }
 0x1ca PF: > { %s16_s25 = sadd.s32 1, %s2325_s25   ;;  %s3105_s19 = smov %s2305_s20 }
 0x1cb   : > { %p13_p12 = scmp.ge.s32.totalorder %s16_s25, 6   ;;  %s3106_s20 = smov %s2409_s30 }
 0x1cc   : > { %s3107_s21 = smov %s2317_s23  ;;  %s3108_s22 = smov %s2321_s24 }
 0x1cd   : > { %s3109_s23 = smov %s3112_s2  ;;  %s3110_s24 = smov %s3116_s3 }
 0x1ce   :  { %15 = sbr.rel (!%p13_p12) target bundleno = 7 (0x7), region = 127 }

// kernel: mindscc_loss.2
= control target key start
LH: loop header
LB: loop body
LE: loop exit
PB: predicated region body
PF: predicated region fallthrough
CT: control target
= control target key end

     0   :  { %s3465_s15 = smov 0   ;;  %s3467_s16 = smov 0   ;;  %s4966_s0 = inlined_call_operand.vmem [shape: f32[2,2,8,8,128], index: 0, kind: input, shape index: {}]   ;;  %s4967_s1 = inlined_call_operand.vmem [shape: bf16[128,128], index: 1, kind: input, shape index: {}]   ;;  %s4968_s2 = inlined_call_operand.vmem [shape: bf16[64,64], index: 2, kind: input, shape index: {}]   ;;  %s4969_s3 = inlined_call_operand.vmem [shape: bf16[2,2,12,64,128], index: 3, kind: output, shape index: {0}]   ;;  %s4970_s4 = inlined_call_operand.vmem [shape: f32[2,2,64,128], index: 4, kind: output, shape index: {1}]  }
   0x1   :  { %s3469_s17 = smov 0   ;;  %s3471_s18 = smov 0  }
   0x2   :  { %s3473_s19 = smov 0  }
   0x3 LB: > { %s24_s20 = sadd.s32 1, %s3427_s17  ;;  %s27_s21 = sadd.s32 1, %s3431_s18  ;;  %s3435_s19 = sphi %s3473_s19, %s15_s19   ;;  %s3431_s18 = sphi %s3471_s18, %s5289_s18   ;;  %s3427_s17 = sphi %s3469_s17, %s5288_s17   ;;  %s3423_s16 = sphi %s3467_s16, %s5287_s16   ;;  %s3419_s15 = sphi %s3465_s15, %s5286_s15  }
   0x4   : > { %p25_p0 = scmp.ge.s32.totalorder %s24_s20, 2  ;;  %p2559_p1 = scmp.ge.s32.totalorder %s3435_s19, 1 }
   0x5   : > { %p187_p2 = scmp.lt.s32.totalorder %s3435_s19, 5 }
   0x6   : > { %s5291_s20 = smov (%p25_p0, %s24_s20), 0  ;;  %s5293_s21 = smov (!%p25_p0, %s27_s21), %s3431_s18 }
   0x7   : > { %p188_p3 = pnand %p2559_p1, %p187_p2  ;;  %p29_p4 = scmp.ge.s32.totalorder %s5293_s21, 2 }
   0x9   : > { %s5295_s21 = smov (%p29_p4, %s5293_s21), 0  ;;  %191 = sbr.rel (%p188_p3) target bundleno = 805 (0x325), region = 32 }
   0xe   : > { %p230_p5 = scmp.lt.s32.totalorder %s3423_s16, 1  ;;  %p232_p6 = scmp.lt.s32.totalorder %s3419_s15, 1  ;;  %v3385_v0 = vld [vmem:[%s4967_s1 + $0x38] sm:$0xff]   ;;  %v3386_v1 = vld [vmem:[%s4967_s1 + $0x30] sm:$0xff]   ;;  %v3387_v2 = vld [vmem:[%s4967_s1 + $0x28] sm:$0xff]   ;;  %v266_v16 = vlaneseq  ;;  %vm1169_vm6 = vcmask 523264  }
   0xf   : > { %3228 = vmatprep.subr.bf16.mxu0 %v3385_v0  ;;  %v3388_v5 = vld [vmem:[%s4967_s1 + $0x20] sm:$0xff]   ;;  %s3437_s14 = smov 1   ;;  %v3389_v8 = vld [vmem:[%s4967_s1 + $0x18] sm:$0xff]   ;;  %v3390_v11 = vld [vmem:[%s4967_s1 + $0x10] sm:$0xff]  }
  0x10   : > { %s5297_s16 = smov (!%p230_p5, %s3423_s16), 1  ;;  %s5299_s15 = smov (!%p232_p6, %s3419_s15), 1  ;;  %3229 = vmatpush3.bf16.msra.mxu0 %v3385_v0  ;;  %v3391_v14 = vld [vmem:[%s4967_s1 + $0x8] sm:$0xff]   ;;  %v3392_v15 = vld [vmem:[%s4967_s1] sm:$0xff]   ;;  %v3561_v17 = vshrl.u32 %v266_v16, 7  ;;  %v3568_v22 = vand.u32 127, %v266_v16 }
  0x11   : > { %s2561_s26 = sshll.u32 %s5297_s16, 4  ;;  %s3341_s27 = smul.u32 192, %s5297_s16  ;;  %3230 = vmatprep.subr.bf16.mxu0 %v3386_v1 }
  0x12   : > { %s2560_s28 = sshll.u32 %s5299_s15, 3  ;;  %s3340_s29 = smul.u32 96, %s5299_s15  ;;  %vm355_vm0 = vcmp.lt.s32.totalorder %v3561_v17, 7  ;;  %vm304_vm1 = vcmp.lt.s32.totalorder %v3561_v17, 1  ;;  %vm346_vm2 = vcmp.eq.s32.totalorder %v3561_v17, 7  ;;  %vm268_vm3 = vcmp.eq.s32.totalorder %v3568_v22, 0 }
  0x13   : > { %s3504_s6 = sadd.s32 %s2561_s26, %s2560_s28  ;;  %s3438_s28 = smov 127   ;;  %vm295_vm4 = vcmp.eq.s32.totalorder %v3561_v17, 0  ;;  %vm321_vm5 = vcmp.eq.s32.totalorder %v3568_v22, 127 }
  0x14   : > { %s2562_s7 = sshll.u32 %s3504_s6, 3  ;;  %s3507_s8 = sadd.s32 %s3341_s27, %s3340_s29  ;;  %3231 = vmatpush3.bf16.msra.mxu0 %v3386_v1 }
  0x15   : > { %s238_s11 = scalar_lea.vmem %s4966_s0, %s2562_s7  ;;  %3232 = vmatprep.subr.bf16.mxu0 %v3387_v2  ;;  %s4639_s16 = scalar_lea.vmem %s4970_s4, %s2562_s7 }
  0x16   : > { %v3514_v3 = vld [vmem:[%s238_s11 + $0x10] sm:$0xff]  ;;  %v3516_v4 = vld [vmem:[%s238_s11] sm:$0xff]  ;;  %v3523_v6 = vld [vmem:[%s238_s11 + $0x18] sm:$0xff]  ;;  %s2563_s6 = sshll.u32 %s3507_s8, 2 }
  0x17   : > { %273 = vrot.lane.b32.xlu1 %v3514_v3, %s3437_s14  ;;  %269 = vrot.lane.b32.xlu0 %v3516_v4, %s3437_s14  ;;  %5085 = vst [vmem:[#allocation2_spill] sm:$0xff] %v3523_v6  ;;  %v3525_v7 = vld [vmem:[%s238_s11 + $0x8] sm:$0xff]  ;;  %v3532_v10 = vld [vmem:[%s238_s11 + $0x20] sm:$0xff]  ;;  %v350_v18 = vrot.slane %v3523_v6, 1  ;;  %v349_v19 = vrot.slane %v3514_v3, 1  ;;  %v347_v21 = vrot.slane %v3516_v4, 1  ;;  %s4690_s22 = scalar_lea.vmem %s4969_s3, %s2563_s6 }
  0x18   : > { %3233 = vmatpush3.bf16.msra.mxu0 %v3387_v2  ;;  %v3530_v9 = vld [vmem:[%s238_s11 + $0x28] sm:$0xff]  ;;  %v3541_v12 = vld [vmem:[%s238_s11 + $0x38] sm:$0xff]  ;;  %v3543_v13 = vld [vmem:[%s238_s11 + $0x30] sm:$0xff]  ;;  %v348_v20 = vrot.slane %v3525_v7, 1  ;;  %v297_v23 = vrot.slane %v3525_v7, 7  ;;  %v298_v24 = vrot.slane %v3514_v3, 7 }
  0x19   : > { %5086 = vst [vmem:[#allocation3_spill] sm:$0xff] %v3530_v9  ;;  %3234 = vmatprep.subr.bf16.mxu0 %v3388_v5  ;;  %5087 = vst [vmem:[#allocation4_spill] sm:$0xff] %v3541_v12  ;;  %v303_v25 = vrot.slane %v3541_v12, 7  ;;  %v296_v26 = vrot.slane %v3516_v4, 7  ;;  %v360_v27 = vsel %vm355_vm0, %v349_v19, %v350_v18  ;;  %v299_v28 = vrot.slane %v3523_v6, 7 }
  0x1a   : > { %5088 = vst [vmem:[#allocation5_spill] sm:$0xff] %v3543_v13  ;;  %v351_v29 = vrot.slane %v3532_v10, 1  ;;  %v362_v30 = vsel %vm355_vm0, %v347_v21, %v348_v20  ;;  %v310_v31 = vsel %vm304_vm1, %v297_v23, %v298_v24  ;;  %v3589_v32 = vsel %vm346_vm2, %v3514_v3, %v360_v27 }
  0x1b   : > { %275 = vrot.lane.b32.xlu1 %v3523_v6, %s3437_s14  ;;  %271 = vrot.lane.b32.xlu0 %v3525_v7, %s3437_s14  ;;  %5089 = vst [vmem:[#allocation6_spill] sm:$0xff] %v3589_v32  ;;  %v312_v33 = vsel %vm304_vm1, %v303_v25, %v296_v26  ;;  %v361_v34 = vsel %vm355_vm0, %v348_v20, %v349_v19  ;;  %v300_v38 = vrot.slane %v3532_v10, 7  ;;  %v301_v42 = vrot.slane %v3530_v9, 7 }
  0x1c   : > { %3235 = vmatpush3.bf16.msra.mxu0 %v3388_v5  ;;  %v3598_v35 = vsel %vm346_vm2, %v3516_v4, %v362_v30  ;;  %v359_v36 = vsel %vm355_vm0, %v350_v18, %v351_v29  ;;  %v309_v37 = vsel %vm304_vm1, %v298_v24, %v299_v28  ;;  %v311_v41 = vsel %vm304_vm1, %v296_v26, %v297_v23 }
  0x1d   : > { %3236 = vmatprep.subr.bf16.mxu0 %v3389_v8  ;;  %5090 = vst [vmem:[#allocation7_spill] sm:$0xff] %v3598_v35  ;;  %v352_v43 = vrot.slane %v3530_v9, 1  ;;  %v353_v44 = vrot.slane %v3543_v13, 1  ;;  %v3623_v47 = vsel %vm295_vm4, %v3514_v3, %v310_v31  ;;  %v3632_v49 = vsel %vm295_vm4, %v3516_v4, %v312_v33 }
  0x1e   : > { %5091 = vst [vmem:[#allocation8_spill] sm:$0xff] %v3623_v47  ;;  %5092 = vst [vmem:[#allocation9_spill] sm:$0xff] %v3632_v49  ;;  %v3637_v50 = vsel %vm346_vm2, %v3525_v7, %v361_v34  ;;  %v3646_v52 = vsel %vm346_vm2, %v3523_v6, %v359_v36  ;;  %v3651_v53 = vsel %vm295_vm4, %v3523_v6, %v309_v37  ;;  %v354_v60 = vrot.slane %v3541_v12, 1 }
  0x1f   : > { %279 = vrot.lane.b32.xlu1 %v3530_v9, %s3437_s14  ;;  %277 = vrot.lane.b32.xlu0 %v3532_v10, %s3437_s14  ;;  %5093 = vst [vmem:[#allocation10_spill] sm:$0xff] %v3637_v50  ;;  %5094 = vst [vmem:[#allocation11_spill] sm:$0xff] %v3646_v52  ;;  %v3656_v54 = vsel %vm295_vm4, %v3525_v7, %v311_v41  ;;  %v307_v57 = vsel %vm304_vm1, %v300_v38, %v301_v42  ;;  %v302_v0 = vrot.slane %v3543_v13, 7 }
  0x20   : > { %3237 = vmatpush3.bf16.msra.mxu0 %v3389_v8  ;;  %5095 = vst [vmem:[#allocation12_spill] sm:$0xff] %v3651_v53  ;;  %5096 = vst [vmem:[#allocation13_spill] sm:$0xff] %v3656_v54  ;;  %v357_v58 = vsel %vm355_vm0, %v352_v43, %v353_v44  ;;  %v308_v59 = vsel %vm304_vm1, %v299_v28, %v300_v38  ;;  %v358_v63 = vsel %vm355_vm0, %v351_v29, %v352_v43 }
  0x21   : > { %3238 = vmatprep.subr.bf16.mxu0 %v3390_v11  ;;  %v392_v16 = vsub.f32 %v3632_v49, %v3516_v4  ;;  %v3706_v19 = vsel %vm346_vm2, %v3532_v10, %v358_v63  ;;  %v363_v23 = vsel %vm355_vm0, %v354_v60, %v347_v21  ;;  %v356_v26 = vsel %vm355_vm0, %v353_v44, %v354_v60 }
  0x22   : > { %5098 = vst [vmem:[#allocation15_spill] sm:$0xff] %v3706_v19  ;;  %v305_v30 = vsel %vm304_vm1, %v302_v0, %v303_v25  ;;  %v3739_v25 = vsel %vm346_vm2, %v3541_v12, %v363_v23  ;;  %v3744_v38 = vsel %vm346_vm2, %v3543_v13, %v356_v26  ;;  %v395_v17 = vsub.f32 %v3651_v53, %v3514_v3 }
  0x23   : > { %283 = vrot.lane.b32.xlu1 %v3541_v12, %s3437_s14  ;;  %281 = vrot.lane.b32.xlu0 %v3543_v13, %s3437_s14  ;;  %5099 = vst [vmem:[#allocation16_spill] sm:$0xff] %v3739_v25  ;;  %5100 = vst [vmem:[#allocation17_spill] sm:$0xff] %v3744_v38  ;;  %v400_v23 = vmul.f32 %v392_v16, %v392_v16  ;;  %v394_v16 = vsub.f32 %v3623_v47, %v3525_v7 }
  0x24   : > { %3239 = vmatpush3.bf16.msra.mxu0 %v3390_v11 }
  0x25   : > { %3240 = vmatprep.subr.bf16.mxu0 %v3391_v14 }
  0x27   : > { %324 = vrot.lane.b32.xlu1 %v3525_v7, %s3438_s28  ;;  %322 = vrot.lane.b32.xlu0 %v3516_v4, %s3438_s28 }
  0x28   : > { %3241 = vmatpush3.bf16.msra.mxu0 %v3391_v14  ;;  %v3697_v14 = vsel %vm346_vm2, %v3530_v9, %v357_v58 }
  0x29   : > { %3242 = vmatprep.subr.bf16.mxu0 %v3392_v15  ;;  %5097 = vst [vmem:[#allocation14_spill] sm:$0xff] %v3697_v14 }
  0x2b   : > { %328 = vrot.lane.b32.xlu1 %v3523_v6, %s3438_s28  ;;  %326 = vrot.lane.b32.xlu0 %v3514_v3, %s3438_s28 }
  0x2c   : > { %3243 = vmatpush3.bf16.msra.mxu0 %v3392_v15 }
  0x2f   : > { %332 = vrot.lane.b32.xlu1 %v3530_v9, %s3438_s28  ;;  %330 = vrot.lane.b32.xlu0 %v3532_v10, %s3438_s28 }
  0x33   : > { %336 = vrot.lane.b32.xlu1 %v3541_v12, %s3438_s28  ;;  %334 = vrot.lane.b32.xlu0 %v3543_v13, %s3438_s28 }
  0x89   : > { %v274_v39 = vpop.permute.xlu1 %273  ;;  %v270_v40 = vpop.permute.xlu0 %269 }
  0x8a   : > { %v3613_v45 = vsel %vm268_vm3, %v3514_v3, %v274_v39  ;;  %v3618_v46 = vsel %vm268_vm3, %v3516_v4, %v270_v40 }
  0x8b   : > { %v3627_v48 = vsub.f32 %v3589_v32, %v3613_v45  ;;  %v3641_v51 = vsub.f32 %v3598_v35, %v3618_v46  ;;  %v374_v1 = vsub.f32 %v3613_v45, %v3525_v7  ;;  %v372_v8 = vsub.f32 %v3618_v46, %v3516_v4 }
  0x8d   : > { %v276_v55 = vpop.permute.xlu1 %275  ;;  %v272_v56 = vpop.permute.xlu0 %271  ;;  %v380_v33 = vmul.f32 %v372_v8, %v372_v8  ;;  %v382_v34 = vmul.f32 %v374_v1, %v374_v1  ;;  %v3777_v8 = vsel %vm295_vm4, %v3530_v9, %v307_v57 }
  0x8e   : > { %v3670_v61 = vsel %vm268_vm3, %v3523_v6, %v276_v55  ;;  %v3675_v62 = vsel %vm268_vm3, %v3525_v7, %v272_v56  ;;  %v393_v55 = vsub.f32 %v3656_v54, %v3516_v4  ;;  %v3751_v56 = vsel %vm295_vm4, %v3532_v10, %v308_v59  ;;  %5101 = vst [vmem:[#allocation18_spill] sm:$0xff] %v3777_v8 }
  0x8f   : > { %v375_v2 = vsub.f32 %v3670_v61, %v3514_v3  ;;  %v3686_v5 = vsub.f32 %v3646_v52, %v3670_v61  ;;  %v3692_v11 = vsub.f32 %v3637_v50, %v3675_v62  ;;  %v373_v15 = vsub.f32 %v3675_v62, %v3516_v4 }
  0x90   : > { %v306_v59 = vsel %vm304_vm1, %v301_v42, %v302_v0 }
  0x91   : > { %v280_v18 = vpop.permute.xlu1 %279  ;;  %v278_v20 = vpop.permute.xlu0 %277  ;;  %v383_v24 = vmul.f32 %v375_v2, %v375_v2  ;;  %v381_v29 = vmul.f32 %v373_v15, %v373_v15  ;;  %v3782_v15 = vsel %vm295_vm4, %v3541_v12, %v305_v30 }
  0x92   : > { %v3715_v27 = vsel %vm268_vm3, %v3530_v9, %v280_v18  ;;  %v3720_v28 = vsel %vm268_vm3, %v3532_v10, %v278_v20 }
  0x93   : > { %v377_v21 = vsub.f32 %v3715_v27, %v3532_v10  ;;  %v3728_v31 = vsub.f32 %v3697_v14, %v3715_v27  ;;  %v376_v36 = vsub.f32 %v3720_v28, %v3523_v6  ;;  %v3734_v37 = vsub.f32 %v3706_v19, %v3720_v28 }
  0x94   : > { %v388_v39 = vpack.c.bf16 %v381_v29, %v380_v33  ;;  %v389_v41 = vpack.c.bf16 %v383_v24, %v382_v34  ;;  %v401_v24 = vmul.f32 %v393_v55, %v393_v55  ;;  %v3793_v29 = vsel %vm295_vm4, %v3543_v13, %v306_v59 }
  0x95   : > { %v284_v40 = vpop.permute.xlu1 %283  ;;  %v282_v43 = vpop.permute.xlu0 %281  ;;  %v385_v44 = vmul.f32 %v377_v21, %v377_v21  ;;  %v384_v63 = vmul.f32 %v376_v36, %v376_v36  ;;  %v396_v34 = vsub.f32 %v3751_v56, %v3523_v6  ;;  %v397_v36 = vsub.f32 %v3777_v8, %v3532_v10 }
  0x96   : > { %v3756_v58 = vsel %vm268_vm3, %v3541_v12, %v284_v40  ;;  %v3761_v60 = vsel %vm268_vm3, %v3543_v13, %v282_v43  ;;  %3244 = vmatprep.mubr.bf16.mxu0 %v388_v39  ;;  %v398_v40 = vsub.f32 %v3793_v29, %v3530_v9  ;;  %v417_v22 = vsub.f32 %v3777_v8, %v3715_v27 }
  0x97   : > { %v379_v1 = vsub.f32 %v3756_v58, %v3543_v13  ;;  %v3767_v2 = vsub.f32 %v3739_v25, %v3756_v58  ;;  %3245 = vmatmul.mubr.bf16.vlgmr.msra.gmra.mxu0 %v389_v41  ;;  %v378_v18 = vsub.f32 %v3761_v60, %v3530_v9  ;;  %v3788_v20 = vsub.f32 %v3744_v38, %v3761_v60 }
  0x98   : > { %v390_v42 = vpack.c.bf16 %v385_v44, %v384_v63  ;;  %v399_v41 = vsub.f32 %v3782_v15, %v3543_v13  ;;  %v408_v44 = vpack.c.bf16 %v401_v24, %v400_v23  ;;  %v405_v24 = vmul.f32 %v397_v36, %v397_v36 }
  0x99   : > { %v387_v0 = vmul.f32 %v379_v1, %v379_v1  ;;  %v325_v26 = vpop.permute.xlu1 %324  ;;  %v323_v57 = vpop.permute.xlu0 %322  ;;  %v386_v30 = vmul.f32 %v378_v18, %v378_v18  ;;  %v472_v36 = vsub.f32 %v3525_v7, %v3618_v46 }
  0x9a   : > { %v3798_v21 = vsel %vm321_vm5, %v3525_v7, %v325_v26  ;;  %v3803_v33 = vsel %vm321_vm5, %v3516_v4, %v323_v57  ;;  %3248 = vmatprep.mubr.bf16.mxu0 %v390_v42  ;;  %v402_v42 = vmul.f32 %v394_v16, %v394_v16  ;;  %v404_v26 = vmul.f32 %v396_v34, %v396_v34 }
  0x9b   : > { %v391_v39 = vpack.c.bf16 %v387_v0, %v386_v30  ;;  %v3819_v43 = vsub.f32 %v3637_v50, %v3798_v21  ;;  %v3823_v55 = vsub.f32 %v3598_v35, %v3803_v33  ;;  %v403_v0 = vmul.f32 %v395_v17, %v395_v17 }
  0x9c   : > { %v3839_v57 = vmul.f32 %v398_v40, %v398_v40  ;;  %v3841_v30 = vmul.f32 %v399_v41, %v399_v41  ;;  %v412_v16 = vsub.f32 %v3632_v49, %v3618_v46  ;;  %v410_v50 = vpack.c.bf16 %v405_v24, %v404_v26 }
  0x9d   : > { %v329_v63 = vpop.permute.xlu1 %328  ;;  %v327_v1 = vpop.permute.xlu0 %326  ;;  %v3895_v24 = vmul.f32 %v472_v36, %v472_v36  ;;  %v513_v36 = vsub.f32 %v3514_v3, %v3798_v21 }
  0x9e   : > { %v3828_v59 = vsel %vm321_vm5, %v3523_v6, %v329_v63  ;;  %v3833_v18 = vsel %vm321_vm5, %v3514_v3, %v327_v1  ;;  %v474_v1 = vsub.f32 %v3523_v6, %v3613_v45 }
  0x9f   : > { %v3837_v23 = vsub.f32 %v3646_v52, %v3828_v59  ;;  %3249 = vmatmul.mubr.bf16.gmra.mxu0 %v391_v39  ;;  %v3845_v63 = vsub.f32 %v3589_v32, %v3833_v18  ;;  %v475_v39 = vsub.f32 %v3532_v10, %v3670_v61  ;;  %v409_v52 = vpack.c.bf16 %v403_v0, %v402_v42 }
  0xa0   : > { %3252 = vmatprep.mubr.bf16.mxu0 %v408_v44  ;;  %v413_v44 = vsub.f32 %v3656_v54, %v3675_v62  ;;  %v414_v32 = vsub.f32 %v3623_v47, %v3613_v45  ;;  %v473_v42 = vsub.f32 %v3514_v3, %v3675_v62  ;;  %v420_v0 = vmul.f32 %v412_v16, %v412_v16 }
  0xa1   : > { %v333_v17 = vpop.permute.xlu1 %332  ;;  %v331_v34 = vpop.permute.xlu0 %330  ;;  %v3883_v54 = vmul.f32 %v474_v1, %v474_v1  ;;  %v477_v62 = vsub.f32 %v3543_v13, %v3715_v27  ;;  %v478_v1 = vsub.f32 %v3541_v12, %v3761_v60  ;;  %v515_v27 = vsub.f32 %v3532_v10, %v3828_v59 }
  0xa2   : > { %v3858_v40 = vsel %vm321_vm5, %v3530_v9, %v333_v17  ;;  %v3863_v41 = vsel %vm321_vm5, %v3532_v10, %v331_v34  ;;  %v411_v17 = vpack.c.bf16 %v3841_v30, %v3839_v57  ;;  %v415_v34 = vsub.f32 %v3651_v53, %v3670_v61 }
  0xa3   : > { %v3869_v46 = vsub.f32 %v3697_v14, %v3858_v40  ;;  %v3877_v35 = vsub.f32 %v3706_v19, %v3863_v41  ;;  %v3897_v61 = vmul.f32 %v475_v39, %v475_v39  ;;  %v476_v57 = vsub.f32 %v3530_v9, %v3720_v28 }
  0xa4   : > { %v421_v30 = vmul.f32 %v413_v44, %v413_v44  ;;  %v512_v39 = vsub.f32 %v3525_v7, %v3803_v33  ;;  %v514_v44 = vsub.f32 %v3523_v6, %v3833_v18  ;;  %v3939_v53 = vmul.f32 %v477_v62, %v477_v62 }
  0xa5   : > { %v337_v14 = vpop.permute.xlu1 %336  ;;  %v335_v49 = vpop.permute.xlu0 %334  ;;  %v3937_v47 = vmul.f32 %v476_v57, %v476_v57  ;;  %v3953_v57 = vmul.f32 %v513_v36, %v513_v36  ;;  %v3957_v8 = vmul.f32 %v515_v27, %v515_v27  ;;  %v418_v36 = vsub.f32 %v3793_v29, %v3761_v60 }
  0xa6   : > { %v3888_v45 = vsel %vm321_vm5, %v3541_v12, %v337_v14  ;;  %v3893_v26 = vsel %vm321_vm5, %v3543_v13, %v335_v49  ;;  %v479_v49 = vsub.f32 %v3541_v12, %v3756_v58  ;;  %v428_v6 = vpack.c.bf16 %v421_v30, %v420_v0 }
  0xa7   : > { %5102 = vst [vmem:[#allocation19_spill] sm:$0xff] %v3888_v45  ;;  %5103 = vst [vmem:[#allocation20_spill] sm:$0xff] %v3893_v26  ;;  %v3905_v14 = vsub.f32 %v3739_v25, %v3888_v45  ;;  %3253 = vmatmul.mubr.bf16.gmra.mxu0 %v409_v52  ;;  %v3915_v16 = vsub.f32 %v3744_v38, %v3893_v26  ;;  %v517_v52 = vsub.f32 %v3543_v13, %v3858_v40 }
  0xa8   : > { %3256 = vmatprep.mubr.bf16.mxu0 %v410_v50  ;;  %v516_v25 = vsub.f32 %v3530_v9, %v3863_v41  ;;  %v519_v50 = vsub.f32 %v3541_v12, %v3888_v45  ;;  %v3931_v38 = vmul.f32 %v473_v42, %v473_v42  ;;  %v518_v19 = vsub.f32 %v3541_v12, %v3893_v26 }
  0xa9   : > { %v416_v13 = vsub.f32 %v3751_v56, %v3720_v28  ;;  %v3945_v45 = vmul.f32 %v478_v1, %v478_v1  ;;  %v3949_v12 = vmul.f32 %v479_v49, %v479_v49  ;;  %v3951_v26 = vmul.f32 %v512_v39, %v512_v39 }
  0xaa   : > { %v3955_v62 = vmul.f32 %v514_v44, %v514_v44  ;;  %v3959_v28 = vmul.f32 %v516_v25, %v516_v25  ;;  %v3961_v0 = vmul.f32 %v517_v52, %v517_v52  ;;  %v3967_v49 = vmul.f32 %v518_v19, %v518_v19  ;;  %v5112_v44 = vld [vmem:[#allocation5_spill] sm:$0xff] }
  0xab   : > { %v3969_v39 = vmul.f32 %v519_v50, %v519_v50  ;;  %v423_v27 = vmul.f32 %v415_v34, %v415_v34  ;;  %v424_v52 = vmul.f32 %v416_v13, %v416_v13  ;;  %v425_v30 = vmul.f32 %v417_v22, %v417_v22 }
  0xac   : > { %v422_v1 = vmul.f32 %v414_v32, %v414_v32  ;;  %v433_v50 = vsub.f32 %v3798_v21, %v3516_v4  ;;  %v432_v60 = vsub.f32 %v3803_v33, %v3516_v4  ;;  %v426_v25 = vmul.f32 %v418_v36, %v418_v36 }
  0xad   : > { %v430_v13 = vpack.c.bf16 %v425_v30, %v424_v52  ;;  %v3991_v22 = vmul.f32 %v3641_v51, %v3641_v51  ;;  %v3995_v32 = vmul.f32 %v3692_v11, %v3692_v11  ;;  %v3999_v19 = vmul.f32 %v3686_v5, %v3686_v5 }
  0xae   : > { %v429_v34 = vpack.c.bf16 %v423_v27, %v422_v1  ;;  %v4003_v1 = vmul.f32 %v3734_v37, %v3734_v37  ;;  %v4011_v51 = vmul.f32 %v3788_v20, %v3788_v20  ;;  %v440_v30 = vmul.f32 %v432_v60, %v432_v60  ;;  %v5113_v42 = vld [vmem:[#allocation19_spill] sm:$0xff] }
  0xaf   : > { %3257 = vmatmul.mubr.bf16.gmra.mxu0 %v411_v17  ;;  %v419_v17 = vsub.f32 %v3782_v15, %v3756_v58  ;;  %v441_v58 = vmul.f32 %v433_v50, %v433_v50  ;;  %v4019_v36 = vmul.f32 %v3767_v2, %v3767_v2  ;;  %v4025_v37 = vmul.f32 %v3823_v55, %v3823_v55 }
  0xb0   : > { %3260 = vmatprep.mubr.bf16.mxu0 %v428_v6  ;;  %v3987_v6 = vmul.f32 %v3627_v48, %v3627_v48  ;;  %v4007_v48 = vmul.f32 %v3728_v31, %v3728_v31  ;;  %v4029_v20 = vmul.f32 %v3819_v43, %v3819_v43  ;;  %v4033_v27 = vmul.f32 %v3845_v63, %v3845_v63 }
  0xb1   : > { %5104 = vst [vmem:[#allocation21_spill] sm:$0xff] %v4025_v37  ;;  %v4039_v52 = vmul.f32 %v3837_v23, %v3837_v23  ;;  %v4043_v55 = vmul.f32 %v3877_v35, %v3877_v35  ;;  %v4047_v43 = vmul.f32 %v3869_v46, %v3869_v46  ;;  %v427_v50 = vmul.f32 %v419_v17, %v419_v17  ;;  %v5117_v37 = vld [vmem:[#allocation9_spill] sm:$0xff] }
  0xb2   : > { %5105 = vst [vmem:[#allocation22_spill] sm:$0xff] %v4033_v27  ;;  %v4053_v60 = vmul.f32 %v3915_v16, %v3915_v16  ;;  %v4057_v23 = vmul.f32 %v3905_v14, %v3905_v14  ;;  %v435_v46 = vsub.f32 %v3828_v59, %v3514_v3  ;;  %v434_v17 = vsub.f32 %v3833_v18, %v3525_v7  ;;  %v5111_v14 = vld [vmem:[#allocation2_spill] sm:$0xff]  ;;  %v5116_v27 = vld [vmem:[#allocation13_spill] sm:$0xff] }
  0xb3   : > { %5106 = vst [vmem:[#allocation23_spill] sm:$0xff] %v4039_v52  ;;  %5107 = vst [vmem:[#allocation24_spill] sm:$0xff] %v4043_v55  ;;  %v436_v63 = vsub.f32 %v3863_v41, %v5111_v14  ;;  %v448_v2 = vpack.c.bf16 %v441_v58, %v440_v30  ;;  %v431_v35 = vpack.c.bf16 %v427_v50, %v426_v25  ;;  %v5114_v55 = vld [vmem:[#allocation3_spill] sm:$0xff] }
  0xb4   : > { %5108 = vst [vmem:[#allocation25_spill] sm:$0xff] %v4047_v43  ;;  %5109 = vst [vmem:[#allocation26_spill] sm:$0xff] %v4053_v60  ;;  %v442_v31 = vmul.f32 %v434_v17, %v434_v17  ;;  %v439_v9 = vsub.f32 %v5113_v42, %v5112_v44  ;;  %v5115_v43 = vld [vmem:[#allocation20_spill] sm:$0xff]  ;;  %v453_v52 = vsub.f32 %v3798_v21, %v5116_v27 }
  0xb5   : > { %5110 = vst [vmem:[#allocation27_spill] sm:$0xff] %v4057_v23  ;;  %v444_v5 = vmul.f32 %v436_v63, %v436_v63  ;;  %v438_v16 = vsub.f32 %v5115_v43, %v5114_v55  ;;  %v452_v25 = vsub.f32 %v3803_v33, %v5117_v37  ;;  %v5119_v17 = vld [vmem:[#allocation8_spill] sm:$0xff]  ;;  %v456_v21 = vsub.f32 %v3863_v41, %v3751_v56 }
  0xb6   : > { %v447_v30 = vmul.f32 %v439_v9, %v439_v9  ;;  %v461_v50 = vmul.f32 %v453_v52, %v453_v52 }
  0xb7   : > { %3261 = vmatmul.mubr.bf16.gmra.mxu0 %v429_v34  ;;  %v443_v34 = vmul.f32 %v435_v46, %v435_v46  ;;  %v446_v58 = vmul.f32 %v438_v16, %v438_v16 }
  0xb8   : > { %3264 = vmatprep.mubr.bf16.mxu0 %v430_v13  ;;  %v437_v13 = vsub.f32 %v3858_v40, %v3532_v10 }
  0xb9   : > { %v449_v60 = vpack.c.bf16 %v443_v34, %v442_v31  ;;  %v451_v63 = vpack.c.bf16 %v447_v30, %v446_v58  ;;  %v454_v31 = vsub.f32 %v3833_v18, %v5119_v17  ;;  %v459_v34 = vsub.f32 %v5113_v42, %v3782_v15 }
  0xba   : > { %v445_v11 = vmul.f32 %v437_v13, %v437_v13  ;;  %v492_v58 = vsub.f32 %v3525_v7, %v5117_v37  ;;  %v493_v42 = vsub.f32 %v3514_v3, %v5116_v27  ;;  %v5123_v30 = vpack.c.bf16 %v3939_v53, %v3937_v47 }
  0xbb   : > { %v462_v9 = vmul.f32 %v454_v31, %v454_v31  ;;  %v467_v13 = vmul.f32 %v459_v34, %v459_v34  ;;  %v496_v27 = vsub.f32 %v5114_v55, %v3751_v56  ;;  %v5125_v31 = vld [vmem:[#allocation4_spill] sm:$0xff] }
  0xbc   : > { %v450_v23 = vpack.c.bf16 %v445_v11, %v444_v5  ;;  %v5120_v11 = vld [vmem:[#allocation18_spill] sm:$0xff] }
  0xbd   : > { %v457_v5 = vsub.f32 %v3858_v40, %v5120_v11 }
  0xbf   : > { %3265 = vmatmul.mubr.bf16.gmra.mxu0 %v431_v35  ;;  %v5118_v35 = vld [vmem:[#allocation12_spill] sm:$0xff]  ;;  %v465_v52 = vmul.f32 %v457_v5, %v457_v5  ;;  %v499_v5 = vsub.f32 %v5125_v31, %v3782_v15  ;;  %v5129_v15 = vpack.c.bf16 %v3957_v8, %v3955_v62  ;;  %v5134_v62 = vld [vmem:[#allocation14_spill] sm:$0xff] }
  0xc0   : > { %3268 = vmatprep.mubr.bf16.mxu0 %v448_v2  ;;  %v460_v2 = vmul.f32 %v452_v25, %v452_v25  ;;  %v455_v46 = vsub.f32 %v3828_v59, %v5118_v35  ;;  %v458_v59 = vsub.f32 %v5115_v43, %v3793_v29  ;;  %v5121_v25 = vpack.c.bf16 %v3931_v38, %v3895_v24 }
  0xc1   : > { %v5122_v43 = vpack.c.bf16 %v3897_v61, %v3883_v54  ;;  %v494_v38 = vsub.f32 %v5111_v14, %v5119_v17  ;;  %v495_v24 = vsub.f32 %v3532_v10, %v5118_v35  ;;  %v497_v54 = vsub.f32 %v5112_v44, %v5120_v11 }
  0xc2   : > { %v468_v33 = vpack.c.bf16 %v461_v50, %v460_v2  ;;  %v466_v40 = vmul.f32 %v458_v59, %v458_v59  ;;  %v500_v2 = vmul.f32 %v492_v58, %v492_v58  ;;  %v501_v50 = vmul.f32 %v493_v42, %v493_v42 }
  0xc3   : > { %v5124_v61 = vpack.c.bf16 %v3949_v12, %v3945_v45  ;;  %v502_v47 = vmul.f32 %v494_v38, %v494_v38  ;;  %v503_v53 = vmul.f32 %v495_v24, %v495_v24  ;;  %v498_v35 = vsub.f32 %v5125_v31, %v3793_v29  ;;  %v5127_v45 = vld [vmem:[#allocation7_spill] sm:$0xff] }
  0xc4   : > { %v471_v41 = vpack.c.bf16 %v467_v13, %v466_v40  ;;  %v508_v37 = vpack.c.bf16 %v501_v50, %v500_v2  ;;  %v507_v11 = vmul.f32 %v499_v5, %v499_v5  ;;  %v5126_v12 = vpack.c.bf16 %v3953_v57, %v3951_v26  ;;  %v5131_v57 = vld [vmem:[#allocation6_spill] sm:$0xff]  ;;  %v5133_v40 = vld [vmem:[#allocation15_spill] sm:$0xff]  ;;  %v5137_v2 = vld [vmem:[#allocation16_spill] sm:$0xff] }
  0xc5   : > { %v509_v17 = vpack.c.bf16 %v503_v53, %v502_v47  ;;  %v534_v59 = vsub.f32 %v5131_v57, %v3525_v7  ;;  %v536_v8 = vsub.f32 %v5133_v40, %v5111_v14  ;;  %v537_v13 = vsub.f32 %v5134_v62, %v3532_v10  ;;  %v5142_v47 = vld [vmem:[#allocation21_spill] sm:$0xff]  ;;  %v5150_v5 = vld [vmem:[#allocation27_spill] sm:$0xff] }
  0xc6   : > { %v539_v50 = vsub.f32 %v5137_v2, %v5112_v44  ;;  %v5143_v53 = vpack.c.bf16 %v4029_v20, %v5142_v47  ;;  %v594_v20 = vsub.f32 %v5131_v57, %v5111_v14 }
  0xc7   : > { %3269 = vmatmul.mubr.bf16.gmra.mxu0 %v449_v60  ;;  %v463_v60 = vmul.f32 %v455_v46, %v455_v46  ;;  %v505_v46 = vmul.f32 %v497_v54, %v497_v54  ;;  %v545_v58 = vmul.f32 %v537_v13, %v537_v13  ;;  %v5140_v54 = vpack.c.bf16 %v4007_v48, %v4003_v1  ;;  %v5147_v1 = vld [vmem:[#allocation25_spill] sm:$0xff]  ;;  %v5148_v48 = vld [vmem:[#allocation24_spill] sm:$0xff] }
  0xc8   : > { %3272 = vmatprep.mubr.bf16.mxu0 %v450_v23  ;;  %v464_v23 = vmul.f32 %v456_v21, %v456_v21  ;;  %v506_v21 = vmul.f32 %v498_v35, %v498_v35  ;;  %v597_v35 = vsub.f32 %v5134_v62, %v5112_v44 }
  0xc9   : > { %v469_v18 = vpack.c.bf16 %v463_v60, %v462_v9  ;;  %v532_v9 = vsub.f32 %v5127_v45, %v3516_v4  ;;  %v5128_v60 = vld [vmem:[#allocation10_spill] sm:$0xff] }
  0xca   : > { %v470_v16 = vpack.c.bf16 %v465_v52, %v464_v23  ;;  %v533_v29 = vsub.f32 %v5128_v60, %v3516_v4  ;;  %v3439_v23 = vmov 0   ;;  %v5130_v52 = vpack.c.bf16 %v3961_v0, %v3959_v28 }
  0xcb   : > { %1214 = vmatprep.mubr.bf16.mxu1 %v3439_v23  ;;  %v540_v34 = vmul.f32 %v532_v9, %v532_v9  ;;  %v542_v28 = vmul.f32 %v534_v59, %v534_v59  ;;  %v599_v9 = vsub.f32 %v5137_v2, %v5125_v31 }
  0xcc   : > { %v541_v26 = vmul.f32 %v533_v29, %v533_v29 }
  0xcd   : > { %v607_v44 = vmul.f32 %v599_v9, %v599_v9 }
  0xce   : > { %v548_v4 = vpack.c.bf16 %v541_v26, %v540_v34 }
  0xcf   : > { %3273 = vmatmul.mubr.bf16.gmra.mxu0 %v451_v63  ;;  %v504_v63 = vmul.f32 %v496_v27, %v496_v27 }
  0xd0   : > { %3276 = vmatprep.mubr.bf16.mxu0 %v468_v33  ;;  %v511_v33 = vpack.c.bf16 %v507_v11, %v506_v21  ;;  %v602_v11 = vmul.f32 %v594_v20, %v594_v20 }
  0xd1   : > { %v510_v56 = vpack.c.bf16 %v505_v46, %v504_v63  ;;  %v5149_v46 = vpack.c.bf16 %v5147_v1, %v5148_v48  ;;  %v4209_v48 = vld [vmem:[%s4968_s2 + $0x10] sm:$0xff]  }
  0xd7   : > { %3277 = vmatmul.mubr.bf16.gmra.mxu0 %v469_v18  ;;  %v5132_v18 = vld [vmem:[#allocation11_spill] sm:$0xff] }
  0xd8   : > { %3280 = vmatprep.mubr.bf16.mxu0 %v470_v16  ;;  %v535_v16 = vsub.f32 %v5132_v18, %v3514_v3 }
  0xda   : > { %v543_v0 = vmul.f32 %v535_v16, %v535_v16 }
  0xdc   : > { %v549_v42 = vpack.c.bf16 %v543_v0, %v542_v28 }
  0xdf   : > { %3281 = vmatmul.mubr.bf16.gmra.mxu0 %v471_v41  ;;  %v5135_v41 = vpack.c.bf16 %v3969_v39, %v3967_v49  ;;  %v5138_v49 = vpack.c.bf16 %v3995_v32, %v3991_v22  ;;  %v5139_v39 = vpack.c.bf16 %v3999_v19, %v3987_v6  ;;  %v592_v22 = vsub.f32 %v5127_v45, %v3525_v7  ;;  %v5144_v19 = vld [vmem:[#allocation23_spill] sm:$0xff]  ;;  %v5145_v6 = vld [vmem:[#allocation22_spill] sm:$0xff] }
  0xe0   : > { %3284 = vmatprep.mubr.bf16.mxu0 %v5121_v25  ;;  %v544_v25 = vmul.f32 %v536_v8, %v536_v8  ;;  %v593_v32 = vsub.f32 %v5128_v60, %v3514_v3  ;;  %v5146_v63 = vpack.c.bf16 %v5144_v19, %v5145_v6  ;;  %v596_v3 = vsub.f32 %v5133_v40, %v5114_v55 }
  0xe1   : > { %v605_v45 = vmul.f32 %v597_v35, %v597_v35 }
  0xe2   : > { %v550_v38 = vpack.c.bf16 %v545_v58, %v544_v25 }
  0xe7   : > { %3285 = vmatmul.mubr.bf16.gmra.mxu0 %v5122_v43  ;;  %v5136_v43 = vld [vmem:[#allocation17_spill] sm:$0xff] }
  0xe8   : > { %3288 = vmatprep.mubr.bf16.mxu0 %v5123_v30  ;;  %v538_v30 = vsub.f32 %v5136_v43, %v5114_v55 }
  0xea   : > { %v546_v24 = vmul.f32 %v538_v30, %v538_v30 }
  0xef   : > { %3289 = vmatmul.mubr.bf16.gmra.mxu0 %v5124_v61  ;;  %v5141_v61 = vpack.c.bf16 %v4019_v36, %v4011_v51  ;;  %v600_v51 = vmul.f32 %v592_v22, %v592_v22  ;;  %v601_v36 = vmul.f32 %v593_v32, %v593_v32  ;;  %v4201_v32 = vld [vmem:[%s4968_s2 + $0x8] sm:$0xff]  }
  0xf0   : > { %3292 = vmatprep.mubr.bf16.mxu0 %v508_v37  ;;  %v547_v37 = vmul.f32 %v539_v50, %v539_v50 }
  0xf1   : > { %v608_v7 = vpack.c.bf16 %v601_v36, %v600_v51 }
  0xf2   : > { %v551_v27 = vpack.c.bf16 %v547_v37, %v546_v24 }
  0xf7   : > { %3293 = vmatmul.mubr.bf16.gmra.mxu0 %v509_v17  ;;  %v595_v17 = vsub.f32 %v5132_v18, %v3532_v10  ;;  %v598_v10 = vsub.f32 %v5136_v43, %v5125_v31 }
  0xf8   : > { %3296 = vmatprep.mubr.bf16.mxu0 %v510_v56  ;;  %v5151_v56 = vld [vmem:[#allocation26_spill] sm:$0xff] }
  0xf9   : > { %v5152_v21 = vpack.c.bf16 %v5150_v5, %v5151_v56  ;;  %v606_v60 = vmul.f32 %v598_v10, %v598_v10  ;;  %v4217_v56 = vld [vmem:[%s4968_s2 + $0x18] sm:$0xff]  }
  0xfb   : > { %v611_v29 = vpack.c.bf16 %v607_v44, %v606_v60 }
  0xff   : > { %3297 = vmatmul.mubr.bf16.gmra.mxu0 %v511_v33  ;;  %v603_v33 = vmul.f32 %v595_v17, %v595_v17 }
 0x100   : > { %3300 = vmatprep.mubr.bf16.mxu0 %v5126_v12  ;;  %v604_v12 = vmul.f32 %v596_v3, %v596_v3 }
 0x101   : > { %v609_v14 = vpack.c.bf16 %v603_v33, %v602_v11 }
 0x102   : > { %v610_v55 = vpack.c.bf16 %v605_v45, %v604_v12 }
 0x107   : > { %3301 = vmatmul.mubr.bf16.gmra.mxu0 %v5129_v15 }
 0x108   : > { %3304 = vmatprep.mubr.bf16.mxu0 %v5130_v52 }
 0x10f   : > { %3305 = vmatmul.mubr.bf16.gmra.mxu0 %v5135_v41 }
 0x110   : > { %3308 = vmatprep.mubr.bf16.mxu0 %v548_v4 }
 0x117   : > { %3309 = vmatmul.mubr.bf16.gmra.mxu0 %v549_v42 }
 0x118   : > { %3312 = vmatprep.mubr.bf16.mxu0 %v550_v38 }
 0x11f   : > { %3313 = vmatmul.mubr.bf16.gmra.mxu0 %v551_v27 }
 0x120   : > { %3316 = vmatprep.mubr.bf16.mxu0 %v5138_v49 }
 0x127   : > { %3317 = vmatmul.mubr.bf16.gmra.mxu0 %v5139_v39 }
 0x128   : > { %3320 = vmatprep.mubr.bf16.mxu0 %v5140_v54  ;;  %v4193_v54 = vld [vmem:[%s4968_s2] sm:$0xff]  }
 0x12f   : > { %3321 = vmatmul.mubr.bf16.gmra.mxu0 %v5141_v61 }
 0x130   : > { %3324 = vmatprep.mubr.bf16.mxu0 %v5143_v53 }
 0x137   : > { %3325 = vmatmul.mubr.bf16.gmra.mxu0 %v5146_v63 }
 0x138   : > { %3328 = vmatprep.mubr.bf16.mxu0 %v5149_v46 }
 0x13f   : > { %3329 = vmatmul.mubr.bf16.gmra.mxu0 %v5152_v21 }
 0x140   : > { %3332 = vmatprep.mubr.bf16.mxu0 %v608_v7 }
 0x147   : > { %3333 = vmatmul.mubr.bf16.gmra.mxu0 %v609_v14 }
 0x148   : > { %3336 = vmatprep.mubr.bf16.mxu0 %v610_v55 }
 0x14f   : > { %3337 = vmatmul.mubr.bf16.gmra.mxu0 %v611_v29 }
 0x157   : > { %v3246_v15 = vpop.f32.mrf.mxu0 }
 0x159   : > { %v710_v52 = vpop.f32.mrf.mxu0 }
 0x15b   : > { %v3247_v34 = vpop.f32.mrf.mxu0 }
 0x15c   : > { %v1094_v38 = vpack.c.bf16 %v3247_v34, %v3246_v15 }
 0x15d   : > { %v713_v26 = vpop.f32.mrf.mxu0 }
 0x15e   : > { %v1093_v49 = vpack.c.bf16 %v713_v26, %v710_v52 }
 0x15f   : > { %v3250_v57 = vpop.f32.mrf.mxu0 }
 0x161   : > { %v726_v59 = vpop.f32.mrf.mxu0 }
 0x163   : > { %v3251_v18 = vpop.f32.mrf.mxu0 }
 0x164   : > { %v1096_v0 = vpack.c.bf16 %v3251_v18, %v3250_v57 }
 0x165   : > { %v729_v16 = vpop.f32.mrf.mxu0 }
 0x166   : > { %v1095_v43 = vpack.c.bf16 %v729_v16, %v726_v59 }
 0x167   : > { %v3254_v4 = vpop.f32.mrf.mxu0 }
 0x169   : > { %v742_v40 = vpop.f32.mrf.mxu0 }
 0x16b   : > { %v3255_v8 = vpop.f32.mrf.mxu0 }
 0x16c   : > { %v1098_v2 = vpack.c.bf16 %v3255_v8, %v3254_v4 }
 0x16d   : > { %v745_v62 = vpop.f32.mrf.mxu0 }
 0x16e   : > { %v1097_v37 = vpack.c.bf16 %v745_v62, %v742_v40 }
 0x16f   : > { %v3258_v31 = vpop.f32.mrf.mxu0 }
 0x171   : > { %v758_v13 = vpop.f32.mrf.mxu0 }
 0x173   : > { %v3259_v41 = vpop.f32.mrf.mxu0 }
 0x174   : > { %v1100_v28 = vpack.c.bf16 %v3259_v41, %v3258_v31 }
 0x175   : > { %v761_v25 = vpop.f32.mrf.mxu0 }
 0x176   : > { %v1099_v58 = vpack.c.bf16 %v761_v25, %v758_v13  ;;  %1190 = vmatprep.subr.bf16.mxu1 %v1100_v28 }
 0x177   : > { %v3262_v42 = vpop.f32.mrf.mxu0  ;;  %1191 = vmatpush1.bf16.msra.mxu1 %v1096_v0 }
 0x178   : > { %1192 = vmatprep.subr.bf16.mxu1 %v1099_v58 }
 0x179   : > { %v774_v30 = vpop.f32.mrf.mxu0 }
 0x17b   : > { %v3263_v50 = vpop.f32.mrf.mxu0  ;;  %1193 = vmatpush1.bf16.msra.mxu1 %v1095_v43 }
 0x17c   : > { %1194 = vmatprep.subr.bf16.mxu1 %v1098_v2  ;;  %v1102_v11 = vpack.c.bf16 %v3263_v50, %v3262_v42 }
 0x17d   : > { %v777_v24 = vpop.f32.mrf.mxu0 }
 0x17e   : > { %v1101_v14 = vpack.c.bf16 %v777_v24, %v774_v30 }
 0x17f   : > { %v3266_v27 = vpop.f32.mrf.mxu0  ;;  %1195 = vmatpush1.bf16.msra.mxu1 %v1094_v38 }
 0x180   : > { %1196 = vmatprep.subr.bf16.mxu1 %v1097_v37 }
 0x181   : > { %v790_v39 = vpop.f32.mrf.mxu0 }
 0x183   : > { %v3267_v61 = vpop.f32.mrf.mxu0  ;;  %1197 = vmatpush1.bf16.msra.mxu1 %v1093_v49 }
 0x184   : > { %v1104_v36 = vpack.c.bf16 %v3267_v61, %v3266_v27 }
 0x185   : > { %v793_v47 = vpop.f32.mrf.mxu0 }
 0x186   : > { %2579 = vmatmul.mubr.msk.bf16.vlgmr.msra.gmra.mxu1 %vm1169_vm6, %v4193_v54  ;;  %v1103_v3 = vpack.c.bf16 %v793_v47, %v790_v39 }
 0x187   : > { %v3270_v53 = vpop.f32.mrf.mxu0  ;;  %1224 = vmatprep.mubr.bf16.mxu1 %v3439_v23 }
 0x189   : > { %v806_v22 = vpop.f32.mrf.mxu0 }
 0x18b   : > { %v3271_v19 = vpop.f32.mrf.mxu0 }
 0x18c   : > { %v1106_v5 = vpack.c.bf16 %v3271_v19, %v3270_v53 }
 0x18d   : > { %v809_v6 = vpop.f32.mrf.mxu0 }
 0x18e   : > { %2580 = vmatmul.mubr.msk.bf16.gmra.mxu1 %vm1169_vm6, %v4201_v32  ;;  %v1105_v12 = vpack.c.bf16 %v809_v6, %v806_v22 }
 0x18f   : > { %v3274_v63 = vpop.f32.mrf.mxu0  ;;  %1234 = vmatprep.mubr.bf16.mxu1 %v3439_v23 }
 0x191   : > { %v822_v1 = vpop.f32.mrf.mxu0 }
 0x193   : > { %v3275_v46 = vpop.f32.mrf.mxu0 }
 0x194   : > { %v1108_v51 = vpack.c.bf16 %v3275_v46, %v3274_v63 }
 0x195   : > { %v825_v20 = vpop.f32.mrf.mxu0 }
 0x196   : > { %v1107_v17 = vpack.c.bf16 %v825_v20, %v822_v1  ;;  %2581 = vmatmul.mubr.msk.bf16.gmra.mxu1 %vm1169_vm6, %v4209_v48  ;;  %1263 = vmatprep.subr.bf16.mxu1 %v1108_v51 }
 0x197   : > { %v3278_v7 = vpop.f32.mrf.mxu0  ;;  %1264 = vmatpush1.bf16.msra.mxu1 %v1104_v36  ;;  %1244 = vmatprep.mubr.bf16.mxu1 %v3439_v23 }
 0x198   : > { %1265 = vmatprep.subr.bf16.mxu1 %v1107_v17 }
 0x199   : > { %v838_v35 = vpop.f32.mrf.mxu0 }
 0x19b   : > { %v3279_v21 = vpop.f32.mrf.mxu0  ;;  %1266 = vmatpush1.bf16.msra.mxu1 %v1103_v3 }
 0x19c   : > { %1267 = vmatprep.subr.bf16.mxu1 %v1106_v5  ;;  %v1110_v13 = vpack.c.bf16 %v3279_v21, %v3278_v7 }
 0x19d   : > { %v841_v33 = vpop.f32.mrf.mxu0 }
 0x19e   : > { %2582 = vmatmul.mubr.msk.bf16.gmra.mxu1 %vm1169_vm6, %v4217_v56  ;;  %v1109_v25 = vpack.c.bf16 %v841_v33, %v838_v35 }
 0x19f   : > { %v3282_v45 = vpop.f32.mrf.mxu0  ;;  %1268 = vmatpush1.bf16.msra.mxu1 %v1102_v11  ;;  %1287 = vmatprep.mubr.bf16.mxu1 %v3439_v23 }
 0x1a0   : > { %1269 = vmatprep.subr.bf16.mxu1 %v1105_v12 }
 0x1a1   : > { %v854_v10 = vpop.f32.mrf.mxu0 }
 0x1a3   : > { %v3283_v9 = vpop.f32.mrf.mxu0  ;;  %1270 = vmatpush1.bf16.msra.mxu1 %v1101_v14 }
 0x1a4   : > { %v1112_v59 = vpack.c.bf16 %v3283_v9, %v3282_v45 }
 0x1a5   : > { %v857_v55 = vpop.f32.mrf.mxu0 }
 0x1a6   : > { %2583 = vmatmul.mubr.msk.bf16.vlgmr.msra.gmra.mxu1 %vm1169_vm6, %v4193_v54  ;;  %v1111_v40 = vpack.c.bf16 %v857_v55, %v854_v10 }
 0x1a7   : > { %v3286_v60 = vpop.f32.mrf.mxu0  ;;  %1297 = vmatprep.mubr.bf16.mxu1 %v3439_v23 }
 0x1a9   : > { %v870_v44 = vpop.f32.mrf.mxu0 }
 0x1ab   : > { %v3287_v29 = vpop.f32.mrf.mxu0 }
 0x1ac   : > { %v1114_v62 = vpack.c.bf16 %v3287_v29, %v3286_v60 }
 0x1ad   : > { %v873_v15 = vpop.f32.mrf.mxu0 }
 0x1ae   : > { %2584 = vmatmul.mubr.msk.bf16.gmra.mxu1 %vm1169_vm6, %v4201_v32  ;;  %v1113_v28 = vpack.c.bf16 %v873_v15, %v870_v44 }
 0x1af   : > { %v3290_v52 = vpop.f32.mrf.mxu0  ;;  %1307 = vmatprep.mubr.bf16.mxu1 %v3439_v23 }
 0x1b1   : > { %v886_v34 = vpop.f32.mrf.mxu0 }
 0x1b3   : > { %v3291_v26 = vpop.f32.mrf.mxu0 }
 0x1b4   : > { %v1116_v57 = vpack.c.bf16 %v3291_v26, %v3290_v52 }
 0x1b5   : > { %v889_v18 = vpop.f32.mrf.mxu0 }
 0x1b6   : > { %v1115_v16 = vpack.c.bf16 %v889_v18, %v886_v34  ;;  %2585 = vmatmul.mubr.msk.bf16.gmra.mxu1 %vm1169_vm6, %v4209_v48  ;;  %1336 = vmatprep.subr.bf16.mxu1 %v1116_v57 }
 0x1b7   : > { %v3294_v4 = vpop.f32.mrf.mxu0  ;;  %1337 = vmatpush1.bf16.msra.mxu1 %v1112_v59  ;;  %1317 = vmatprep.mubr.bf16.mxu1 %v3439_v23 }
 0x1b8   : > { %1338 = vmatprep.subr.bf16.mxu1 %v1115_v16 }
 0x1b9   : > { %v902_v8 = vpop.f32.mrf.mxu0 }
 0x1bb   : > { %v3295_v31 = vpop.f32.mrf.mxu0  ;;  %1339 = vmatpush1.bf16.msra.mxu1 %v1111_v40 }
 0x1bc   : > { %1340 = vmatprep.subr.bf16.mxu1 %v1114_v62  ;;  %v1118_v1 = vpack.c.bf16 %v3295_v31, %v3294_v4 }
 0x1bd   : > { %v905_v41 = vpop.f32.mrf.mxu0 }
 0x1be   : > { %2586 = vmatmul.mubr.msk.bf16.gmra.mxu1 %vm1169_vm6, %v4217_v56  ;;  %v1117_v20 = vpack.c.bf16 %v905_v41, %v902_v8 }
 0x1bf   : > { %v3298_v0 = vpop.f32.mrf.mxu0  ;;  %1341 = vmatpush1.bf16.msra.mxu1 %v1110_v13  ;;  %1360 = vmatprep.mubr.bf16.mxu1 %v3439_v23 }
 0x1c0   : > { %1342 = vmatprep.subr.bf16.mxu1 %v1113_v28 }
 0x1c1   : > { %v918_v58 = vpop.f32.mrf.mxu0 }
 0x1c3   : > { %v3299_v42 = vpop.f32.mrf.mxu0  ;;  %1343 = vmatpush1.bf16.msra.mxu1 %v1109_v25 }
 0x1c4   : > { %v1120_v39 = vpack.c.bf16 %v3299_v42, %v3298_v0 }
 0x1c5   : > { %v921_v43 = vpop.f32.mrf.mxu0 }
 0x1c6   : > { %2587 = vmatmul.mubr.msk.bf16.vlgmr.msra.gmra.mxu1 %vm1169_vm6, %v4193_v54  ;;  %v1119_v22 = vpack.c.bf16 %v921_v43, %v918_v58 }
 0x1c7   : > { %v3302_v30 = vpop.f32.mrf.mxu0  ;;  %1370 = vmatprep.mubr.bf16.mxu1 %v3439_v23 }
 0x1c9   : > { %v934_v2 = vpop.f32.mrf.mxu0 }
 0x1cb   : > { %v3303_v50 = vpop.f32.mrf.mxu0 }
 0x1cc   : > { %v1122_v6 = vpack.c.bf16 %v3303_v50, %v3302_v30 }
 0x1cd   : > { %v937_v38 = vpop.f32.mrf.mxu0 }
 0x1ce   : > { %2588 = vmatmul.mubr.msk.bf16.gmra.mxu1 %vm1169_vm6, %v4201_v32  ;;  %v1121_v51 = vpack.c.bf16 %v937_v38, %v934_v2 }
 0x1cf   : > { %v3306_v24 = vpop.f32.mrf.mxu0  ;;  %1380 = vmatprep.mubr.bf16.mxu1 %v3439_v23 }
 0x1d1   : > { %v950_v37 = vpop.f32.mrf.mxu0 }
 0x1d3   : > { %v3307_v27 = vpop.f32.mrf.mxu0 }
 0x1d4   : > { %v1124_v49 = vpack.c.bf16 %v3307_v27, %v3306_v24 }
 0x1d5   : > { %v953_v61 = vpop.f32.mrf.mxu0 }
 0x1d6   : > { %v1123_v47 = vpack.c.bf16 %v953_v61, %v950_v37  ;;  %2589 = vmatmul.mubr.msk.bf16.gmra.mxu1 %vm1169_vm6, %v4209_v48  ;;  %1409 = vmatprep.subr.bf16.mxu1 %v1124_v49 }
 0x1d7   : > { %v3310_v53 = vpop.f32.mrf.mxu0  ;;  %1410 = vmatpush1.bf16.msra.mxu1 %v1120_v39  ;;  %1390 = vmatprep.mubr.bf16.mxu1 %v3439_v23 }
 0x1d8   : > { %1411 = vmatprep.subr.bf16.mxu1 %v1123_v47 }
 0x1d9   : > { %v966_v19 = vpop.f32.mrf.mxu0 }
 0x1db   : > { %v3311_v63 = vpop.f32.mrf.mxu0  ;;  %1412 = vmatpush1.bf16.msra.mxu1 %v1119_v22 }
 0x1dc   : > { %1413 = vmatprep.subr.bf16.mxu1 %v1122_v6  ;;  %v1126_v34 = vpack.c.bf16 %v3311_v63, %v3310_v53 }
 0x1dd   : > { %v969_v46 = vpop.f32.mrf.mxu0 }
 0x1de   : > { %2590 = vmatmul.mubr.msk.bf16.gmra.mxu1 %vm1169_vm6, %v4217_v56  ;;  %v1125_v18 = vpack.c.bf16 %v969_v46, %v966_v19 }
 0x1df   : > { %v3314_v36 = vpop.f32.mrf.mxu0  ;;  %1414 = vmatpush1.bf16.msra.mxu1 %v1118_v1  ;;  %1433 = vmatprep.mubr.bf16.mxu1 %v3439_v23 }
 0x1e0   : > { %1415 = vmatprep.subr.bf16.mxu1 %v1121_v51 }
 0x1e1   : > { %v982_v17 = vpop.f32.mrf.mxu0 }
 0x1e3   : > { %v3315_v7 = vpop.f32.mrf.mxu0  ;;  %1416 = vmatpush1.bf16.msra.mxu1 %v1117_v20 }
 0x1e4   : > { %v1128_v10 = vpack.c.bf16 %v3315_v7, %v3314_v36 }
 0x1e5   : > { %v985_v3 = vpop.f32.mrf.mxu0 }
 0x1e6   : > { %2591 = vmatmul.mubr.msk.bf16.vlgmr.msra.gmra.mxu1 %vm1169_vm6, %v4193_v54  ;;  %v1127_v44 = vpack.c.bf16 %v985_v3, %v982_v17 }
 0x1e7   : > { %v3318_v35 = vpop.f32.mrf.mxu0  ;;  %1443 = vmatprep.mubr.bf16.mxu1 %v3439_v23 }
 0x1e9   : > { %v998_v5 = vpop.f32.mrf.mxu0 }
 0x1eb   : > { %v3319_v21 = vpop.f32.mrf.mxu0 }
 0x1ec   : > { %v1130_v15 = vpack.c.bf16 %v3319_v21, %v3318_v35 }
 0x1ed   : > { %v1001_v11 = vpop.f32.mrf.mxu0 }
 0x1ee   : > { %2592 = vmatmul.mubr.msk.bf16.gmra.mxu1 %vm1169_vm6, %v4201_v32  ;;  %v1129_v57 = vpack.c.bf16 %v1001_v11, %v998_v5 }
 0x1ef   : > { %v3322_v33 = vpop.f32.mrf.mxu0  ;;  %1453 = vmatprep.mubr.bf16.mxu1 %v3439_v23 }
 0x1f1   : > { %v1014_v12 = vpop.f32.mrf.mxu0 }
 0x1f3   : > { %v3323_v45 = vpop.f32.mrf.mxu0 }
 0x1f4   : > { %v1132_v14 = vpack.c.bf16 %v3323_v45, %v3322_v33 }
 0x1f5   : > { %v1017_v9 = vpop.f32.mrf.mxu0 }
 0x1f6   : > { %v1131_v55 = vpack.c.bf16 %v1017_v9, %v1014_v12  ;;  %2593 = vmatmul.mubr.msk.bf16.gmra.mxu1 %vm1169_vm6, %v4209_v48  ;;  %1482 = vmatprep.subr.bf16.mxu1 %v1132_v14 }
 0x1f7   : > { %v3326_v60 = vpop.f32.mrf.mxu0  ;;  %1483 = vmatpush1.bf16.msra.mxu1 %v1128_v10  ;;  %1463 = vmatprep.mubr.bf16.mxu1 %v3439_v23 }
 0x1f8   : > { %1484 = vmatprep.subr.bf16.mxu1 %v1131_v55 }
 0x1f9   : > { %v1030_v29 = vpop.f32.mrf.mxu0 }
 0x1fb   : > { %v3327_v52 = vpop.f32.mrf.mxu0  ;;  %1485 = vmatpush1.bf16.msra.mxu1 %v1127_v44 }
 0x1fc   : > { %1486 = vmatprep.subr.bf16.mxu1 %v1130_v15  ;;  %v1134_v50 = vpack.c.bf16 %v3327_v52, %v3326_v60 }
 0x1fd   : > { %v1033_v26 = vpop.f32.mrf.mxu0 }
 0x1fe   : > { %2594 = vmatmul.mubr.msk.bf16.gmra.mxu1 %vm1169_vm6, %v4217_v56  ;;  %v1133_v24 = vpack.c.bf16 %v1033_v26, %v1030_v29 }
 0x1ff   : > { %v3330_v59 = vpop.f32.mrf.mxu0  ;;  %1487 = vmatpush1.bf16.msra.mxu1 %v1126_v34  ;;  %1506 = vmatprep.mubr.bf16.mxu1 %v3439_v23 }
 0x200   : > { %1488 = vmatprep.subr.bf16.mxu1 %v1129_v57 }
 0x201   : > { %v1046_v16 = vpop.f32.mrf.mxu0 }
 0x203   : > { %v3331_v4 = vpop.f32.mrf.mxu0  ;;  %1489 = vmatpush1.bf16.msra.mxu1 %v1125_v18 }
 0x204   : > { %v1136_v58 = vpack.c.bf16 %v3331_v4, %v3330_v59 }
 0x205   : > { %v1049_v40 = vpop.f32.mrf.mxu0 }
 0x206   : > { %2595 = vmatmul.mubr.msk.bf16.vlgmr.msra.gmra.mxu1 %vm1169_vm6, %v4193_v54  ;;  %v1135_v30 = vpack.c.bf16 %v1049_v40, %v1046_v16 }
 0x207   : > { %v3334_v8 = vpop.f32.mrf.mxu0  ;;  %1516 = vmatprep.mubr.bf16.mxu1 %v3439_v23 }
 0x209   : > { %v1062_v62 = vpop.f32.mrf.mxu0 }
 0x20b   : > { %v3335_v31 = vpop.f32.mrf.mxu0 }
 0x20c   : > { %v1138_v2 = vpack.c.bf16 %v3335_v31, %v3334_v8 }
 0x20d   : > { %v1065_v13 = vpop.f32.mrf.mxu0 }
 0x20e   : > { %2596 = vmatmul.mubr.msk.bf16.gmra.mxu1 %vm1169_vm6, %v4201_v32  ;;  %v1137_v38 = vpack.c.bf16 %v1065_v13, %v1062_v62 }
 0x20f   : > { %v3338_v41 = vpop.f32.mrf.mxu0  ;;  %1526 = vmatprep.mubr.bf16.mxu1 %v3439_v23 }
 0x211   : > { %v1078_v28 = vpop.f32.mrf.mxu0 }
 0x213   : > { %v3339_v0 = vpop.f32.mrf.mxu0 }
 0x214   : > { %v1140_v25 = vpack.c.bf16 %v3339_v0, %v3338_v41 }
 0x215   : > { %v1081_v42 = vpop.f32.mrf.mxu0 }
 0x216   : > { %v1139_v43 = vpack.c.bf16 %v1081_v42, %v1078_v28  ;;  %2597 = vmatmul.mubr.msk.bf16.gmra.mxu1 %vm1169_vm6, %v4209_v48  ;;  %1555 = vmatprep.subr.bf16.mxu1 %v1140_v25 }
 0x217   : > { %1556 = vmatpush1.bf16.msra.mxu1 %v1136_v58  ;;  %1536 = vmatprep.mubr.bf16.mxu1 %v3439_v23 }
 0x218   : > { %1557 = vmatprep.subr.bf16.mxu1 %v1139_v43 }
 0x21b   : > { %1558 = vmatpush1.bf16.msra.mxu1 %v1135_v30 }
 0x21c   : > { %1559 = vmatprep.subr.bf16.mxu1 %v1138_v2 }
 0x21e   : > { %2598 = vmatmul.mubr.msk.bf16.gmra.mxu1 %vm1169_vm6, %v4217_v56 }
 0x21f   : > { %1560 = vmatpush1.bf16.msra.mxu1 %v1134_v50  ;;  %1579 = vmatprep.mubr.bf16.mxu1 %v3439_v23 }
 0x220   : > { %1561 = vmatprep.subr.bf16.mxu1 %v1137_v38 }
 0x223   : > { %1562 = vmatpush1.bf16.msra.mxu1 %v1133_v24 }
 0x226   : > { %2599 = vmatmul.mubr.msk.bf16.vlgmr.msra.gmra.mxu1 %vm1169_vm6, %v4193_v54 }
 0x227   : > { %1589 = vmatprep.mubr.bf16.mxu1 %v3439_v23 }
 0x22e   : > { %2600 = vmatmul.mubr.msk.bf16.gmra.mxu1 %vm1169_vm6, %v4201_v32 }
 0x22f   : > { %1599 = vmatprep.mubr.bf16.mxu1 %v3439_v23 }
 0x236   : > { %2601 = vmatmul.mubr.msk.bf16.gmra.mxu1 %vm1169_vm6, %v4209_v48 }
 0x237   : > { %1609 = vmatprep.mubr.bf16.mxu1 %v3439_v23 }
 0x23e   : > { %2602 = vmatmul.mubr.msk.bf16.gmra.mxu1 %vm1169_vm6, %v4217_v56 }
 0x246   : > { %v4281_v37 = vpop.f32.mrf.mxu1 }
 0x247   : > { %5153 = vst [vmem:[#allocation2_spill] sm:$0xff] %v4281_v37 }
 0x248   : > { %v4283_v27 = vpop.f32.mrf.mxu1 }
 0x249   : > { %5154 = vst [vmem:[#allocation5_spill] sm:$0xff] %v4283_v27 }
 0x24a   : > { %v4285_v54 = vpop.f32.mrf.mxu1 }
 0x24b   : > { %5155 = vst [vmem:[#allocation19_spill] sm:$0xff] %v4285_v54 }
 0x24c   : > { %v4287_v49 = vpop.f32.mrf.mxu1 }
 0x24d   : > { %5156 = vst [vmem:[#allocation3_spill] sm:$0xff] %v4287_v49 }
 0x24e   : > { %v4289_v39 = vpop.f32.mrf.mxu1 }
 0x24f   : > { %5157 = vst [vmem:[#allocation20_spill] sm:$0xff] %v4289_v39 }
 0x250   : > { %v4291_v32 = vpop.f32.mrf.mxu1 }
 0x251   : > { %5158 = vst [vmem:[#allocation13_spill] sm:$0xff] %v4291_v32 }
 0x252   : > { %v4293_v61 = vpop.f32.mrf.mxu1 }
 0x253   : > { %5159 = vst [vmem:[#allocation9_spill] sm:$0xff] %v4293_v61 }
 0x254   : > { %v4295_v48 = vpop.f32.mrf.mxu1 }
 0x255   : > { %5160 = vst [vmem:[#allocation12_spill] sm:$0xff] %v4295_v48 }
 0x256   : > { %v4297_v23 = vpop.f32.mrf.mxu1 }
 0x257   : > { %5161 = vst [vmem:[#allocation8_spill] sm:$0xff] %v4297_v23 }
 0x258   : > { %v4299_v47 = vpop.f32.mrf.mxu1 }
 0x259   : > { %5162 = vst [vmem:[#allocation18_spill] sm:$0xff] %v4299_v47 }
 0x25a   : > { %v4301_v56 = vpop.f32.mrf.mxu1 }
 0x25b   : > { %5163 = vst [vmem:[#allocation4_spill] sm:$0xff] %v4301_v56 }
 0x25c   : > { %v4303_v53 = vpop.f32.mrf.mxu1 }
 0x25d   : > { %5164 = vst [vmem:[#allocation7_spill] sm:$0xff] %v4303_v53 }
 0x25e   : > { %v4305_v22 = vpop.f32.mrf.mxu1 }
 0x25f   : > { %5165 = vst [vmem:[#allocation10_spill] sm:$0xff] %v4305_v22 }
 0x260   : > { %v4307_v19 = vpop.f32.mrf.mxu1 }
 0x261   : > { %5166 = vst [vmem:[#allocation6_spill] sm:$0xff] %v4307_v19 }
 0x262   : > { %v4309_v6 = vpop.f32.mrf.mxu1 }
 0x263   : > { %5167 = vst [vmem:[#allocation11_spill] sm:$0xff] %v4309_v6 }
 0x264   : > { %v4311_v63 = vpop.f32.mrf.mxu1 }
 0x265   : > { %5168 = vst [vmem:[#allocation15_spill] sm:$0xff] %v4311_v63 }
 0x266   : > { %v4313_v1 = vpop.f32.mrf.mxu1 }
 0x267   : > { %5169 = vst [vmem:[#allocation14_spill] sm:$0xff] %v4313_v1 }
 0x268   : > { %v4315_v46 = vpop.f32.mrf.mxu1 }
 0x26a   : > { %v4317_v51 = vpop.f32.mrf.mxu1 }
 0x26c   : > { %v4319_v36 = vpop.f32.mrf.mxu1 }
 0x26e   : > { %v4321_v20 = vpop.f32.mrf.mxu1 }
 0x270   : > { %v4323_v17 = vpop.f32.mrf.mxu1 }
 0x272   : > { %v4325_v7 = vpop.f32.mrf.mxu1 }
 0x273   : > { %5170 = vst [vmem:[#allocation17_spill] sm:$0xff] %v4325_v7 }
 0x274   : > { %v4327_v3 = vpop.f32.mrf.mxu1 }
 0x275   : > { %5171 = vst [vmem:[#allocation16_spill] sm:$0xff] %v4327_v3 }
 0x276   : > { %v4329_v35 = vpop.f32.mrf.mxu1 }
 0x277   : > { %5172 = vst [vmem:[#allocation21_spill] sm:$0xff] %v4329_v35 }
 0x278   : > { %v4331_v5 = vpop.f32.mrf.mxu1 }
 0x279   : > { %5173 = vst [vmem:[#allocation23_spill] sm:$0xff] %v4331_v5 }
 0x27a   : > { %v4333_v21 = vpop.f32.mrf.mxu1 }
 0x27b   : > { %5174 = vst [vmem:[#allocation22_spill] sm:$0xff] %v4333_v21 }
 0x27c   : > { %v4335_v11 = vpop.f32.mrf.mxu1 }
 0x27d   : > { %5175 = vst [vmem:[#allocation25_spill] sm:$0xff] %v4335_v11 }
 0x27e   : > { %v4337_v33 = vpop.f32.mrf.mxu1 }
 0x27f   : > { %5176 = vst [vmem:[#allocation24_spill] sm:$0xff] %v4337_v33 }
 0x280   : > { %v4339_v12 = vpop.f32.mrf.mxu1 }
 0x281   : > { %5177 = vst [vmem:[#allocation27_spill] sm:$0xff] %v4339_v12 }
 0x282   : > { %v4341_v45 = vpop.f32.mrf.mxu1 }
 0x283   : > { %5178 = vst [vmem:[#allocation26_spill] sm:$0xff] %v4341_v45 }
 0x284   : > { %v4343_v14 = vpop.f32.mrf.mxu1 }
 0x285   : > { %5179 = vst [vmem:[#allocation28_spill] sm:$0xff] %v4343_v14 }
 0x286   : > { %v4345_v10 = vpop.f32.mrf.mxu1 }
 0x288   : > { %v4347_v9 = vpop.f32.mrf.mxu1 }
 0x28a   : > { %v4349_v55 = vpop.f32.mrf.mxu1 }
 0x28c   : > { %v4351_v60 = vpop.f32.mrf.mxu1 }
 0x28e   : > { %v4353_v44 = vpop.f32.mrf.mxu1 }
 0x290   : > { %v4355_v29 = vpop.f32.mrf.mxu1 }
 0x292   : > { %v4357_v15 = vpop.f32.mrf.mxu1 }
 0x293   : > { %5180 = vst [vmem:[#allocation29_spill] sm:$0xff] %v4357_v15 }
 0x294   : > { %v4359_v52 = vpop.f32.mrf.mxu1 }
 0x295   : > { %5181 = vst [vmem:[#allocation30_spill] sm:$0xff] %v4359_v52 }
 0x296   : > { %v4361_v34 = vpop.f32.mrf.mxu1 }
 0x297   : > { %5182 = vst [vmem:[#allocation31_spill] sm:$0xff] %v4361_v34 }
 0x298   : > { %v4363_v26 = vpop.f32.mrf.mxu1 }
 0x299   : > { %5183 = vst [vmem:[#allocation32_spill] sm:$0xff] %v4363_v26 }
 0x29a   : > { %v4365_v57 = vpop.f32.mrf.mxu1 }
 0x29b   : > { %5184 = vst [vmem:[#allocation33_spill] sm:$0xff] %v4365_v57 }
 0x29c   : > { %v4367_v59 = vpop.f32.mrf.mxu1 }
 0x29d   : > { %5185 = vst [vmem:[#allocation34_spill] sm:$0xff] %v4367_v59 }
 0x29e   : > { %v4369_v18 = vpop.f32.mrf.mxu1 }
 0x29f   : > { %5186 = vst [vmem:[#allocation35_spill] sm:$0xff] %v4369_v18 }
 0x2a0   : > { %v4371_v16 = vpop.f32.mrf.mxu1 }
 0x2a1   : > { %5187 = vst [vmem:[#allocation36_spill] sm:$0xff] %v4371_v16 }
 0x2a2   : > { %v4373_v4 = vpop.f32.mrf.mxu1 }
 0x2a3   : > { %5188 = vst [vmem:[#allocation37_spill] sm:$0xff] %v4373_v4 }
 0x2a4   : > { %v4375_v40 = vpop.f32.mrf.mxu1 }
 0x2a5   : > { %5189 = vst [vmem:[#allocation38_spill] sm:$0xff] %v4375_v40 }
 0x2a6   : > { %v4377_v8 = vpop.f32.mrf.mxu1 }
 0x2a8   : > { %v4379_v62 = vpop.f32.mrf.mxu1 }
 0x2aa   : > { %v4381_v31 = vpop.f32.mrf.mxu1 }
 0x2ac   : > { %v4383_v13 = vpop.f32.mrf.mxu1 }
 0x2ad   : > { %5190 = vst [vmem:[#allocation39_spill] sm:$0xff] %v4383_v13 }
 0x2ae   : > { %v4385_v41 = vpop.f32.mrf.mxu1 }
 0x2b0   : > { %v4387_v28 = vpop.f32.mrf.mxu1 }
 0x2b1   : > { %5191 = vst [vmem:[#allocation40_spill] sm:$0xff] %v4387_v28  ;;  %v1620_v28 = vmin.f32 %v4281_v37, %v4283_v27 }
 0x2b2   : > { %v4389_v0 = vpop.f32.mrf.mxu1 }
 0x2b3   : > { %5192 = vst [vmem:[#allocation41_spill] sm:$0xff] %v4389_v0  ;;  %v1636_v13 = vmin.f32 %v1620_v28, %v4313_v1  ;;  %v1631_v28 = vadd.f32 %v4295_v48, %v4293_v61 }
 0x2b4   : > { %v4391_v25 = vpop.f32.mrf.mxu1 }
 0x2b5   : > { %5193 = vst [vmem:[#allocation42_spill] sm:$0xff] %v4391_v25 }
 0x2b6   : > { %v4393_v58 = vpop.f32.mrf.mxu1 }
 0x2b7   : > { %5194 = vst [vmem:[#allocation43_spill] sm:$0xff] %v4393_v58 }
 0x2b8   : > { %v4395_v42 = vpop.f32.mrf.mxu1 }
 0x2b9   : > { %5195 = vst [vmem:[#allocation44_spill] sm:$0xff] %v4395_v42  ;;  %v1628_v42 = vadd.f32 %v4283_v27, %v4281_v37  ;;  %v1623_v27 = vmin.f32 %v4293_v61, %v4295_v48  ;;  %v1634_v48 = vadd.f32 %v4307_v19, %v4305_v22  ;;  %v1627_v61 = vmin.f32 %v4309_v6, %v4311_v63 }
 0x2ba   : > { %v4397_v43 = vpop.f32.mrf.mxu1 }
 0x2bb   : > { %5196 = vst [vmem:[#allocation45_spill] sm:$0xff] %v4397_v43 }
 0x2bc   : > { %v4399_v30 = vpop.f32.mrf.mxu1 }
 0x2bd   : > { %5197 = vst [vmem:[#allocation46_spill] sm:$0xff] %v4399_v30  ;;  %v1621_v30 = vmin.f32 %v4285_v54, %v4287_v49 }
 0x2be   : > { %v4401_v2 = vpop.f32.mrf.mxu1 }
 0x2bf   : > { %5198 = vst [vmem:[#allocation47_spill] sm:$0xff] %v4401_v2  ;;  %v1639_v2 = vmin.f32 %v1623_v27, %v4325_v7  ;;  %v1643_v27 = vmin.f32 %v1627_v61, %v4341_v45 }
 0x2c0   : > { %v4403_v50 = vpop.f32.mrf.mxu1 }
 0x2c1   : > { %5199 = vst [vmem:[#allocation48_spill] sm:$0xff] %v4403_v50  ;;  %v1629_v50 = vadd.f32 %v4287_v49, %v4285_v54  ;;  %v1625_v49 = vmin.f32 %v4301_v56, %v4303_v53  ;;  %v1652_v54 = vmin.f32 %v1636_v13, %v4315_v46 }
 0x2c2   : > { %v4405_v38 = vpop.f32.mrf.mxu1 }
 0x2c3   : > { %5200 = vst [vmem:[#allocation49_spill] sm:$0xff] %v4405_v38  ;;  %v1622_v38 = vmin.f32 %v4289_v39, %v4291_v32 }
 0x2c4   : > { %v4407_v24 = vpop.f32.mrf.mxu1 }
 0x2c5   : > { %5201 = vst [vmem:[#allocation50_spill] sm:$0xff] %v4407_v24  ;;  %v1644_v24 = vadd.f32 %v1628_v42, %v4313_v1  ;;  %v1632_v42 = vadd.f32 %v4299_v47, %v4297_v23 }
 0x2c6   : > { %v4411_v25 = vpop.f32.mrf.mxu1 }
 0x2c7   : > { %5202 = vst [vmem:[#allocation51_spill] sm:$0xff] %v4411_v25  ;;  %v1630_v25 = vadd.f32 %v4291_v32, %v4289_v39  ;;  %v1633_v32 = vadd.f32 %v4303_v53, %v4301_v56  ;;  %v1626_v39 = vmin.f32 %v4305_v22, %v4307_v19  ;;  %v1638_v53 = vmin.f32 %v1622_v38, %v4321_v20 }
 0x2c8   : > { %v4416_v43 = vpop.f32.mrf.mxu1  ;;  %v1647_v19 = vadd.f32 %v1631_v28, %v4325_v7  ;;  %v1648_v13 = vadd.f32 %v1632_v42, %v4329_v35  ;;  %v1635_v38 = vadd.f32 %v4311_v63, %v4309_v6  ;;  %v1668_v28 = vmin.f32 %v1652_v54, %v4345_v10 }
 0x2c9   : > { %5203 = vst [vmem:[#allocation52_spill] sm:$0xff] %v4416_v43  ;;  %v1624_v43 = vmin.f32 %v4297_v23, %v4299_v47  ;;  %v1660_v47 = vadd.f32 %v1644_v24, %v4315_v46  ;;  %v1637_v23 = vmin.f32 %v1621_v30, %v4317_v51  ;;  %v1646_v56 = vadd.f32 %v1630_v25, %v4321_v20 }
 0x2ca   : > { %v4431_v37 = vpop.f32.mrf.mxu1  ;;  %v1641_v24 = vmin.f32 %v1625_v49, %v4333_v21  ;;  %v1649_v30 = vadd.f32 %v1633_v32, %v4333_v21  ;;  %v1650_v25 = vadd.f32 %v1634_v48, %v4337_v33  ;;  %v1654_v49 = vmin.f32 %v1638_v53, %v4323_v17 }
 0x2cb   : > { %5204 = vst [vmem:[#allocation53_spill] sm:$0xff] %v4431_v37  ;;  %v1645_v37 = vadd.f32 %v1629_v50, %v4317_v51  ;;  %v1640_v22 = vmin.f32 %v1624_v43, %v4329_v35  ;;  %v1642_v50 = vmin.f32 %v1626_v39, %v4337_v33  ;;  %v1653_v7 = vmin.f32 %v1637_v23, %v4319_v36  ;;  %v5220_v35 = vld [vmem:[#allocation48_spill] sm:$0xff] }
 0x2cc   : > { %v4448_v1 = vpop.f32.mrf.mxu1  ;;  %v1676_v32 = vadd.f32 %v1660_v47, %v4345_v10  ;;  %v1662_v39 = vadd.f32 %v1646_v56, %v4323_v17  ;;  %v1655_v63 = vmin.f32 %v1639_v2, %v4327_v3  ;;  %v1663_v48 = vadd.f32 %v1647_v19, %v4327_v3 }
 0x2cd   : > { %v1661_v42 = vadd.f32 %v1645_v37, %v4319_v36  ;;  %v1656_v61 = vmin.f32 %v1640_v22, %v4331_v5  ;;  %v1664_v54 = vadd.f32 %v1648_v13, %v4331_v5  ;;  %v1657_v23 = vmin.f32 %v1641_v24, %v4335_v11  ;;  %v5219_v5 = vld [vmem:[#allocation46_spill] sm:$0xff] }
 0x2ce   : > { %v4458_v58 = vpop.f32.mrf.mxu1  ;;  %v1665_v37 = vadd.f32 %v1649_v30, %v4335_v11  ;;  %v1658_v53 = vmin.f32 %v1642_v50, %v4339_v12  ;;  %v1666_v47 = vadd.f32 %v1650_v25, %v4339_v12  ;;  %v1651_v56 = vadd.f32 %v1635_v38, %v4341_v45  ;;  %v5212_v11 = vld [vmem:[#allocation49_spill] sm:$0xff]  ;;  %v5213_v21 = vld [vmem:[#allocation51_spill] sm:$0xff] }
 0x2cf   : > { %v1659_v2 = vmin.f32 %v1643_v27, %v4343_v14  ;;  %v1684_v19 = vmin.f32 %v1668_v28, %v4347_v9  ;;  %v1692_v22 = vadd.f32 %v1676_v32, %v4347_v9  ;;  %v1669_v13 = vmin.f32 %v1653_v7, %v4349_v55 }
 0x2d0   : > { %v4469_v43 = vpop.f32.mrf.mxu1  ;;  %v1677_v24 = vadd.f32 %v1661_v42, %v4349_v55  ;;  %v1670_v30 = vmin.f32 %v1654_v49, %v4353_v44  ;;  %v1678_v50 = vadd.f32 %v1662_v39, %v4353_v44  ;;  %v1671_v25 = vmin.f32 %v1655_v63, %v4357_v15 }
 0x2d1   : > { %v1679_v38 = vadd.f32 %v1663_v48, %v4357_v15  ;;  %v1672_v27 = vmin.f32 %v1656_v61, %v4361_v34  ;;  %v1680_v28 = vadd.f32 %v1664_v54, %v4361_v34  ;;  %v1673_v32 = vmin.f32 %v1657_v23, %v4365_v57 }
 0x2d2   : > { %v4479_v6 = vpop.f32.mrf.mxu1  ;;  %v1681_v7 = vadd.f32 %v1665_v37, %v4365_v57  ;;  %v1674_v42 = vmin.f32 %v1658_v53, %v4369_v18  ;;  %v1667_v49 = vadd.f32 %v1651_v56, %v4343_v14  ;;  %v1682_v39 = vadd.f32 %v1666_v47, %v4369_v18  ;;  %v5211_v57 = vld [vmem:[#allocation47_spill] sm:$0xff]  ;;  %v5223_v15 = vld [vmem:[#allocation53_spill] sm:$0xff] }
 0x2d3   : > { %5205 = vst [vmem:[#allocation54_spill] sm:$0xff] %v4479_v6  ;;  %v1675_v63 = vmin.f32 %v1659_v2, %v4373_v4  ;;  %v1700_v48 = vmin.f32 %v1684_v19, %v4377_v8  ;;  %v1685_v61 = vmin.f32 %v1669_v13, %v4351_v60  ;;  %v1693_v54 = vadd.f32 %v1677_v24, %v4351_v60 }
 0x2d4   : > { %v4489_v33 = vpop.f32.mrf.mxu1  ;;  %v1686_v23 = vmin.f32 %v1670_v30, %v4355_v29  ;;  %v1708_v37 = vadd.f32 %v1692_v22, %v4377_v8  ;;  %v1694_v53 = vadd.f32 %v1678_v50, %v4355_v29  ;;  %v1687_v56 = vmin.f32 %v1671_v25, %v4359_v52 }
 0x2d5   : > { %v1695_v47 = vadd.f32 %v1679_v38, %v4359_v52  ;;  %v1688_v2 = vmin.f32 %v1672_v27, %v4363_v26  ;;  %v1696_v19 = vadd.f32 %v1680_v28, %v4363_v26  ;;  %v1689_v13 = vmin.f32 %v1673_v32, %v4367_v59  ;;  %v5222_v52 = vld [vmem:[#allocation52_spill] sm:$0xff] }
 0x2d6   : > { %v4499_v45 = vpop.f32.mrf.mxu1  ;;  %v1697_v24 = vadd.f32 %v1681_v7, %v4367_v59  ;;  %v1690_v30 = vmin.f32 %v1674_v42, %v4371_v16  ;;  %v1698_v22 = vadd.f32 %v1682_v39, %v4371_v16  ;;  %v1683_v50 = vadd.f32 %v1667_v49, %v4373_v4  ;;  %v5208_v4 = vld [vmem:[#allocation43_spill] sm:$0xff]  ;;  %v5210_v59 = vld [vmem:[#allocation45_spill] sm:$0xff] }
 0x2d7   : > { %5206 = vst [vmem:[#allocation55_spill] sm:$0xff] %v4499_v45  ;;  %v1691_v25 = vmin.f32 %v1675_v63, %v4375_v40  ;;  %v1716_v38 = vmin.f32 %v1700_v48, %v4379_v62  ;;  %v1724_v27 = vadd.f32 %v1708_v37, %v4379_v62  ;;  %v1701_v28 = vmin.f32 %v1685_v61, %v4381_v31 }
 0x2d8   : > { %v4509_v12 = vpop.f32.mrf.mxu1  ;;  %v1709_v32 = vadd.f32 %v1693_v54, %v4381_v31  ;;  %v1702_v7 = vmin.f32 %v1686_v23, %v4385_v41  ;;  %v1710_v42 = vadd.f32 %v1694_v53, %v4385_v41  ;;  %v1703_v39 = vmin.f32 %v1687_v56, %v4389_v0 }
 0x2d9   : > { %v1711_v49 = vadd.f32 %v1695_v47, %v4389_v0  ;;  %v1704_v63 = vmin.f32 %v1688_v2, %v5208_v4  ;;  %v1712_v48 = vadd.f32 %v1696_v19, %v5208_v4  ;;  %v1705_v37 = vmin.f32 %v1689_v13, %v5210_v59  ;;  %v5215_v2 = vld [vmem:[#allocation39_spill] sm:$0xff]  ;;  %v5216_v4 = vld [vmem:[#allocation40_spill] sm:$0xff]  ;;  %v5221_v0 = vld [vmem:[#allocation50_spill] sm:$0xff] }
 0x2da   : > { %v4519_v14 = vpop.f32.mrf.mxu1  ;;  %v1713_v61 = vadd.f32 %v1697_v24, %v5210_v59  ;;  %v1706_v54 = vmin.f32 %v1690_v30, %v5211_v57  ;;  %v1699_v23 = vadd.f32 %v1683_v50, %v4375_v40  ;;  %v1714_v53 = vadd.f32 %v1698_v22, %v5211_v57  ;;  %v5217_v59 = vld [vmem:[#allocation42_spill] sm:$0xff]  ;;  %v5218_v40 = vld [vmem:[#allocation44_spill] sm:$0xff] }
 0x2db   : > { %5207 = vst [vmem:[#allocation56_spill] sm:$0xff] %v4519_v14  ;;  %v1707_v56 = vmin.f32 %v1691_v25, %v5212_v11  ;;  %v1732_v47 = vmin.f32 %v1716_v38, %v5213_v21  ;;  %v1717_v34 = vmin.f32 %v1701_v28, %v5215_v2  ;;  %v1725_v19 = vadd.f32 %v1709_v32, %v5215_v2 }
 0x2dc   : > { %v4529_v18 = vpop.f32.mrf.mxu1  ;;  %v1718_v13 = vmin.f32 %v1702_v7, %v5216_v4  ;;  %v1740_v24 = vadd.f32 %v1724_v27, %v5213_v21  ;;  %v1726_v30 = vadd.f32 %v1710_v42, %v5216_v4  ;;  %v1719_v50 = vmin.f32 %v1703_v39, %v5217_v59 }
 0x2dd   : > { %v1727_v22 = vadd.f32 %v1711_v49, %v5217_v59  ;;  %v1720_v25 = vmin.f32 %v1704_v63, %v5218_v40  ;;  %v1728_v38 = vadd.f32 %v1712_v48, %v5218_v40  ;;  %v1721_v28 = vmin.f32 %v1705_v37, %v5219_v5  ;;  %v5230_v40 = vld [vmem:[#allocation19_spill] sm:$0xff] }
 0x2de   : > { %v4539_v16 = vpop.f32.mrf.mxu1  ;;  %v1729_v32 = vadd.f32 %v1713_v61, %v5219_v5  ;;  %v1722_v7 = vmin.f32 %v1706_v54, %v5220_v35  ;;  %v1730_v27 = vadd.f32 %v1714_v53, %v5220_v35  ;;  %v1715_v42 = vadd.f32 %v1699_v23, %v5212_v11 }
 0x2df   : > { %5209 = vst [vmem:[#allocation57_spill] sm:$0xff] %v4539_v16  ;;  %v1723_v39 = vmin.f32 %v1707_v56, %v5221_v0  ;;  %v1748_v49 = vmin.f32 %v1732_v47, %v5222_v52  ;;  %v1756_v63 = vadd.f32 %v1740_v24, %v5222_v52  ;;  %v1733_v48 = vmin.f32 %v1717_v34, %v5223_v15 }
 0x2e0   : > { %v4549_v26 = vpop.f32.mrf.mxu1  ;;  %v1741_v37 = vadd.f32 %v1725_v19, %v5223_v15  ;;  %v1734_v61 = vmin.f32 %v1718_v13, %v4458_v58  ;;  %v1742_v54 = vadd.f32 %v1726_v30, %v4458_v58  ;;  %v4577_v53 = vmin.f32 %v1719_v50, %v4479_v6 }
 0x2e1   : > { %5214 = vst [vmem:[#allocation51_spill] sm:$0xff] %v4549_v26  ;;  %v1743_v23 = vadd.f32 %v1727_v22, %v4479_v6  ;;  %v4581_v56 = vmin.f32 %v1720_v25, %v4499_v45  ;;  %v1744_v24 = vadd.f32 %v1728_v38, %v4499_v45  ;;  %v4587_v34 = vmin.f32 %v1721_v28, %v4519_v14 }
 0x2e2   : > { %v4559_v57 = vpop.f32.mrf.mxu1  ;;  %v4592_v30 = vadd.f32 %v1715_v42, %v5221_v0  ;;  %v1745_v50 = vadd.f32 %v1729_v32, %v4519_v14  ;;  %v4596_v22 = vmin.f32 %v1722_v7, %v4539_v16  ;;  %v1746_v25 = vadd.f32 %v1730_v27, %v4539_v16 }
 0x2e3   : > { %v1749_v38 = vmin.f32 %v1733_v48, %v4448_v1  ;;  %v1757_v28 = vadd.f32 %v1741_v37, %v4448_v1  ;;  %v1758_v32 = vadd.f32 %v1742_v54, %v4469_v43  ;;  %v4612_v27 = vadd.f32 %v1743_v23, %v4489_v33 }
 0x2e4   : > { %v4569_v59 = vpop.f32.mrf.mxu1  ;;  %5224 = vst [vmem:[#allocation39_spill] sm:$0xff] %v4596_v22  ;;  %v4619_v37 = vadd.f32 %v1744_v24, %v4509_v12  ;;  %v4624_v54 = vadd.f32 %v1745_v50, %v4529_v18  ;;  %v4629_v23 = vadd.f32 %v1746_v25, %v4549_v26  ;;  %v4632_v7 = vmin.f32 %v1723_v39, %v4559_v57  ;;  %v5227_v25 = vld [vmem:[#allocation5_spill] sm:$0xff]  ;;  %v5228_v39 = vld [vmem:[#allocation14_spill] sm:$0xff] }
 0x2e6   : > { %v4583_v47 = vpop.f32.mrf.mxu1  ;;  %5225 = vst [vmem:[#allocation40_spill] sm:$0xff] %v4629_v23  ;;  %v5231_v23 = vld [vmem:[#allocation3_spill] sm:$0xff] }
 0x2e7   : > { %v1764_v19 = vmin.f32 %v1748_v49, %v4583_v47  ;;  %v1772_v13 = vadd.f32 %v1756_v63, %v4583_v47  ;;  %v1750_v63 = vmin.f32 %v1734_v61, %v4469_v43 }
 0x2e8   : > { %v4599_v11 = vpop.f32.mrf.mxu1 }
 0x2e9   : > { %v4604_v49 = vmin.f32 %v1764_v19, %v4599_v11  ;;  %v1788_v42 = vadd.f32 %v1772_v13, %v4599_v11 }
 0x2ea   : > { %v4614_v0 = vpop.f32.mrf.mxu1 }
 0x2eb   : > { %v1796_v61 = vmul.f32 0.083333336, %v1788_v42  ;;  %v5226_v42 = vld [vmem:[#allocation2_spill] sm:$0xff]  ;;  %v1868_v19 = vsub.f32 %v5227_v25, %v4604_v49  ;;  %v1917_v48 = vsub.f32 %v5228_v39, %v4604_v49  ;;  %v1966_v16 = vsub.f32 %v4315_v46, %v4604_v49 }
 0x2ec   : > { %v4641_v24 = vpop.f32.mrf.mxu1  ;;  %v1820_v13 = vsub.f32 %v5226_v42, %v4604_v49  ;;  %v2015_v35 = vsub.f32 %v4345_v10, %v4604_v49  ;;  %v1765_v14 = vmin.f32 %v1749_v38, %v4614_v0  ;;  %v1773_v5 = vadd.f32 %v1757_v28, %v4614_v0 }
 0x2ed   : > { %v1804_v50 = vsub.f32 %v1796_v61, %v4604_v49  ;;  %v2064_v42 = vsub.f32 %v4347_v9, %v4604_v49  ;;  %v2113_v25 = vsub.f32 %v4377_v8, %v4604_v49  ;;  %v2162_v10 = vsub.f32 %v4379_v62, %v4604_v49 }
 0x2ee   : > { %v4656_v61 = vpop.f32.mrf.mxu1  ;;  %v2211_v38 = vsub.f32 %v5213_v21, %v4604_v49  ;;  %v1781_v28 = vmin.f32 %v1765_v14, %v4641_v24  ;;  %v2260_v9 = vsub.f32 %v5222_v52, %v4604_v49  ;;  %v2309_v8 = vsub.f32 %v4583_v47, %v4604_v49 }
 0x2ef   : > { %1812 = vst [vmem:[%s4639_s16] sm:$0xff] %v1804_v50  ;;  %v1766_v39 = vmin.f32 %v1750_v63, %v4656_v61  ;;  %v1774_v46 = vadd.f32 %v1758_v32, %v4656_v61  ;;  %v1789_v50 = vadd.f32 %v1773_v5, %v4641_v24 }
 0x2f0   : > { %v4672_v45 = vpop.f32.mrf.mxu1  ;;  %v1821_v21 = vsub.f32 %v5230_v40, %v1781_v28  ;;  %v1869_v14 = vsub.f32 %v5231_v23, %v1781_v28  ;;  %v1918_v5 = vsub.f32 %v4317_v51, %v1781_v28  ;;  %v1967_v52 = vsub.f32 %v4319_v36, %v1781_v28 }
 0x2f1   : > { %5229 = vst [vmem:[#allocation52_spill] sm:$0xff] %v4672_v45  ;;  %v4679_v63 = vmin.f32 %v1766_v39, %v4672_v45  ;;  %v1790_v62 = vadd.f32 %v1774_v46, %v4672_v45  ;;  %v1797_v32 = vmul.f32 0.083333336, %v1789_v50  ;;  %v2016_v47 = vsub.f32 %v4349_v55, %v1781_v28 }
 0x2f2   : > { %v4685_v6 = vpop.f32.mrf.mxu1  ;;  %v2065_v40 = vsub.f32 %v4351_v60, %v1781_v28  ;;  %v2114_v23 = vsub.f32 %v4381_v31, %v1781_v28  ;;  %v2888_v39 = vpack.c.bf16 %v1821_v21, %v1820_v13  ;;  %v2908_v46 = vpack.c.bf16 %v1869_v14, %v1868_v19 }
 0x2f3   : > { %v1805_v51 = vsub.f32 %v1797_v32, %v1781_v28  ;;  %v2928_v50 = vpack.c.bf16 %v1918_v5, %v1917_v48  ;;  %v2948_v26 = vpack.c.bf16 %v1967_v52, %v1966_v16  ;;  %v2968_v22 = vpack.c.bf16 %v2016_v47, %v2015_v35 }
 0x2f4   : > { %v4696_v3 = vpop.f32.mrf.mxu1  ;;  %v2988_v45 = vpack.c.bf16 %v2065_v40, %v2064_v42  ;;  %v3008_v36 = vpack.c.bf16 %v2114_v23, %v2113_v25  ;;  %2889 = vst [vmem:[%s4690_s22] sm:$0xff] %v2888_v39   ;;  %3128 = vst [vmem:[%s4690_s22 + $0x20] sm:$0xff] %v2908_v46   ;;  %v2163_v55 = vsub.f32 %v5215_v2, %v1781_v28  ;;  %v5239_v39 = vld [vmem:[#allocation51_spill] sm:$0xff] }
 0x2f5   : > { %1813 = vst [vmem:[%s4639_s16 + $0x8] sm:$0xff] %v1805_v51  ;;  %3132 = vst [vmem:[%s4690_s22 + $0x40] sm:$0xff] %v2928_v50   ;;  %v2212_v60 = vsub.f32 %v5223_v15, %v1781_v28  ;;  %v2261_v31 = vsub.f32 %v4448_v1, %v1781_v28  ;;  %v2310_v48 = vsub.f32 %v4614_v0, %v1781_v28  ;;  %v1798_v15 = vmul.f32 0.083333336, %v1790_v62 }
 0x2f6   : > { %v4706_v19 = vpop.f32.mrf.mxu1  ;;  %v4710_v35 = vadd.f32 %v4592_v30, %v4559_v57  ;;  %v2358_v16 = vsub.f32 %v4599_v11, %v4604_v49  ;;  %3136 = vst [vmem:[%s4690_s22 + $0x60] sm:$0xff] %v2948_v26   ;;  %3140 = vst [vmem:[%s4690_s22 + $0x80] sm:$0xff] %v2968_v22   ;;  %v2359_v1 = vsub.f32 %v4641_v24, %v1781_v28  ;;  %v5233_v24 = vld [vmem:[#allocation13_spill] sm:$0xff] }
 0x2f7   : > { %3144 = vst [vmem:[%s4690_s22 + $0xa0] sm:$0xff] %v2988_v45   ;;  %3148 = vst [vmem:[%s4690_s22 + $0xc0] sm:$0xff] %v3008_v36   ;;  %v3028_v0 = vpack.c.bf16 %v2163_v55, %v2162_v10  ;;  %v3048_v2 = vpack.c.bf16 %v2212_v60, %v2211_v38  ;;  %v3068_v13 = vpack.c.bf16 %v2261_v31, %v2260_v9  ;;  %v5232_v45 = vld [vmem:[#allocation20_spill] sm:$0xff]  ;;  %v5241_v36 = vld [vmem:[#allocation9_spill] sm:$0xff] }
 0x2f8   : > { %v3088_v30 = vpack.c.bf16 %v2310_v48, %v2309_v8  ;;  %v4719_v42 = vpop.f32.mrf.mxu1  ;;  %v1755_v11 = vmin.f32 %v4632_v7, %v4569_v59  ;;  %v3108_v26 = vpack.c.bf16 %v2359_v1, %v2358_v16  ;;  %v1806_v22 = vsub.f32 %v1798_v15, %v4679_v63  ;;  %v5237_v52 = vld [vmem:[#allocation52_spill] sm:$0xff]  ;;  %v5243_v48 = vld [vmem:[#allocation17_spill] sm:$0xff] }
 0x2f9   : > { %v1822_v49 = vsub.f32 %v5232_v45, %v4679_v63  ;;  %3152 = vst [vmem:[%s4690_s22 + $0xe0] sm:$0xff] %v3028_v0   ;;  %3156 = vst [vmem:[%s4690_s22 + $0x100] sm:$0xff] %v3048_v2   ;;  %v1870_v25 = vsub.f32 %v5233_v24, %v4679_v63  ;;  %v1919_v10 = vsub.f32 %v4321_v20, %v4679_v63  ;;  %v5242_v60 = vld [vmem:[#allocation12_spill] sm:$0xff]  ;;  %v5245_v0 = vld [vmem:[#allocation29_spill] sm:$0xff] }
 0x2fa   : > { %3160 = vst [vmem:[%s4690_s22 + $0x120] sm:$0xff] %v3068_v13   ;;  %3164 = vst [vmem:[%s4690_s22 + $0x140] sm:$0xff] %v3088_v30   ;;  %v1968_v38 = vsub.f32 %v4323_v17, %v4679_v63  ;;  %v2017_v28 = vsub.f32 %v4353_v44, %v4679_v63  ;;  %v4738_v9 = vpop.f32.mrf.mxu1  ;;  %v2066_v8 = vsub.f32 %v4355_v29, %v4679_v63  ;;  %v5244_v1 = vld [vmem:[#allocation16_spill] sm:$0xff]  ;;  %v5246_v13 = vld [vmem:[#allocation30_spill] sm:$0xff] }
 0x2fb   : > { %3168 = vst [vmem:[%s4690_s22 + $0x160] sm:$0xff] %v3108_v26   ;;  %1814 = vst [vmem:[%s4639_s16 + $0x10] sm:$0xff] %v1806_v22  ;;  %v2115_v62 = vsub.f32 %v4385_v41, %v4679_v63  ;;  %v2164_v32 = vsub.f32 %v5216_v4, %v4679_v63  ;;  %v2213_v20 = vsub.f32 %v4458_v58, %v4679_v63  ;;  %v5247_v26 = vld [vmem:[#allocation41_spill] sm:$0xff]  ;;  %v5271_v7 = vld [vmem:[#allocation24_spill] sm:$0xff] }
 0x2fc   : > { %v5234_v17 = vmin.f32 %v4577_v53, %v4489_v33  ;;  %v1775_v21 = vadd.f32 %v4612_v27, %v4685_v6  ;;  %v5235_v29 = vmin.f32 %v4581_v56, %v4509_v12  ;;  %v1776_v41 = vadd.f32 %v4619_v37, %v4706_v19  ;;  %v4762_v4 = vpop.f32.mrf.mxu1 }
 0x2fd   : > { %v2262_v58 = vsub.f32 %v4469_v43, %v4679_v63  ;;  %v2311_v53 = vsub.f32 %v4656_v61, %v4679_v63  ;;  %v5236_v27 = vmin.f32 %v4587_v34, %v4529_v18  ;;  %v1777_v56 = vadd.f32 %v4624_v54, %v4738_v9  ;;  %v5238_v54 = vld [vmem:[#allocation39_spill] sm:$0xff] }
 0x2fe   : > { %v1767_v44 = vmin.f32 %v5234_v17, %v4685_v6  ;;  %v1768_v14 = vmin.f32 %v5235_v29, %v4706_v19  ;;  %v2360_v47 = vsub.f32 %v5237_v52, %v4679_v63  ;;  %v1791_v40 = vadd.f32 %v1775_v21, %v4696_v3  ;;  %v4781_v23 = vpop.f32.mrf.mxu1 }
 0x2ff   : > { %v1769_v5 = vmin.f32 %v5236_v27, %v4738_v9  ;;  %v1792_v61 = vadd.f32 %v1776_v41, %v4719_v42  ;;  %v1793_v51 = vadd.f32 %v1777_v56, %v4762_v4  ;;  %v5240_v63 = vmin.f32 %v5238_v54, %v5239_v39  ;;  %v5248_v27 = vld [vmem:[#allocation42_spill] sm:$0xff] }
 0x300   : > { %v1783_v37 = vmin.f32 %v1767_v44, %v4696_v3  ;;  %v4779_v43 = vmin.f32 %v1768_v14, %v4719_v42  ;;  %v1799_v50 = vmul.f32 0.083333336, %v1791_v40  ;;  %v5249_v56 = vld [vmem:[#allocation54_spill] sm:$0xff] }
 0x301   : > { %v4785_v34 = vmin.f32 %v1769_v5, %v4762_v4  ;;  %v4792_v46 = vmin.f32 %v5240_v63, %v4781_v23 }
 0x302   : > { %v1823_v55 = vsub.f32 %v5241_v36, %v1783_v37  ;;  %v1871_v31 = vsub.f32 %v5242_v60, %v1783_v37  ;;  %v1920_v16 = vsub.f32 %v5243_v48, %v1783_v37  ;;  %v1969_v15 = vsub.f32 %v5244_v1, %v1783_v37 }
 0x303   : > { %v2018_v2 = vsub.f32 %v5245_v0, %v1783_v37  ;;  %v2067_v30 = vsub.f32 %v5246_v13, %v1783_v37  ;;  %v2116_v22 = vsub.f32 %v5247_v26, %v1783_v37  ;;  %v1807_v45 = vsub.f32 %v1799_v50, %v1783_v37  ;;  %v5260_v26 = vld [vmem:[#allocation4_spill] sm:$0xff] }
 0x304   : > { %v2893_v24 = vpack.c.bf16 %v1823_v55, %v1822_v49  ;;  %v2913_v17 = vpack.c.bf16 %v1871_v31, %v1870_v25  ;;  %v2933_v44 = vpack.c.bf16 %v1920_v16, %v1919_v10  ;;  %v2953_v21 = vpack.c.bf16 %v1969_v15, %v1968_v38  ;;  %v5250_v38 = vld [vmem:[#allocation8_spill] sm:$0xff]  ;;  %v5252_v55 = vld [vmem:[#allocation18_spill] sm:$0xff]  ;;  %v5257_v31 = vld [vmem:[#allocation43_spill] sm:$0xff] }
 0x305   : > { %v2973_v29 = vpack.c.bf16 %v2018_v2, %v2017_v28  ;;  %v2993_v14 = vpack.c.bf16 %v2067_v30, %v2066_v8  ;;  %v3013_v41 = vpack.c.bf16 %v2116_v22, %v2115_v62  ;;  %1815 = vst [vmem:[%s4639_s16 + $0x18] sm:$0xff] %v1807_v45  ;;  %v2165_v5 = vsub.f32 %v5248_v27, %v1783_v37  ;;  %v5251_v8 = vld [vmem:[#allocation40_spill] sm:$0xff]  ;;  %v5259_v15 = vld [vmem:[#allocation55_spill] sm:$0xff]  ;;  %v5266_v27 = vld [vmem:[#allocation45_spill] sm:$0xff] }
 0x306   : > { %3125 = vst [vmem:[%s4690_s22 + $0x8] sm:$0xff] %v2893_v24   ;;  %3129 = vst [vmem:[%s4690_s22 + $0x28] sm:$0xff] %v2913_v17   ;;  %v2214_v52 = vsub.f32 %v5249_v56, %v1783_v37  ;;  %v2263_v40 = vsub.f32 %v4489_v33, %v1783_v37  ;;  %v2312_v49 = vsub.f32 %v4685_v6, %v1783_v37  ;;  %v1800_v10 = vmul.f32 0.083333336, %v1792_v61  ;;  %v5258_v16 = vld [vmem:[#allocation44_spill] sm:$0xff]  ;;  %v5261_v45 = vld [vmem:[#allocation7_spill] sm:$0xff] }
 0x307   : > { %3133 = vst [vmem:[%s4690_s22 + $0x48] sm:$0xff] %v2933_v44   ;;  %3137 = vst [vmem:[%s4690_s22 + $0x68] sm:$0xff] %v2953_v21   ;;  %v2361_v25 = vsub.f32 %v4696_v3, %v1783_v37  ;;  %v1824_v28 = vsub.f32 %v5250_v38, %v4779_v43  ;;  %v1778_v62 = vadd.f32 %v5251_v8, %v4781_v23  ;;  %v5253_v3 = vld [vmem:[#allocation21_spill] sm:$0xff]  ;;  %v1801_v30 = vmul.f32 0.083333336, %v1793_v51  ;;  %v5262_v17 = vld [vmem:[#allocation22_spill] sm:$0xff]  ;;  %v4851_v21 = vpop.f32.mrf.mxu1 }
 0x308   : > { %3141 = vst [vmem:[%s4690_s22 + $0x88] sm:$0xff] %v2973_v29   ;;  %3145 = vst [vmem:[%s4690_s22 + $0xa8] sm:$0xff] %v2993_v14   ;;  %v3033_v33 = vpack.c.bf16 %v2165_v5, %v2164_v32  ;;  %v3053_v6 = vpack.c.bf16 %v2214_v52, %v2213_v20  ;;  %v3073_v54 = vpack.c.bf16 %v2263_v40, %v2262_v58  ;;  %v5254_v32 = vld [vmem:[#allocation23_spill] sm:$0xff]  ;;  %v5265_v14 = vld [vmem:[#allocation34_spill] sm:$0xff] }
 0x309   : > { %3149 = vst [vmem:[%s4690_s22 + $0xc8] sm:$0xff] %v3013_v41   ;;  %v3093_v63 = vpack.c.bf16 %v2312_v49, %v2311_v53  ;;  %v3113_v50 = vpack.c.bf16 %v2361_v25, %v2360_v47  ;;  %v1808_v36 = vsub.f32 %v1800_v10, %v4779_v43  ;;  %v1872_v60 = vsub.f32 %v5252_v55, %v4779_v43  ;;  %v5255_v20 = vld [vmem:[#allocation31_spill] sm:$0xff]  ;;  %v5256_v53 = vld [vmem:[#allocation32_spill] sm:$0xff] }
 0x30a   : > { %v1921_v37 = vsub.f32 %v5253_v3, %v4779_v43  ;;  %3153 = vst [vmem:[%s4690_s22 + $0xe8] sm:$0xff] %v3033_v33   ;;  %3157 = vst [vmem:[%s4690_s22 + $0x108] sm:$0xff] %v3053_v6   ;;  %v1970_v61 = vsub.f32 %v5254_v32, %v4779_v43  ;;  %v2019_v58 = vsub.f32 %v5255_v20, %v4779_v43  ;;  %v5267_v33 = vld [vmem:[#allocation46_spill] sm:$0xff] }
 0x30b   : > { %3161 = vst [vmem:[%s4690_s22 + $0x128] sm:$0xff] %v3073_v54   ;;  %3165 = vst [vmem:[%s4690_s22 + $0x148] sm:$0xff] %v3093_v63   ;;  %v2068_v47 = vsub.f32 %v5256_v53, %v4779_v43  ;;  %v2117_v48 = vsub.f32 %v5257_v31, %v4779_v43  ;;  %v2166_v1 = vsub.f32 %v5258_v16, %v4779_v43  ;;  %v5268_v54 = vld [vmem:[#allocation56_spill] sm:$0xff]  ;;  %v5270_v53 = vld [vmem:[#allocation6_spill] sm:$0xff] }
 0x30c   : > { %3169 = vst [vmem:[%s4690_s22 + $0x168] sm:$0xff] %v3113_v50   ;;  %1816 = vst [vmem:[%s4639_s16 + $0x20] sm:$0xff] %v1808_v36  ;;  %v2215_v0 = vsub.f32 %v5259_v15, %v4779_v43  ;;  %v2264_v2 = vsub.f32 %v4509_v12, %v4779_v43  ;;  %v2313_v13 = vsub.f32 %v4706_v19, %v4779_v43  ;;  %v5263_v12 = vld [vmem:[#allocation25_spill] sm:$0xff]  ;;  %v4874_v36 = vpop.f32.mrf.mxu1  ;;  %v5272_v31 = vld [vmem:[#allocation27_spill] sm:$0xff] }
 0x30d   : > { %v1825_v22 = vsub.f32 %v5260_v26, %v4785_v34  ;;  %v1873_v24 = vsub.f32 %v5261_v45, %v4785_v34  ;;  %v1922_v44 = vsub.f32 %v5262_v17, %v4785_v34  ;;  %v1971_v29 = vsub.f32 %v5263_v12, %v4785_v34  ;;  %v5264_v19 = vld [vmem:[#allocation33_spill] sm:$0xff]  ;;  %v5274_v15 = vld [vmem:[#allocation36_spill] sm:$0xff] }
 0x30e   : > { %v2020_v51 = vsub.f32 %v5264_v19, %v4785_v34  ;;  %v2069_v41 = vsub.f32 %v5265_v14, %v4785_v34  ;;  %v2118_v5 = vsub.f32 %v5266_v27, %v4785_v34  ;;  %v1809_v56 = vsub.f32 %v1801_v30, %v4785_v34  ;;  %v5276_v30 = vld [vmem:[#allocation48_spill] sm:$0xff]  ;;  %v5277_v45 = vld [vmem:[#allocation57_spill] sm:$0xff] }
 0x30f   : > { %v2898_v52 = vpack.c.bf16 %v1825_v22, %v1824_v28  ;;  %v2918_v40 = vpack.c.bf16 %v1873_v24, %v1872_v60  ;;  %v2938_v49 = vpack.c.bf16 %v1922_v44, %v1921_v37  ;;  %v2958_v25 = vpack.c.bf16 %v1971_v29, %v1970_v61  ;;  %v5278_v29 = vld [vmem:[#allocation11_spill] sm:$0xff] }
 0x310   : > { %v2978_v10 = vpack.c.bf16 %v2020_v51, %v2019_v58  ;;  %v2998_v38 = vpack.c.bf16 %v2069_v41, %v2068_v47  ;;  %v3018_v8 = vpack.c.bf16 %v2118_v5, %v2117_v48  ;;  %1817 = vst [vmem:[%s4639_s16 + $0x28] sm:$0xff] %v1809_v56  ;;  %v2167_v6 = vsub.f32 %v5267_v33, %v4785_v34  ;;  %v5273_v48 = vld [vmem:[#allocation35_spill] sm:$0xff]  ;;  %v5280_v41 = vld [vmem:[#allocation26_spill] sm:$0xff]  ;;  %v5281_v5 = vld [vmem:[#allocation28_spill] sm:$0xff] }
 0x311   : > { %3126 = vst [vmem:[%s4690_s22 + $0x10] sm:$0xff] %v2898_v52   ;;  %3130 = vst [vmem:[%s4690_s22 + $0x30] sm:$0xff] %v2918_v40   ;;  %v2216_v28 = vsub.f32 %v5268_v54, %v4785_v34  ;;  %v2265_v63 = vsub.f32 %v4529_v18, %v4785_v34  ;;  %v2314_v50 = vsub.f32 %v4738_v9, %v4785_v34  ;;  %v5279_v51 = vld [vmem:[#allocation15_spill] sm:$0xff]  ;;  %v5282_v40 = vld [vmem:[#allocation37_spill] sm:$0xff] }
 0x312   : > { %3134 = vst [vmem:[%s4690_s22 + $0x50] sm:$0xff] %v2938_v49   ;;  %v2362_v55 = vsub.f32 %v4719_v42, %v4779_v43  ;;  %3138 = vst [vmem:[%s4690_s22 + $0x70] sm:$0xff] %v2958_v25   ;;  %v2363_v60 = vsub.f32 %v4762_v4, %v4785_v34  ;;  %v4886_v18 = vmin.f32 %v4792_v46, %v4851_v21  ;;  %v1617_v34 = vpop.f32.mrf.mxu1 }
 0x313   : > { %3142 = vst [vmem:[%s4690_s22 + $0x90] sm:$0xff] %v2978_v10   ;;  %3146 = vst [vmem:[%s4690_s22 + $0xb0] sm:$0xff] %v2998_v38   ;;  %v1794_v9 = vadd.f32 %v1778_v62, %v4851_v21  ;;  %v3038_v3 = vpack.c.bf16 %v2167_v6, %v2166_v1  ;;  %v3058_v42 = vpack.c.bf16 %v2216_v28, %v2215_v0  ;;  %v5269_v62 = vld [vmem:[#allocation10_spill] sm:$0xff]  ;;  %v5284_v10 = vld [vmem:[#allocation49_spill] sm:$0xff] }
 0x314   : > { %3150 = vst [vmem:[%s4690_s22 + $0xd0] sm:$0xff] %v3018_v8   ;;  %v3078_v43 = vpack.c.bf16 %v2265_v63, %v2264_v2  ;;  %v3098_v37 = vpack.c.bf16 %v2314_v50, %v2313_v13  ;;  %v3118_v32 = vpack.c.bf16 %v2363_v60, %v2362_v55  ;;  %v1771_v20 = vmin.f32 %v1755_v11, %v4874_v36  ;;  %v5275_v2 = vld [vmem:[#allocation47_spill] sm:$0xff]  ;;  %v5285_v55 = vld [vmem:[#allocation50_spill] sm:$0xff] }
 0x315   : > { %v1802_v61 = vmul.f32 0.083333336, %v1794_v9  ;;  %v1763_v4 = vadd.f32 %v4710_v35, %v4569_v59  ;;  %3154 = vst [vmem:[%s4690_s22 + $0xf0] sm:$0xff] %v3038_v3   ;;  %3158 = vst [vmem:[%s4690_s22 + $0x110] sm:$0xff] %v3058_v42   ;;  %v1826_v58 = vsub.f32 %v5269_v62, %v4886_v18  ;;  %v1874_v47 = vsub.f32 %v5270_v53, %v4886_v18 }
 0x316   : > { %3162 = vst [vmem:[%s4690_s22 + $0x130] sm:$0xff] %v3078_v43   ;;  %3166 = vst [vmem:[%s4690_s22 + $0x150] sm:$0xff] %v3098_v37   ;;  %v1923_v11 = vsub.f32 %v5271_v7, %v4886_v18  ;;  %v1972_v35 = vsub.f32 %v5272_v31, %v4886_v18  ;;  %v2021_v16 = vsub.f32 %v5273_v48, %v4886_v18 }
 0x317   : > { %3170 = vst [vmem:[%s4690_s22 + $0x170] sm:$0xff] %v3118_v32   ;;  %v1810_v46 = vsub.f32 %v1802_v61, %v4886_v18  ;;  %v1779_v1 = vadd.f32 %v1763_v4, %v4874_v36  ;;  %v2070_v0 = vsub.f32 %v5274_v15, %v4886_v18  ;;  %v2119_v13 = vsub.f32 %v5275_v2, %v4886_v18 }
 0x318   : > { %v2168_v26 = vsub.f32 %v5276_v30, %v4886_v18  ;;  %v1787_v22 = vmin.f32 %v1771_v20, %v1617_v34  ;;  %v2217_v24 = vsub.f32 %v5277_v45, %v4886_v18  ;;  %v2266_v17 = vsub.f32 %v5239_v39, %v4886_v18  ;;  %v5283_v39 = vld [vmem:[#allocation38_spill] sm:$0xff] }
 0x319   : > { %1818 = vst [vmem:[%s4639_s16 + $0x30] sm:$0xff] %v1810_v46  ;;  %v2315_v44 = vsub.f32 %v4781_v23, %v4886_v18  ;;  %v1795_v12 = vadd.f32 %v1779_v1, %v1617_v34  ;;  %v2364_v43 = vsub.f32 %v4851_v21, %v4886_v18 }
 0x31a   : > { %v1827_v19 = vsub.f32 %v5278_v29, %v1787_v22  ;;  %v1875_v14 = vsub.f32 %v5279_v51, %v1787_v22  ;;  %v1924_v27 = vsub.f32 %v5280_v41, %v1787_v22  ;;  %v1973_v56 = vsub.f32 %v5281_v5, %v1787_v22 }
 0x31b   : > { %v1803_v52 = vmul.f32 0.083333336, %v1795_v12  ;;  %v2022_v49 = vsub.f32 %v5282_v40, %v1787_v22  ;;  %v2071_v25 = vsub.f32 %v5283_v39, %v1787_v22  ;;  %v2120_v23 = vsub.f32 %v5284_v10, %v1787_v22 }
 0x31c   : > { %v2903_v38 = vpack.c.bf16 %v1827_v19, %v1826_v58  ;;  %v2923_v8 = vpack.c.bf16 %v1875_v14, %v1874_v47  ;;  %v2943_v33 = vpack.c.bf16 %v1924_v27, %v1923_v11  ;;  %v2963_v6 = vpack.c.bf16 %v1973_v56, %v1972_v35 }
 0x31d   : > { %v1811_v54 = vsub.f32 %v1803_v52, %v1787_v22  ;;  %v2983_v28 = vpack.c.bf16 %v2022_v49, %v2021_v16  ;;  %v3003_v63 = vpack.c.bf16 %v2071_v25, %v2070_v0  ;;  %v3023_v50 = vpack.c.bf16 %v2120_v23, %v2119_v13 }
 0x31e   : > { %3127 = vst [vmem:[%s4690_s22 + $0x18] sm:$0xff] %v2903_v38   ;;  %3131 = vst [vmem:[%s4690_s22 + $0x38] sm:$0xff] %v2923_v8   ;;  %v2169_v60 = vsub.f32 %v5285_v55, %v1787_v22  ;;  %v2218_v9 = vsub.f32 %v4559_v57, %v1787_v22  ;;  %v2267_v3 = vsub.f32 %v4569_v59, %v1787_v22 }
 0x31f   : > { %3135 = vst [vmem:[%s4690_s22 + $0x58] sm:$0xff] %v2943_v33   ;;  %3139 = vst [vmem:[%s4690_s22 + $0x78] sm:$0xff] %v2963_v6   ;;  %v2316_v42 = vsub.f32 %v4874_v36, %v1787_v22  ;;  %v2365_v37 = vsub.f32 %v1617_v34, %v1787_v22 }
 0x320   : > { %1819 = vst [vmem:[%s4639_s16 + $0x38] sm:$0xff] %v1811_v54  ;;  %3143 = vst [vmem:[%s4690_s22 + $0x98] sm:$0xff] %v2983_v28   ;;  %v3043_v32 = vpack.c.bf16 %v2169_v60, %v2168_v26  ;;  %v3063_v61 = vpack.c.bf16 %v2218_v9, %v2217_v24  ;;  %v3083_v20 = vpack.c.bf16 %v2267_v3, %v2266_v17 }
 0x321   : > { %3147 = vst [vmem:[%s4690_s22 + $0xb8] sm:$0xff] %v3003_v63   ;;  %3151 = vst [vmem:[%s4690_s22 + $0xd8] sm:$0xff] %v3023_v50   ;;  %v3103_v4 = vpack.c.bf16 %v2316_v42, %v2315_v44  ;;  %v3123_v57 = vpack.c.bf16 %v2365_v37, %v2364_v43 }
 0x322   : > { %3155 = vst [vmem:[%s4690_s22 + $0xf8] sm:$0xff] %v3043_v32   ;;  %3159 = vst [vmem:[%s4690_s22 + $0x118] sm:$0xff] %v3063_v61  }
 0x323   : > { %3163 = vst [vmem:[%s4690_s22 + $0x138] sm:$0xff] %v3083_v20   ;;  %3167 = vst [vmem:[%s4690_s22 + $0x158] sm:$0xff] %v3103_v4  }
 0x324   : > { %3171 = vst [vmem:[%s4690_s22 + $0x178] sm:$0xff] %v3123_v57  }
 0x325 PF: > { %s15_s19 = sadd.s32 1, %s3435_s19   ;;  %s5286_s15 = smov %s3427_s17 }
 0x326   : > { %p12_p7 = scmp.ge.s32.totalorder %s15_s19, 6   ;;  %s5287_s16 = smov %s3431_s18 }
 0x327   : > { %s5288_s17 = smov %s5291_s20  ;;  %s5289_s18 = smov %s5295_s21 }
 0x328   :  { %14 = sbr.rel (!%p12_p7) target bundleno = 3 (0x3), region = 85 }

</bundles_post_ra>
